<compile_context>
chip_gen: v5e
topology: v5e:2x2
jax: 0.10.0
libtpu: 0.0.40
codegen_flags: <defaults>
</compile_context>

<pallas_src>
import functools
import math

import jax
import jax.numpy as jnp
from jax.experimental import pallas as pl
from jax.experimental.pallas import tpu as pltpu

NEG_SLOPE = 0.01          # torch.nn.LeakyReLU default, used by adf.LeakyReLU
BN_EPS = 1e-5             # torch BatchNorm2d default
_INV_SQRT_2PI = 1.0 / math.sqrt(2.0 * math.pi)
_INV_SQRT_2 = 1.0 / math.sqrt(2.0)
_LANE = 128
_VAR_FLOOR = 1e-12        # numerical guard only (adf default keep_variance_fn is None)


def adf_leaky_relu(m, v, negative_slope=NEG_SLOPE):
    """Exact port of adf.LeakyReLU.forward (Gaussian moment matching).

    Uses rsqrt + multiplies instead of sqrt + divide. A tiny floor guards rsqrt against
    an exactly-zero variance (matches the reference numerically for any realistic v).
    """
    v_safe = jnp.maximum(v, _VAR_FLOOR)
    inv_std = jax.lax.rsqrt(v_safe)
    std = v_safe * inv_std
    div = m * inv_std
    pdf = jnp.exp(-0.5 * div * div) * _INV_SQRT_2PI           # normpdf(div)
    cdf = 0.5 * (1.0 + jax.lax.erf(div * _INV_SQRT_2))        # normcdf(div)
    negative_cdf = 1.0 - cdf
    mu_cdf = m * cdf
    stddev_pdf = std * pdf
    squared_mean_variance = m * m + v
    mean_stddev_pdf = m * stddev_pdf
    mean_r = mu_cdf + stddev_pdf
    variance_r = squared_mean_variance * cdf + mean_stddev_pdf - mean_r * mean_r
    mean_n = -m * negative_cdf + stddev_pdf
    variance_n = squared_mean_variance * negative_cdf - mean_stddev_pdf - mean_n * mean_n
    covxy = -mean_r * mean_n
    out_m = mean_r - negative_slope * mean_n
    out_v = (variance_r
             + negative_slope * negative_slope * variance_n
             - 2.0 * negative_slope * covxy)
    return out_m, out_v


def res_context_kernel(xm_ref, xv_ref,
                       m1_ref, m1sq_ref, b1_ref,
                       m2_ref, m2sq_ref, b2_ref,
                       m3_ref, m3sq_ref, b3_ref,
                       bn1s_ref, bn1b_ref, bn1g2_ref,
                       bn2s_ref, bn2b_ref, bn2g2_ref,
                       om_ref, ov_ref, *, rows_per_image):
    # Working layout is lane-dense (R, W*C) with the batch packed along rows.
    R, WC = om_ref.shape
    H = rows_per_image

    def wdot(lhs, w_ref):
        # bf16 x bf16 MXU matmul, f32 accumulation (weights are pre-cast on the host).
        return jnp.dot(lhs.astype(jnp.bfloat16), w_ref[...],
                       preferred_element_type=jnp.float32)

    xm = xm_ref[...]                          # (R, W*Cin_pad), lane dim = 128
    xv = xv_ref[...]

    # ---- conv1 (1x1) as one block-diagonal matmul per moment, + ADF LeakyReLU ----
    sm = wdot(xm, m1_ref) + b1_ref[...]
    sv = wdot(xv, m1sq_ref)
    sm, sv = adf_leaky_relu(sm, sv)

    # Image-boundary masks (several images are packed along the sublane/row axis).
    row_idx = jax.lax.broadcasted_iota(jnp.int32, (R, WC), 0) % H
    not_first = row_idx != 0
    not_last = row_idx != (H - 1)

    def halo_lhs(x):
        # up[r] = x[r-1] (zero at each image's first row), dn[r] = x[r+1] (zero at each
        # image's last row): XLU sublane rolls + one select, packed lane-wise into a
        # single (R, 3*WC) MXU operand.
        up = jnp.where(not_first, pltpu.roll(x, shift=1, axis=0), 0.0)
        dn = jnp.where(not_last, pltpu.roll(x, shift=R - 1, axis=0), 0.0)
        return jnp.concatenate([up, x, dn], axis=1)

    def conv3x3(in_m, in_v, w_ref, wsq_ref, b_ref):
        # All three kh taps fused into one K=3*WC dot per moment; the kw shifts / zero
        # padding along W are baked into the stacked banded weight matrix.
        out_m = wdot(halo_lhs(in_m), w_ref) + b_ref[...]
        out_v = wdot(halo_lhs(in_v), wsq_ref)
        return out_m, out_v

    # ---- conv2 (3x3, pad 1) + ADF LeakyReLU + bn1 (folded scale/shift) ----
    am, av = conv3x3(sm, sv, m2_ref, m2sq_ref, b2_ref)
    am, av = adf_leaky_relu(am, av)
    am = am * bn1s_ref[...] + bn1b_ref[...]
    av = av * bn1g2_ref[...]

    # ---- conv3 (3x3, pad 1, dil 1) + ADF LeakyReLU + bn2 ----
    bm, bv = conv3x3(am, av, m3_ref, m3sq_ref, b3_ref)
    bm, bv = adf_leaky_relu(bm, bv)
    bm = bm * bn2s_ref[...] + bn2b_ref[...]
    bv = bv * bn2g2_ref[...]

    # ---- residual add (lane-dense store: last dim = W*Cout) ----
    om_ref[...] = sm + bm
    ov_ref[...] = sv + bv


def _build_banded_weights(w_hwio, w_dim):
    """For a 3x3 conv (pad=1), build a stacked (3*W*Cin, W*Cout) matrix whose row blocks
    are the per-kh banded matrices [M_kh=0; M_kh=1; M_kh=2]; the off-diagonal block bands
    of each M_kh encode the kw shifts (implicit zero padding along W)."""
    c_in, c_out = w_hwio.shape[2], w_hwio.shape[3]
    mats = []
    for kh in range(3):
        m = jnp.zeros((w_dim * c_in, w_dim * c_out), jnp.float32)
        for kw in range(3):
            shift = jnp.eye(w_dim, w_dim, k=1 - kw, dtype=jnp.float32)
            m = m + jnp.kron(shift, w_hwio[kh, kw])
        mats.append(m)
    return jnp.concatenate(mats, axis=0)      # (3*W*Cin, W*Cout)


def res_context_block_pallas(xm_nhwc, xv_nhwc, p, images_per_step=None):
    N, H, W, Cin = xm_nhwc.shape
    Cout = p["w1"].shape[1]

    # ---- pad Cin so the input lane dim (W * Cin_pad) is a full 128-lane multiple ----
    Cin_pad = Cin
    if (W * Cin) % _LANE != 0 and _LANE % W == 0:
        Cin_pad = (-(-(W * Cin) // _LANE)) * (_LANE // W)
    w1 = p["w1"]
    if Cin_pad != Cin:
        pad = Cin_pad - Cin
        xm_nhwc = jnp.pad(xm_nhwc, ((0, 0), (0, 0), (0, 0), (0, pad)))
        xv_nhwc = jnp.pad(xv_nhwc, ((0, 0), (0, 0), (0, 0), (0, pad)))
        w1 = jnp.pad(w1, ((0, pad), (0, 0)))

    WCin, WC = W * Cin_pad, W * Cout

    # Pack every image into one grid step (right call for single-TC v5e/v6e: no per-step
    # pipeline overhead and M doubles). On v7x pass images_per_step = N // 2 so both
    # TensorCores get work via the "parallel" grid axis.
    if images_per_step is None:
        images_per_step = N
    assert N % images_per_step == 0
    G = N // images_per_step
    R = images_per_step * H

    # ---- host-side, grid-invariant prep (hoisted out of the kernel) ----
    eye_w = jnp.eye(W, dtype=jnp.float32)
    to_bf16 = lambda a: a.astype(jnp.bfloat16)          # square in f32 first, then cast
    m1 = to_bf16(jnp.kron(eye_w, w1))                    # (W*Cin_pad, W*Cout)
    m1sq = to_bf16(jnp.kron(eye_w, w1 ** 2))
    m2 = to_bf16(_build_banded_weights(p["w2"], W))      # (3*WC, WC)
    m2sq = to_bf16(_build_banded_weights(p["w2"] ** 2, W))
    m3 = to_bf16(_build_banded_weights(p["w3"], W))
    m3sq = to_bf16(_build_banded_weights(p["w3"] ** 2, W))
    # TODO(synk): banded weights scale as ~3*(W*Cout)^2; for real SalsaNext range-image
    #             widths this exceeds v7x's 64 MiB VMEM -- tile W with halo columns (or
    #             fall back to per-kw lane-rolled small-K dots) before scaling up there.

    row = lambda v: jnp.tile(v, W).reshape(1, WC)        # per-channel vec -> lane row
    b1r, b2r, b3r = row(p["b1"]), row(p["b2"]), row(p["b3"])
    s1 = p["g1"] / jnp.sqrt(p["rv1"] + BN_EPS)
    s2 = p["g2"] / jnp.sqrt(p["rv2"] + BN_EPS)
    bn1s, bn1b, bn1g2 = row(s1), row(p["be1"] - p["rm1"] * s1), row(p["g1"] ** 2)
    bn2s, bn2b, bn2g2 = row(s2), row(p["be2"] - p["rm2"] * s2), row(p["g2"] ** 2)

    # Lane-dense layout: fold W and C onto the lane axis, batch onto rows -> (N*H, W*C).
    xm = xm_nhwc.reshape(N * H, WCin)
    xv = xv_nhwc.reshape(N * H, WCin)

    full = lambda shape: pl.BlockSpec(shape, lambda g: (0,) * len(shape))
    row_spec = full((1, WC))

    grid_spec = pltpu.PrefetchScalarGridSpec(
        num_scalar_prefetch=0,
        grid=(G,),
        in_specs=[
            pl.BlockSpec((R, WCin), lambda g: (g, 0)),         # x mean
            pl.BlockSpec((R, WCin), lambda g: (g, 0)),         # x variance
            full((WCin, WC)), full((WCin, WC)), row_spec,      # conv1 W, W^2, bias
            full((3 * WC, WC)), full((3 * WC, WC)), row_spec,  # conv2 stacked-banded W, W^2, bias
            full((3 * WC, WC)), full((3 * WC, WC)), row_spec,  # conv3 stacked-banded W, W^2, bias
            row_spec, row_spec, row_spec,                      # bn1 scale / shift / gamma^2
            row_spec, row_spec, row_spec,                      # bn2 scale / shift / gamma^2
        ],
        out_specs=[
            pl.BlockSpec((R, WC), lambda g: (g, 0)),
            pl.BlockSpec((R, WC), lambda g: (g, 0)),
        ],
    )

    kernel = functools.partial(res_context_kernel, rows_per_image=H)
    om, ov = pl.pallas_call(
        kernel,
        out_shape=(jax.ShapeDtypeStruct((N * H, WC), jnp.float32),
                   jax.ShapeDtypeStruct((N * H, WC), jnp.float32)),
        grid_spec=grid_spec,
        compiler_params=pltpu.CompilerParams(dimension_semantics=("parallel",)),
    )(xm, xv,
      m1, m1sq, b1r, m2, m2sq, b2r, m3, m3sq, b3r,
      bn1s, bn1b, bn1g2, bn2s, bn2b, bn2g2)

    return om.reshape(N, H, W, Cout), ov.reshape(N, H, W, Cout)


def res_context_block_ref(xm_nhwc, xv_nhwc, p):
    """Pure-JAX reference with the same ADF semantics (for validation)."""
    def conv(x, w, b=None, pad=0):
        out = jax.lax.conv_general_dilated(
            x, w, window_strides=(1, 1), padding=[(pad, pad), (pad, pad)],
            dimension_numbers=("NHWC", "HWIO", "NHWC"),
            precision=jax.lax.Precision.HIGHEST)
        return out if b is None else out + b

    Cin, Cout = p["w1"].shape
    w1 = p["w1"].reshape(1, 1, Cin, Cout)

    def leaky(m, v):
        std = jnp.sqrt(v)
        div = m / std
        pdf = jnp.exp(-0.5 * div * div) * _INV_SQRT_2PI
        cdf = 0.5 * (1.0 + jax.lax.erf(div * _INV_SQRT_2))
        ncdf = 1.0 - cdf
        mu_cdf = m * cdf
        stddev_pdf = std * pdf
        smv = m * m + v
        mspdf = m * stddev_pdf
        mean_r = mu_cdf + stddev_pdf
        var_r = smv * cdf + mspdf - mean_r * mean_r
        mean_n = -m * ncdf + stddev_pdf
        var_n = smv * ncdf - mspdf - mean_n * mean_n
        covxy = -mean_r * mean_n
        return (mean_r - NEG_SLOPE * mean_n,
                var_r + NEG_SLOPE * NEG_SLOPE * var_n - 2.0 * NEG_SLOPE * covxy)

    sm = conv(xm_nhwc, w1, p["b1"])
    sv = conv(xv_nhwc, w1 * w1)
    sm, sv = leaky(sm, sv)

    am = conv(sm, p["w2"], p["b2"], pad=1)
    av = conv(sv, p["w2"] ** 2, pad=1)
    am, av = leaky(am, av)
    am = (am - p["rm1"]) * (p["g1"] / jnp.sqrt(p["rv1"] + BN_EPS)) + p["be1"]
    av = av * p["g1"] ** 2

    bm = conv(am, p["w3"], p["b3"], pad=1)
    bv = conv(av, p["w3"] ** 2, pad=1)
    bm, bv = leaky(bm, bv)
    bm = (bm - p["rm2"]) * (p["g2"] / jnp.sqrt(p["rv2"] + BN_EPS)) + p["be2"]
    bv = bv * p["g2"] ** 2

    return sm + bm, sv + bv


if __name__ == "__main__":
    N, Cin, H, W = 2, 4, 16, 16      # PyTorch NCHW input: (2, 4, 16, 16)
    Cout = 8                         # ResContextBlock(in_filters=4, out_filters=8)

    key = jax.random.PRNGKey(0)
    ks = jax.random.split(key, 20)

    # PyTorch-shaped parameters (OIHW conv weights), deterministic init.
    w1_t = 0.30 * jax.random.normal(ks[0], (Cout, Cin, 1, 1), jnp.float32)
    b1_t = 0.10 * jax.random.normal(ks[1], (Cout,), jnp.float32)
    w2_t = 0.15 * jax.random.normal(ks[2], (Cout, Cout, 3, 3), jnp.float32)
    b2_t = 0.10 * jax.random.normal(ks[3], (Cout,), jnp.float32)
    w3_t = 0.15 * jax.random.normal(ks[4], (Cout, Cout, 3, 3), jnp.float32)
    b3_t = 0.10 * jax.random.normal(ks[5], (Cout,), jnp.float32)

    def bn_params(k0, k1, k2, k3):
        return (jax.random.uniform(k0, (Cout,), jnp.float32, 0.8, 1.2),   # gamma
                0.10 * jax.random.normal(k1, (Cout,), jnp.float32),       # beta
                0.10 * jax.random.normal(k2, (Cout,), jnp.float32),       # running mean
                jax.random.uniform(k3, (Cout,), jnp.float32, 0.5, 1.5))   # running var

    g1, be1, rm1, rv1 = bn_params(ks[6], ks[7], ks[8], ks[9])
    g2, be2, rm2, rv2 = bn_params(ks[10], ks[11], ks[12], ks[13])

    # ADF input tuple (mean, variance) in PyTorch NCHW.
    x_mean_nchw = jax.random.normal(ks[14], (N, Cin, H, W), jnp.float32)
    x_var_nchw = jax.random.uniform(ks[15], (N, Cin, H, W), jnp.float32, 0.2, 1.0)

    # --- glue: NCHW -> NHWC, OIHW -> HWIO / (Cin, Cout) ---
    params = dict(
        w1=jnp.transpose(w1_t[:, :, 0, 0], (1, 0)),          # (Cin, Cout)
        b1=b1_t,
        w2=jnp.transpose(w2_t, (2, 3, 1, 0)),                 # (3, 3, Cin, Cout)
        b2=b2_t,
        w3=jnp.transpose(w3_t, (2, 3, 1, 0)),
        b3=b3_t,
        g1=g1, be1=be1, rm1=rm1, rv1=rv1,
        g2=g2, be2=be2, rm2=rm2, rv2=rv2,
    )
    xm_nhwc = jnp.transpose(x_mean_nchw, (0, 2, 3, 1))
    xv_nhwc = jnp.transpose(x_var_nchw, (0, 2, 3, 1))

    out_m, out_v = res_context_block_pallas(xm_nhwc, xv_nhwc, params)
    jax.block_until_ready((out_m, out_v))

    ref_m, ref_v = res_context_block_ref(xm_nhwc, xv_nhwc, params)
    assert out_m.shape == (N, H, W, Cout) and out_v.shape == (N, H, W, Cout)
    assert bool(jnp.all(jnp.isfinite(out_m))) and bool(jnp.all(jnp.isfinite(out_v)))
    assert jnp.allclose(out_m, ref_m, rtol=5e-2, atol=5e-2), "mean mismatch vs reference"
    assert jnp.allclose(out_v, ref_v, rtol=5e-2, atol=5e-2), "variance mismatch vs reference"

    print("KERNEL_OK")
</pallas_src>

<mosaic_0001>
module attributes {stable_mosaic.version = 11 : i64} {
  func.func @res_context_kernel(%arg0: i32, %arg1: memref<32x128xf32, #tpu.memory_space<vmem>>, %arg2: memref<32x128xf32, #tpu.memory_space<vmem>>, %arg3: memref<128x128xbf16, #tpu.memory_space<vmem>>, %arg4: memref<128x128xbf16, #tpu.memory_space<vmem>>, %arg5: memref<1x128xf32, #tpu.memory_space<vmem>>, %arg6: memref<384x128xbf16, #tpu.memory_space<vmem>>, %arg7: memref<384x128xbf16, #tpu.memory_space<vmem>>, %arg8: memref<1x128xf32, #tpu.memory_space<vmem>>, %arg9: memref<384x128xbf16, #tpu.memory_space<vmem>>, %arg10: memref<384x128xbf16, #tpu.memory_space<vmem>>, %arg11: memref<1x128xf32, #tpu.memory_space<vmem>>, %arg12: memref<1x128xf32, #tpu.memory_space<vmem>>, %arg13: memref<1x128xf32, #tpu.memory_space<vmem>>, %arg14: memref<1x128xf32, #tpu.memory_space<vmem>>, %arg15: memref<1x128xf32, #tpu.memory_space<vmem>>, %arg16: memref<1x128xf32, #tpu.memory_space<vmem>>, %arg17: memref<1x128xf32, #tpu.memory_space<vmem>>, %arg18: memref<32x128xf32, #tpu.memory_space<vmem>>, %arg19: memref<32x128xf32, #tpu.memory_space<vmem>>) attributes {dimension_semantics = [#tpu.dimension_semantics<parallel>], iteration_bounds = array<i64: 1>, scalar_prefetch = 0 : i64, scratch_operands = 0 : i64, tpu.core_type = #tpu.core_type<tc>, window_params = [{transform_indices = @transform_0, window_bounds = array<i64: 32, 128>}, {transform_indices = @transform_1, window_bounds = array<i64: 32, 128>}, {pipeline_mode = #tpu.pipeline_mode<synchronous>, transform_indices = @transform_2, window_bounds = array<i64: 128, 128>}, {pipeline_mode = #tpu.pipeline_mode<synchronous>, transform_indices = @transform_3, window_bounds = array<i64: 128, 128>}, {pipeline_mode = #tpu.pipeline_mode<synchronous>, transform_indices = @transform_4, window_bounds = array<i64: 1, 128>}, {pipeline_mode = #tpu.pipeline_mode<synchronous>, transform_indices = @transform_5, window_bounds = array<i64: 384, 128>}, {pipeline_mode = #tpu.pipeline_mode<synchronous>, transform_indices = @transform_6, window_bounds = array<i64: 384, 128>}, {pipeline_mode = #tpu.pipeline_mode<synchronous>, transform_indices = @transform_7, window_bounds = array<i64: 1, 128>}, {pipeline_mode = #tpu.pipeline_mode<synchronous>, transform_indices = @transform_8, window_bounds = array<i64: 384, 128>}, {pipeline_mode = #tpu.pipeline_mode<synchronous>, transform_indices = @transform_9, window_bounds = array<i64: 384, 128>}, {pipeline_mode = #tpu.pipeline_mode<synchronous>, transform_indices = @transform_10, window_bounds = array<i64: 1, 128>}, {pipeline_mode = #tpu.pipeline_mode<synchronous>, transform_indices = @transform_11, window_bounds = array<i64: 1, 128>}, {pipeline_mode = #tpu.pipeline_mode<synchronous>, transform_indices = @transform_12, window_bounds = array<i64: 1, 128>}, {pipeline_mode = #tpu.pipeline_mode<synchronous>, transform_indices = @transform_13, window_bounds = array<i64: 1, 128>}, {pipeline_mode = #tpu.pipeline_mode<synchronous>, transform_indices = @transform_14, window_bounds = array<i64: 1, 128>}, {pipeline_mode = #tpu.pipeline_mode<synchronous>, transform_indices = @transform_15, window_bounds = array<i64: 1, 128>}, {pipeline_mode = #tpu.pipeline_mode<synchronous>, transform_indices = @transform_16, window_bounds = array<i64: 1, 128>}, {transform_indices = @transform_17, window_bounds = array<i64: 32, 128>}, {transform_indices = @transform_18, window_bounds = array<i64: 32, 128>}]} {
    %c0 = arith.constant 0 : index
    %c0_0 = arith.constant 0 : index
    %0 = vector.load %arg1[%c0, %c0_0] : memref<32x128xf32, #tpu.memory_space<vmem>>, vector<32x128xf32>
    %c0_1 = arith.constant 0 : index
    %c0_2 = arith.constant 0 : index
    %1 = vector.load %arg2[%c0_1, %c0_2] : memref<32x128xf32, #tpu.memory_space<vmem>>, vector<32x128xf32>
    %2 = arith.truncf %0 : vector<32x128xf32> to vector<32x128xbf16>
    %c0_3 = arith.constant 0 : index
    %c0_4 = arith.constant 0 : index
    %3 = vector.load %arg3[%c0_3, %c0_4] : memref<128x128xbf16, #tpu.memory_space<vmem>>, vector<128x128xbf16>
    %cst = arith.constant dense<0.000000e+00> : vector<32x128xf32>
    %4 = tpu.matmul %2, %3, %cst {dimension_numbers = #tpu.dot_dimension_numbers<[1], [0], [0], [1], [0, 0, 1, 1], [], []>} : vector<32x128xbf16>, vector<128x128xbf16>, vector<32x128xf32> -> vector<32x128xf32>
    %c0_5 = arith.constant 0 : index
    %c0_6 = arith.constant 0 : index
    %5 = vector.load %arg5[%c0_5, %c0_6] : memref<1x128xf32, #tpu.memory_space<vmem>>, vector<1x128xf32>
    %6 = vector.broadcast %5 : vector<1x128xf32> to vector<32x128xf32>
    %7 = arith.addf %4, %6 : vector<32x128xf32>
    %8 = arith.truncf %1 : vector<32x128xf32> to vector<32x128xbf16>
    %c0_7 = arith.constant 0 : index
    %c0_8 = arith.constant 0 : index
    %9 = vector.load %arg4[%c0_7, %c0_8] : memref<128x128xbf16, #tpu.memory_space<vmem>>, vector<128x128xbf16>
    %cst_9 = arith.constant dense<0.000000e+00> : vector<32x128xf32>
    %10 = tpu.matmul %8, %9, %cst_9 {dimension_numbers = #tpu.dot_dimension_numbers<[1], [0], [0], [1], [0, 0, 1, 1], [], []>} : vector<32x128xbf16>, vector<128x128xbf16>, vector<32x128xf32> -> vector<32x128xf32>
    %cst_10 = arith.constant 9.99999996E-13 : f32
    %11 = vector.broadcast %cst_10 : f32 to vector<32x128xf32>
    %12 = arith.maximumf %10, %11 : vector<32x128xf32>
    %13 = math.rsqrt %12 : vector<32x128xf32>
    %14 = arith.mulf %12, %13 : vector<32x128xf32>
    %15 = arith.mulf %7, %13 : vector<32x128xf32>
    %cst_11 = arith.constant -5.000000e-01 : f32
    %16 = vector.broadcast %cst_11 : f32 to vector<32x128xf32>
    %17 = arith.mulf %16, %15 : vector<32x128xf32>
    %18 = arith.mulf %17, %15 : vector<32x128xf32>
    %19 = math.exp %18 : vector<32x128xf32>
    %cst_12 = arith.constant 0.398942292 : f32
    %20 = vector.broadcast %cst_12 : f32 to vector<32x128xf32>
    %21 = arith.mulf %19, %20 : vector<32x128xf32>
    %cst_13 = arith.constant 0.707106769 : f32
    %22 = vector.broadcast %cst_13 : f32 to vector<32x128xf32>
    %23 = arith.mulf %15, %22 : vector<32x128xf32>
    %24 = math.erf %23 : vector<32x128xf32>
    %cst_14 = arith.constant 1.000000e+00 : f32
    %25 = vector.broadcast %cst_14 : f32 to vector<32x128xf32>
    %26 = arith.addf %25, %24 : vector<32x128xf32>
    %cst_15 = arith.constant 5.000000e-01 : f32
    %27 = vector.broadcast %cst_15 : f32 to vector<32x128xf32>
    %28 = arith.mulf %27, %26 : vector<32x128xf32>
    %cst_16 = arith.constant 1.000000e+00 : f32
    %29 = vector.broadcast %cst_16 : f32 to vector<32x128xf32>
    %30 = arith.subf %29, %28 : vector<32x128xf32>
    %31 = arith.mulf %7, %28 : vector<32x128xf32>
    %32 = arith.mulf %14, %21 : vector<32x128xf32>
    %33 = arith.mulf %7, %7 : vector<32x128xf32>
    %34 = arith.addf %33, %10 : vector<32x128xf32>
    %35 = arith.mulf %7, %32 : vector<32x128xf32>
    %36 = arith.addf %31, %32 : vector<32x128xf32>
    %37 = arith.mulf %34, %28 : vector<32x128xf32>
    %38 = arith.addf %37, %35 : vector<32x128xf32>
    %39 = arith.mulf %36, %36 : vector<32x128xf32>
    %40 = arith.subf %38, %39 : vector<32x128xf32>
    %cst_17 = arith.constant 0.000000e+00 : f32
    %41 = vector.broadcast %cst_17 : f32 to vector<32x128xf32>
    %42 = arith.subf %41, %7 : vector<32x128xf32>
    %43 = arith.mulf %42, %30 : vector<32x128xf32>
    %44 = arith.addf %43, %32 : vector<32x128xf32>
    %45 = arith.mulf %34, %30 : vector<32x128xf32>
    %46 = arith.subf %45, %35 : vector<32x128xf32>
    %47 = arith.mulf %44, %44 : vector<32x128xf32>
    %48 = arith.subf %46, %47 : vector<32x128xf32>
    %cst_18 = arith.constant 0.000000e+00 : f32
    %49 = vector.broadcast %cst_18 : f32 to vector<32x128xf32>
    %50 = arith.subf %49, %36 : vector<32x128xf32>
    %51 = arith.mulf %50, %44 : vector<32x128xf32>
    %cst_19 = arith.constant 0.00999999977 : f32
    %52 = vector.broadcast %cst_19 : f32 to vector<32x128xf32>
    %53 = arith.mulf %52, %44 : vector<32x128xf32>
    %54 = arith.subf %36, %53 : vector<32x128xf32>
    %cst_20 = arith.constant 9.99999974E-5 : f32
    %55 = vector.broadcast %cst_20 : f32 to vector<32x128xf32>
    %56 = arith.mulf %55, %48 : vector<32x128xf32>
    %57 = arith.addf %40, %56 : vector<32x128xf32>
    %cst_21 = arith.constant 2.000000e-02 : f32
    %58 = vector.broadcast %cst_21 : f32 to vector<32x128xf32>
    %59 = arith.mulf %58, %51 : vector<32x128xf32>
    %60 = arith.subf %57, %59 : vector<32x128xf32>
    %61 = tpu.iota {dimensions = array<i32: 0>} : vector<32x128xi32>
    %c16_i32 = arith.constant 16 : i32
    %c0_i32 = arith.constant 0 : i32
    %62 = arith.cmpi eq, %c16_i32, %c0_i32 : i32
    %c1_i32 = arith.constant 1 : i32
    %63 = arith.select %62, %c1_i32, %c16_i32 : i32
    %64 = vector.broadcast %63 : i32 to vector<32x128xi32>
    %65 = arith.remsi %61, %64 : vector<32x128xi32>
    %c0_i32_22 = arith.constant 0 : i32
    %66 = vector.broadcast %c0_i32_22 : i32 to vector<32x128xi32>
    %67 = arith.cmpi ne, %65, %66 : vector<32x128xi32>
    %c0_i32_23 = arith.constant 0 : i32
    %68 = vector.broadcast %c0_i32_23 : i32 to vector<32x128xi32>
    %69 = arith.cmpi slt, %65, %68 : vector<32x128xi32>
    %c0_i32_24 = arith.constant 0 : i32
    %70 = arith.cmpi slt, %63, %c0_i32_24 : i32
    %71 = vector.broadcast %70 : i1 to vector<32x128xi1>
    %72 = vector.broadcast %71 : vector<32x128xi1> to vector<32x128xi1>
    %73 = arith.xori %69, %72 : vector<32x128xi1>
    %74 = arith.andi %73, %67 : vector<32x128xi1>
    %75 = vector.broadcast %63 : i32 to vector<32x128xi32>
    %76 = arith.addi %65, %75 : vector<32x128xi32>
    %77 = arith.select %74, %76, %65 : vector<32x128xi1>, vector<32x128xi32>
    %c0_i32_25 = arith.constant 0 : i32
    %78 = vector.broadcast %c0_i32_25 : i32 to vector<32x128xi32>
    %79 = arith.cmpi ne, %77, %78 : vector<32x128xi32>
    %c15_i32 = arith.constant 15 : i32
    %80 = vector.broadcast %c15_i32 : i32 to vector<32x128xi32>
    %81 = arith.cmpi ne, %77, %80 : vector<32x128xi32>
    %c1_i32_26 = arith.constant 1 : i32
    %82 = tpu.dynamic_rotate %54 by %c1_i32_26 dim 0 : vector<32x128xf32>, i32 -> vector<32x128xf32>
    %cst_27 = arith.constant 0.000000e+00 : f32
    %83 = vector.broadcast %cst_27 : f32 to vector<32x128xf32>
    %84 = arith.select %79, %82, %83 : vector<32x128xi1>, vector<32x128xf32>
    %c31_i32 = arith.constant 31 : i32
    %85 = tpu.dynamic_rotate %54 by %c31_i32 dim 0 : vector<32x128xf32>, i32 -> vector<32x128xf32>
    %cst_28 = arith.constant 0.000000e+00 : f32
    %86 = vector.broadcast %cst_28 : f32 to vector<32x128xf32>
    %87 = arith.select %81, %85, %86 : vector<32x128xi1>, vector<32x128xf32>
    %88 = tpu.concatenate %84, %54, %87 in 1 : vector<32x128xf32>, vector<32x128xf32>, vector<32x128xf32> -> vector<32x384xf32>
    %89 = arith.truncf %88 : vector<32x384xf32> to vector<32x384xbf16>
    %c0_29 = arith.constant 0 : index
    %c0_30 = arith.constant 0 : index
    %90 = vector.load %arg6[%c0_29, %c0_30] : memref<384x128xbf16, #tpu.memory_space<vmem>>, vector<384x128xbf16>
    %cst_31 = arith.constant dense<0.000000e+00> : vector<32x128xf32>
    %91 = tpu.matmul %89, %90, %cst_31 {dimension_numbers = #tpu.dot_dimension_numbers<[1], [0], [0], [1], [0, 0, 1, 1], [], []>} : vector<32x384xbf16>, vector<384x128xbf16>, vector<32x128xf32> -> vector<32x128xf32>
    %c0_32 = arith.constant 0 : index
    %c0_33 = arith.constant 0 : index
    %92 = vector.load %arg8[%c0_32, %c0_33] : memref<1x128xf32, #tpu.memory_space<vmem>>, vector<1x128xf32>
    %93 = vector.broadcast %92 : vector<1x128xf32> to vector<32x128xf32>
    %94 = arith.addf %91, %93 : vector<32x128xf32>
    %c1_i32_34 = arith.constant 1 : i32
    %95 = tpu.dynamic_rotate %60 by %c1_i32_34 dim 0 : vector<32x128xf32>, i32 -> vector<32x128xf32>
    %cst_35 = arith.constant 0.000000e+00 : f32
    %96 = vector.broadcast %cst_35 : f32 to vector<32x128xf32>
    %97 = arith.select %79, %95, %96 : vector<32x128xi1>, vector<32x128xf32>
    %c31_i32_36 = arith.constant 31 : i32
    %98 = tpu.dynamic_rotate %60 by %c31_i32_36 dim 0 : vector<32x128xf32>, i32 -> vector<32x128xf32>
    %cst_37 = arith.constant 0.000000e+00 : f32
    %99 = vector.broadcast %cst_37 : f32 to vector<32x128xf32>
    %100 = arith.select %81, %98, %99 : vector<32x128xi1>, vector<32x128xf32>
    %101 = tpu.concatenate %97, %60, %100 in 1 : vector<32x128xf32>, vector<32x128xf32>, vector<32x128xf32> -> vector<32x384xf32>
    %102 = arith.truncf %101 : vector<32x384xf32> to vector<32x384xbf16>
    %c0_38 = arith.constant 0 : index
    %c0_39 = arith.constant 0 : index
    %103 = vector.load %arg7[%c0_38, %c0_39] : memref<384x128xbf16, #tpu.memory_space<vmem>>, vector<384x128xbf16>
    %cst_40 = arith.constant dense<0.000000e+00> : vector<32x128xf32>
    %104 = tpu.matmul %102, %103, %cst_40 {dimension_numbers = #tpu.dot_dimension_numbers<[1], [0], [0], [1], [0, 0, 1, 1], [], []>} : vector<32x384xbf16>, vector<384x128xbf16>, vector<32x128xf32> -> vector<32x128xf32>
    %cst_41 = arith.constant 9.99999996E-13 : f32
    %105 = vector.broadcast %cst_41 : f32 to vector<32x128xf32>
    %106 = arith.maximumf %104, %105 : vector<32x128xf32>
    %107 = math.rsqrt %106 : vector<32x128xf32>
    %108 = arith.mulf %106, %107 : vector<32x128xf32>
    %109 = arith.mulf %94, %107 : vector<32x128xf32>
    %cst_42 = arith.constant -5.000000e-01 : f32
    %110 = vector.broadcast %cst_42 : f32 to vector<32x128xf32>
    %111 = arith.mulf %110, %109 : vector<32x128xf32>
    %112 = arith.mulf %111, %109 : vector<32x128xf32>
    %113 = math.exp %112 : vector<32x128xf32>
    %cst_43 = arith.constant 0.398942292 : f32
    %114 = vector.broadcast %cst_43 : f32 to vector<32x128xf32>
    %115 = arith.mulf %113, %114 : vector<32x128xf32>
    %cst_44 = arith.constant 0.707106769 : f32
    %116 = vector.broadcast %cst_44 : f32 to vector<32x128xf32>
    %117 = arith.mulf %109, %116 : vector<32x128xf32>
    %118 = math.erf %117 : vector<32x128xf32>
    %cst_45 = arith.constant 1.000000e+00 : f32
    %119 = vector.broadcast %cst_45 : f32 to vector<32x128xf32>
    %120 = arith.addf %119, %118 : vector<32x128xf32>
    %cst_46 = arith.constant 5.000000e-01 : f32
    %121 = vector.broadcast %cst_46 : f32 to vector<32x128xf32>
    %122 = arith.mulf %121, %120 : vector<32x128xf32>
    %cst_47 = arith.constant 1.000000e+00 : f32
    %123 = vector.broadcast %cst_47 : f32 to vector<32x128xf32>
    %124 = arith.subf %123, %122 : vector<32x128xf32>
    %125 = arith.mulf %94, %122 : vector<32x128xf32>
    %126 = arith.mulf %108, %115 : vector<32x128xf32>
    %127 = arith.mulf %94, %94 : vector<32x128xf32>
    %128 = arith.addf %127, %104 : vector<32x128xf32>
    %129 = arith.mulf %94, %126 : vector<32x128xf32>
    %130 = arith.addf %125, %126 : vector<32x128xf32>
    %131 = arith.mulf %128, %122 : vector<32x128xf32>
    %132 = arith.addf %131, %129 : vector<32x128xf32>
    %133 = arith.mulf %130, %130 : vector<32x128xf32>
    %134 = arith.subf %132, %133 : vector<32x128xf32>
    %cst_48 = arith.constant 0.000000e+00 : f32
    %135 = vector.broadcast %cst_48 : f32 to vector<32x128xf32>
    %136 = arith.subf %135, %94 : vector<32x128xf32>
    %137 = arith.mulf %136, %124 : vector<32x128xf32>
    %138 = arith.addf %137, %126 : vector<32x128xf32>
    %139 = arith.mulf %128, %124 : vector<32x128xf32>
    %140 = arith.subf %139, %129 : vector<32x128xf32>
    %141 = arith.mulf %138, %138 : vector<32x128xf32>
    %142 = arith.subf %140, %141 : vector<32x128xf32>
    %cst_49 = arith.constant 0.000000e+00 : f32
    %143 = vector.broadcast %cst_49 : f32 to vector<32x128xf32>
    %144 = arith.subf %143, %130 : vector<32x128xf32>
    %145 = arith.mulf %144, %138 : vector<32x128xf32>
    %cst_50 = arith.constant 0.00999999977 : f32
    %146 = vector.broadcast %cst_50 : f32 to vector<32x128xf32>
    %147 = arith.mulf %146, %138 : vector<32x128xf32>
    %148 = arith.subf %130, %147 : vector<32x128xf32>
    %cst_51 = arith.constant 9.99999974E-5 : f32
    %149 = vector.broadcast %cst_51 : f32 to vector<32x128xf32>
    %150 = arith.mulf %149, %142 : vector<32x128xf32>
    %151 = arith.addf %134, %150 : vector<32x128xf32>
    %cst_52 = arith.constant 2.000000e-02 : f32
    %152 = vector.broadcast %cst_52 : f32 to vector<32x128xf32>
    %153 = arith.mulf %152, %145 : vector<32x128xf32>
    %154 = arith.subf %151, %153 : vector<32x128xf32>
    %c0_53 = arith.constant 0 : index
    %c0_54 = arith.constant 0 : index
    %155 = vector.load %arg12[%c0_53, %c0_54] : memref<1x128xf32, #tpu.memory_space<vmem>>, vector<1x128xf32>
    %156 = vector.broadcast %155 : vector<1x128xf32> to vector<32x128xf32>
    %157 = arith.mulf %148, %156 : vector<32x128xf32>
    %c0_55 = arith.constant 0 : index
    %c0_56 = arith.constant 0 : index
    %158 = vector.load %arg13[%c0_55, %c0_56] : memref<1x128xf32, #tpu.memory_space<vmem>>, vector<1x128xf32>
    %159 = vector.broadcast %158 : vector<1x128xf32> to vector<32x128xf32>
    %160 = arith.addf %157, %159 : vector<32x128xf32>
    %c0_57 = arith.constant 0 : index
    %c0_58 = arith.constant 0 : index
    %161 = vector.load %arg14[%c0_57, %c0_58] : memref<1x128xf32, #tpu.memory_space<vmem>>, vector<1x128xf32>
    %162 = vector.broadcast %161 : vector<1x128xf32> to vector<32x128xf32>
    %163 = arith.mulf %154, %162 : vector<32x128xf32>
    %c1_i32_59 = arith.constant 1 : i32
    %164 = tpu.dynamic_rotate %160 by %c1_i32_59 dim 0 : vector<32x128xf32>, i32 -> vector<32x128xf32>
    %cst_60 = arith.constant 0.000000e+00 : f32
    %165 = vector.broadcast %cst_60 : f32 to vector<32x128xf32>
    %166 = arith.select %79, %164, %165 : vector<32x128xi1>, vector<32x128xf32>
    %c31_i32_61 = arith.constant 31 : i32
    %167 = tpu.dynamic_rotate %160 by %c31_i32_61 dim 0 : vector<32x128xf32>, i32 -> vector<32x128xf32>
    %cst_62 = arith.constant 0.000000e+00 : f32
    %168 = vector.broadcast %cst_62 : f32 to vector<32x128xf32>
    %169 = arith.select %81, %167, %168 : vector<32x128xi1>, vector<32x128xf32>
    %170 = tpu.concatenate %166, %160, %169 in 1 : vector<32x128xf32>, vector<32x128xf32>, vector<32x128xf32> -> vector<32x384xf32>
    %171 = arith.truncf %170 : vector<32x384xf32> to vector<32x384xbf16>
    %c0_63 = arith.constant 0 : index
    %c0_64 = arith.constant 0 : index
    %172 = vector.load %arg9[%c0_63, %c0_64] : memref<384x128xbf16, #tpu.memory_space<vmem>>, vector<384x128xbf16>
    %cst_65 = arith.constant dense<0.000000e+00> : vector<32x128xf32>
    %173 = tpu.matmul %171, %172, %cst_65 {dimension_numbers = #tpu.dot_dimension_numbers<[1], [0], [0], [1], [0, 0, 1, 1], [], []>} : vector<32x384xbf16>, vector<384x128xbf16>, vector<32x128xf32> -> vector<32x128xf32>
    %c0_66 = arith.constant 0 : index
    %c0_67 = arith.constant 0 : index
    %174 = vector.load %arg11[%c0_66, %c0_67] : memref<1x128xf32, #tpu.memory_space<vmem>>, vector<1x128xf32>
    %175 = vector.broadcast %174 : vector<1x128xf32> to vector<32x128xf32>
    %176 = arith.addf %173, %175 : vector<32x128xf32>
    %c1_i32_68 = arith.constant 1 : i32
    %177 = tpu.dynamic_rotate %163 by %c1_i32_68 dim 0 : vector<32x128xf32>, i32 -> vector<32x128xf32>
    %cst_69 = arith.constant 0.000000e+00 : f32
    %178 = vector.broadcast %cst_69 : f32 to vector<32x128xf32>
    %179 = arith.select %79, %177, %178 : vector<32x128xi1>, vector<32x128xf32>
    %c31_i32_70 = arith.constant 31 : i32
    %180 = tpu.dynamic_rotate %163 by %c31_i32_70 dim 0 : vector<32x128xf32>, i32 -> vector<32x128xf32>
    %cst_71 = arith.constant 0.000000e+00 : f32
    %181 = vector.broadcast %cst_71 : f32 to vector<32x128xf32>
    %182 = arith.select %81, %180, %181 : vector<32x128xi1>, vector<32x128xf32>
    %183 = tpu.concatenate %179, %163, %182 in 1 : vector<32x128xf32>, vector<32x128xf32>, vector<32x128xf32> -> vector<32x384xf32>
    %184 = arith.truncf %183 : vector<32x384xf32> to vector<32x384xbf16>
    %c0_72 = arith.constant 0 : index
    %c0_73 = arith.constant 0 : index
    %185 = vector.load %arg10[%c0_72, %c0_73] : memref<384x128xbf16, #tpu.memory_space<vmem>>, vector<384x128xbf16>
    %cst_74 = arith.constant dense<0.000000e+00> : vector<32x128xf32>
    %186 = tpu.matmul %184, %185, %cst_74 {dimension_numbers = #tpu.dot_dimension_numbers<[1], [0], [0], [1], [0, 0, 1, 1], [], []>} : vector<32x384xbf16>, vector<384x128xbf16>, vector<32x128xf32> -> vector<32x128xf32>
    %cst_75 = arith.constant 9.99999996E-13 : f32
    %187 = vector.broadcast %cst_75 : f32 to vector<32x128xf32>
    %188 = arith.maximumf %186, %187 : vector<32x128xf32>
    %189 = math.rsqrt %188 : vector<32x128xf32>
    %190 = arith.mulf %188, %189 : vector<32x128xf32>
    %191 = arith.mulf %176, %189 : vector<32x128xf32>
    %cst_76 = arith.constant -5.000000e-01 : f32
    %192 = vector.broadcast %cst_76 : f32 to vector<32x128xf32>
    %193 = arith.mulf %192, %191 : vector<32x128xf32>
    %194 = arith.mulf %193, %191 : vector<32x128xf32>
    %195 = math.exp %194 : vector<32x128xf32>
    %cst_77 = arith.constant 0.398942292 : f32
    %196 = vector.broadcast %cst_77 : f32 to vector<32x128xf32>
    %197 = arith.mulf %195, %196 : vector<32x128xf32>
    %cst_78 = arith.constant 0.707106769 : f32
    %198 = vector.broadcast %cst_78 : f32 to vector<32x128xf32>
    %199 = arith.mulf %191, %198 : vector<32x128xf32>
    %200 = math.erf %199 : vector<32x128xf32>
    %cst_79 = arith.constant 1.000000e+00 : f32
    %201 = vector.broadcast %cst_79 : f32 to vector<32x128xf32>
    %202 = arith.addf %201, %200 : vector<32x128xf32>
    %cst_80 = arith.constant 5.000000e-01 : f32
    %203 = vector.broadcast %cst_80 : f32 to vector<32x128xf32>
    %204 = arith.mulf %203, %202 : vector<32x128xf32>
    %cst_81 = arith.constant 1.000000e+00 : f32
    %205 = vector.broadcast %cst_81 : f32 to vector<32x128xf32>
    %206 = arith.subf %205, %204 : vector<32x128xf32>
    %207 = arith.mulf %176, %204 : vector<32x128xf32>
    %208 = arith.mulf %190, %197 : vector<32x128xf32>
    %209 = arith.mulf %176, %176 : vector<32x128xf32>
    %210 = arith.addf %209, %186 : vector<32x128xf32>
    %211 = arith.mulf %176, %208 : vector<32x128xf32>
    %212 = arith.addf %207, %208 : vector<32x128xf32>
    %213 = arith.mulf %210, %204 : vector<32x128xf32>
    %214 = arith.addf %213, %211 : vector<32x128xf32>
    %215 = arith.mulf %212, %212 : vector<32x128xf32>
    %216 = arith.subf %214, %215 : vector<32x128xf32>
    %cst_82 = arith.constant 0.000000e+00 : f32
    %217 = vector.broadcast %cst_82 : f32 to vector<32x128xf32>
    %218 = arith.subf %217, %176 : vector<32x128xf32>
    %219 = arith.mulf %218, %206 : vector<32x128xf32>
    %220 = arith.addf %219, %208 : vector<32x128xf32>
    %221 = arith.mulf %210, %206 : vector<32x128xf32>
    %222 = arith.subf %221, %211 : vector<32x128xf32>
    %223 = arith.mulf %220, %220 : vector<32x128xf32>
    %224 = arith.subf %222, %223 : vector<32x128xf32>
    %cst_83 = arith.constant 0.000000e+00 : f32
    %225 = vector.broadcast %cst_83 : f32 to vector<32x128xf32>
    %226 = arith.subf %225, %212 : vector<32x128xf32>
    %227 = arith.mulf %226, %220 : vector<32x128xf32>
    %cst_84 = arith.constant 0.00999999977 : f32
    %228 = vector.broadcast %cst_84 : f32 to vector<32x128xf32>
    %229 = arith.mulf %228, %220 : vector<32x128xf32>
    %230 = arith.subf %212, %229 : vector<32x128xf32>
    %cst_85 = arith.constant 9.99999974E-5 : f32
    %231 = vector.broadcast %cst_85 : f32 to vector<32x128xf32>
    %232 = arith.mulf %231, %224 : vector<32x128xf32>
    %233 = arith.addf %216, %232 : vector<32x128xf32>
    %cst_86 = arith.constant 2.000000e-02 : f32
    %234 = vector.broadcast %cst_86 : f32 to vector<32x128xf32>
    %235 = arith.mulf %234, %227 : vector<32x128xf32>
    %236 = arith.subf %233, %235 : vector<32x128xf32>
    %c0_87 = arith.constant 0 : index
    %c0_88 = arith.constant 0 : index
    %237 = vector.load %arg15[%c0_87, %c0_88] : memref<1x128xf32, #tpu.memory_space<vmem>>, vector<1x128xf32>
    %238 = vector.broadcast %237 : vector<1x128xf32> to vector<32x128xf32>
    %239 = arith.mulf %230, %238 : vector<32x128xf32>
    %c0_89 = arith.constant 0 : index
    %c0_90 = arith.constant 0 : index
    %240 = vector.load %arg16[%c0_89, %c0_90] : memref<1x128xf32, #tpu.memory_space<vmem>>, vector<1x128xf32>
    %241 = vector.broadcast %240 : vector<1x128xf32> to vector<32x128xf32>
    %242 = arith.addf %239, %241 : vector<32x128xf32>
    %c0_91 = arith.constant 0 : index
    %c0_92 = arith.constant 0 : index
    %243 = vector.load %arg17[%c0_91, %c0_92] : memref<1x128xf32, #tpu.memory_space<vmem>>, vector<1x128xf32>
    %244 = vector.broadcast %243 : vector<1x128xf32> to vector<32x128xf32>
    %245 = arith.mulf %236, %244 : vector<32x128xf32>
    %246 = arith.addf %54, %242 : vector<32x128xf32>
    %c0_93 = arith.constant 0 : index
    %c0_94 = arith.constant 0 : index
    %247 = vector.load %arg18[%c0_93, %c0_94] : memref<32x128xf32, #tpu.memory_space<vmem>>, vector<32x128xf32>
    tpu.vector_store %arg18[%c0_93, %c0_94], %246 {strides = array<i32>} : memref<32x128xf32, #tpu.memory_space<vmem>>, vector<32x128xf32>,
    %248 = arith.addf %60, %245 : vector<32x128xf32>
    %c0_95 = arith.constant 0 : index
    %c0_96 = arith.constant 0 : index
    %249 = vector.load %arg19[%c0_95, %c0_96] : memref<32x128xf32, #tpu.memory_space<vmem>>, vector<32x128xf32>
    tpu.vector_store %arg19[%c0_95, %c0_96], %248 {strides = array<i32>} : memref<32x128xf32, #tpu.memory_space<vmem>>, vector<32x128xf32>,
    return
  }
  func.func @transform_0(%arg0: i32) -> (i32, i32) {
    %c0_i32 = arith.constant 0 : i32
    %c0_i32_0 = arith.constant 0 : i32
    return %arg0, %c0_i32 : i32, i32
  }
  func.func @transform_1(%arg0: i32) -> (i32, i32) {
    %c0_i32 = arith.constant 0 : i32
    %c0_i32_0 = arith.constant 0 : i32
    return %arg0, %c0_i32 : i32, i32
  }
  func.func @transform_2(%arg0: i32) -> (i32, i32) {
    %c0_i32 = arith.constant 0 : i32
    %c0_i32_0 = arith.constant 0 : i32
    %c0_i32_1 = arith.constant 0 : i32
    return %c0_i32, %c0_i32_0 : i32, i32
  }
  func.func @transform_3(%arg0: i32) -> (i32, i32) {
    %c0_i32 = arith.constant 0 : i32
    %c0_i32_0 = arith.constant 0 : i32
    %c0_i32_1 = arith.constant 0 : i32
    return %c0_i32, %c0_i32_0 : i32, i32
  }
  func.func @transform_4(%arg0: i32) -> (i32, i32) {
    %c0_i32 = arith.constant 0 : i32
    %c0_i32_0 = arith.constant 0 : i32
    %c0_i32_1 = arith.constant 0 : i32
    return %c0_i32, %c0_i32_0 : i32, i32
  }
  func.func @transform_5(%arg0: i32) -> (i32, i32) {
    %c0_i32 = arith.constant 0 : i32
    %c0_i32_0 = arith.constant 0 : i32
    %c0_i32_1 = arith.constant 0 : i32
    return %c0_i32, %c0_i32_0 : i32, i32
  }
  func.func @transform_6(%arg0: i32) -> (i32, i32) {
    %c0_i32 = arith.constant 0 : i32
    %c0_i32_0 = arith.constant 0 : i32
    %c0_i32_1 = arith.constant 0 : i32
    return %c0_i32, %c0_i32_0 : i32, i32
  }
  func.func @transform_7(%arg0: i32) -> (i32, i32) {
    %c0_i32 = arith.constant 0 : i32
    %c0_i32_0 = arith.constant 0 : i32
    %c0_i32_1 = arith.constant 0 : i32
    return %c0_i32, %c0_i32_0 : i32, i32
  }
  func.func @transform_8(%arg0: i32) -> (i32, i32) {
    %c0_i32 = arith.constant 0 : i32
    %c0_i32_0 = arith.constant 0 : i32
    %c0_i32_1 = arith.constant 0 : i32
    return %c0_i32, %c0_i32_0 : i32, i32
  }
  func.func @transform_9(%arg0: i32) -> (i32, i32) {
    %c0_i32 = arith.constant 0 : i32
    %c0_i32_0 = arith.constant 0 : i32
    %c0_i32_1 = arith.constant 0 : i32
    return %c0_i32, %c0_i32_0 : i32, i32
  }
  func.func @transform_10(%arg0: i32) -> (i32, i32) {
    %c0_i32 = arith.constant 0 : i32
    %c0_i32_0 = arith.constant 0 : i32
    %c0_i32_1 = arith.constant 0 : i32
    return %c0_i32, %c0_i32_0 : i32, i32
  }
  func.func @transform_11(%arg0: i32) -> (i32, i32) {
    %c0_i32 = arith.constant 0 : i32
    %c0_i32_0 = arith.constant 0 : i32
    %c0_i32_1 = arith.constant 0 : i32
    return %c0_i32, %c0_i32_0 : i32, i32
  }
  func.func @transform_12(%arg0: i32) -> (i32, i32) {
    %c0_i32 = arith.constant 0 : i32
    %c0_i32_0 = arith.constant 0 : i32
    %c0_i32_1 = arith.constant 0 : i32
    return %c0_i32, %c0_i32_0 : i32, i32
  }
  func.func @transform_13(%arg0: i32) -> (i32, i32) {
    %c0_i32 = arith.constant 0 : i32
    %c0_i32_0 = arith.constant 0 : i32
    %c0_i32_1 = arith.constant 0 : i32
    return %c0_i32, %c0_i32_0 : i32, i32
  }
  func.func @transform_14(%arg0: i32) -> (i32, i32) {
    %c0_i32 = arith.constant 0 : i32
    %c0_i32_0 = arith.constant 0 : i32
    %c0_i32_1 = arith.constant 0 : i32
    return %c0_i32, %c0_i32_0 : i32, i32
  }
  func.func @transform_15(%arg0: i32) -> (i32, i32) {
    %c0_i32 = arith.constant 0 : i32
    %c0_i32_0 = arith.constant 0 : i32
    %c0_i32_1 = arith.constant 0 : i32
    return %c0_i32, %c0_i32_0 : i32, i32
  }
  func.func @transform_16(%arg0: i32) -> (i32, i32) {
    %c0_i32 = arith.constant 0 : i32
    %c0_i32_0 = arith.constant 0 : i32
    %c0_i32_1 = arith.constant 0 : i32
    return %c0_i32, %c0_i32_0 : i32, i32
  }
  func.func @transform_17(%arg0: i32) -> (i32, i32) {
    %c0_i32 = arith.constant 0 : i32
    %c0_i32_0 = arith.constant 0 : i32
    return %arg0, %c0_i32 : i32, i32
  }
  func.func @transform_18(%arg0: i32) -> (i32, i32) {
    %c0_i32 = arith.constant 0 : i32
    %c0_i32_0 = arith.constant 0 : i32
    return %arg0, %c0_i32 : i32, i32
  }
}

</mosaic_0001>

<bundles_post_ra>
// kernel: tpu_custom_call.1
= control target key start
LH: loop header
LB: loop body
LE: loop exit
PB: predicated region body
PF: predicated region fallthrough
CT: control target
= control target key end

     0   :  { %s5119_s0 = inlined_call_operand.hbm [shape: f32[32,128], index: 0, kind: input, shape index: {}]   ;;  %s5120_s1 = inlined_call_operand.hbm [shape: f32[32,128], index: 1, kind: input, shape index: {}]   ;;  %s5121_s2 = inlined_call_operand.hbm [shape: bf16[128,128], index: 2, kind: input, shape index: {}]   ;;  %s5122_s3 = inlined_call_operand.hbm [shape: bf16[128,128], index: 3, kind: input, shape index: {}]   ;;  %s5123_s4 = inlined_call_operand.vmem [shape: f32[1,128], index: 4, kind: input, shape index: {}]   ;;  %s5124_s5 = inlined_call_operand.hbm [shape: bf16[384,128], index: 5, kind: input, shape index: {}]   ;;  %s5125_s6 = inlined_call_operand.hbm [shape: bf16[384,128], index: 6, kind: input, shape index: {}]   ;;  %s5126_s7 = inlined_call_operand.vmem [shape: f32[1,128], index: 7, kind: input, shape index: {}]   ;;  %s5127_s8 = inlined_call_operand.hbm [shape: bf16[384,128], index: 8, kind: input, shape index: {}]   ;;  %s5128_s9 = inlined_call_operand.hbm [shape: bf16[384,128], index: 9, kind: input, shape index: {}]   ;;  %s5129_s10 = inlined_call_operand.vmem [shape: f32[1,128], index: 10, kind: input, shape index: {}]   ;;  %s5130_s11 = inlined_call_operand.vmem [shape: f32[1,128], index: 11, kind: input, shape index: {}]   ;;  %s5131_s12 = inlined_call_operand.vmem [shape: f32[1,128], index: 12, kind: input, shape index: {}]   ;;  %s5132_s13 = inlined_call_operand.vmem [shape: f32[1,128], index: 13, kind: input, shape index: {}]   ;;  %s5133_s14 = inlined_call_operand.vmem [shape: f32[1,128], index: 14, kind: input, shape index: {}]   ;;  %s5134_s15 = inlined_call_operand.vmem [shape: f32[1,128], index: 15, kind: input, shape index: {}]   ;;  %s5135_s16 = inlined_call_operand.vmem [shape: f32[1,128], index: 16, kind: input, shape index: {}]   ;;  %s5136_s17 = inlined_call_operand.hbm [shape: f32[32,128], index: 17, kind: output, shape index: {0}]   ;;  %s5137_s18 = inlined_call_operand.hbm [shape: f32[32,128], index: 18, kind: output, shape index: {1}]  }
   0x1   :  { %5142 = sst [smem:[#allocation26_spill]] %s5119_s0 }
   0x2   :  { %5143 = sst [smem:[#allocation27_spill]] %s5120_s1 }
   0x3   :  { %5144 = sst [smem:[#allocation28_spill]] %s5121_s2 }
   0x4   :  { %5145 = sst [smem:[#allocation29_spill]] %s5137_s18 }
   0x5   :  { %24 = vsyncpa [#allocation3], 0 }
   0x6   :  { %25 = vsyncpa [#allocation6], 0 }
   0x7   :  { %26 = vsyncpa [#allocation9], 0 }
   0x8   :  { %27 = vsyncpa [#allocation12], 0 }
   0x9   :  { %28 = vsyncpa [#allocation15], 0 }
   0xa   :  { %29 = vsyncpa [#allocation4], 0 }
   0xb   :  { %30 = vsyncpa [#allocation18], 0  ;;  %s5146_s29 = sld [smem:[#allocation27_spill]]  ;;  %s3689_s0 = smov [#allocation5]  }
   0xc   :  { %s50_s19 = sshll.u32 %s3689_s0, 4  ;;  %s5138_s1 = smov 128   ;;  %s51_s19 = int_to_ptr.vmem [resolvable:$true] %s50_s19 }
   0xd   :  { %s5140_s20 = smov 8   ;;  %s74_s2 = sshll.u32 %s5122_s3, 4  ;;  %s75_s2 = int_to_ptr.hbm [resolvable:$true] %s74_s2 }
   0xe   :  { %s3692_s23 = smov [#allocation8]   ;;  %s102_s27 = sshll.u32 %s5125_s6, 4  ;;  %s103_s27 = int_to_ptr.hbm [resolvable:$true] %s102_s27 }
   0xf   :  { %s76_s24 = sshll.u32 %s3692_s23, 4  ;;  %s3693_s28 = smov 64   ;;  %s77_s24 = int_to_ptr.vmem [resolvable:$true] %s76_s24 }
  0x10   :  { %s3695_s3 = smov [#allocation11]   ;;  %s3696_s6 = smov [#allocation2]  }
  0x11   :  { %s48_s30 = sshll.u32 %s5146_s29, 4  ;;  %s3694_s29 = smov 4   ;;  %s49_s30 = int_to_ptr.hbm [resolvable:$true] %s48_s30 }
  0x12   :  { %56 = dma.hbm_to_vmem [thread:$0]  %s49_s30, 512, %s51_s19, [#allocation6], %s5138_s1, %s5138_s1, %s5140_s20  }
  0x13   :  { %82 = dma.hbm_to_vmem [thread:$0]  %s75_s2, 1024, %s77_s24, [#allocation9], %s3693_s28, %s3693_s28, %s3694_s29  }
  0x14   :  { %s5147_s19 = sld [smem:[#allocation26_spill]]  ;;  %s104_s22 = sshll.u32 %s3695_s3, 4  ;;  %s105_s22 = int_to_ptr.vmem [resolvable:$true] %s104_s22 }
  0x15   :  { %110 = dma.hbm_to_vmem [thread:$0]  %s103_s27, 3072, %s105_s22, [#allocation12], %s3693_s28, %s3693_s28, %s3694_s29  }
  0x16   :  { %s37_s23 = sshll.u32 %s3696_s6, 4  ;;  %s5148_s1 = sld [smem:[#allocation28_spill]]  ;;  %s38_s23 = int_to_ptr.vmem [resolvable:$true] %s37_s23 }
  0x17   :  { %s5149_s2 = smov 8   ;;  %s5150_s24 = smov 128  }
  0x18   :  { %s3697_s3 = smov [#allocation7]   ;;  %s3698_s27 = smov [#allocation10]  }
  0x19   :  { %s63_s18 = sshll.u32 %s3697_s3, 4  ;;  %s117_s25 = sshll.u32 %s5127_s8, 4  ;;  %s64_s18 = int_to_ptr.vmem [resolvable:$true] %s63_s18  ;;  %s118_s25 = int_to_ptr.hbm [resolvable:$true] %s117_s25 }
  0x1a   :  { %s35_s21 = sshll.u32 %s5147_s19, 4  ;;  %s89_s19 = sshll.u32 %s5124_s5, 4  ;;  %s36_s21 = int_to_ptr.hbm [resolvable:$true] %s35_s21  ;;  %s90_s19 = int_to_ptr.hbm [resolvable:$true] %s89_s19 }
  0x1b   :  { %43 = dma.hbm_to_vmem [thread:$0]  %s36_s21, 512, %s38_s23, [#allocation3], %s5150_s24, %s5150_s24, %s5149_s2  }
  0x1c   :  { %s61_s20 = sshll.u32 %s5148_s1, 4  ;;  %s91_s1 = sshll.u32 %s3698_s27, 4  ;;  %s62_s20 = int_to_ptr.hbm [resolvable:$true] %s61_s20  ;;  %s92_s1 = int_to_ptr.vmem [resolvable:$true] %s91_s1 }
  0x1d   :  { %69 = dma.hbm_to_vmem [thread:$0]  %s62_s20, 1024, %s64_s18, [#allocation6], %s3693_s28, %s3693_s28, %s3694_s29  }
  0x1e   :  { %97 = dma.hbm_to_vmem [thread:$0]  %s90_s19, 3072, %s92_s1, [#allocation9], %s3693_s28, %s3693_s28, %s3694_s29  }
  0x1f   :  { %s130_s23 = sshll.u32 %s5128_s9, 4  ;;  %s3699_s26 = smov [#allocation13]   ;;  %s131_s23 = int_to_ptr.hbm [resolvable:$true] %s130_s23 }
  0x20   :  { %s119_s30 = sshll.u32 %s3699_s26, 4  ;;  %s3700_s18 = smov [#allocation14]   ;;  %s120_s30 = int_to_ptr.vmem [resolvable:$true] %s119_s30 }
  0x21   :  { %125 = dma.hbm_to_vmem [thread:$0]  %s118_s25, 3072, %s120_s30, [#allocation12], %s3693_s28, %s3693_s28, %s3694_s29  }
  0x22   :  { %s132_s8 = sshll.u32 %s3700_s18, 4  ;;  %s133_s8 = int_to_ptr.vmem [resolvable:$true] %s132_s8 }
  0x23   :  { %138 = dma.hbm_to_vmem [thread:$0]  %s131_s23, 3072, %s133_s8, [#allocation15], %s3693_s28, %s3693_s28, %s3694_s29  }
  0x24   :  { %3675 = dma.done.wait [#allocation3], 512  }
  0x25   :  { %3676 = vsyncadd [#allocation3], 4294966784 }
  0x26   :  { %3677 = dma.done.wait [#allocation6], 1536  }
  0x27   :  { %3678 = vsyncadd [#allocation6], 4294965760 }
  0x28   :  { %3679 = dma.done.wait [#allocation9], 4096  }
  0x29   :  { %3680 = vsyncadd [#allocation9], 4294963200 }
  0x2a   :  { %3681 = dma.done.wait [#allocation12], 6144  }
  0x2b   :  { %3682 = vsyncadd [#allocation12], 4294961152 }
  0x2c   :  { %3683 = dma.done.wait [#allocation15], 3072  }
  0x2d   :  { %3684 = vsyncadd [#allocation15], 4294964224  ;;  %v3218_v0 = vld [vmem:[#allocation7 + $0x38] sm:$0xff]  ;;  %v3217_v2 = vld [vmem:[#allocation7 + $0x30] sm:$0xff]  ;;  %s2668_s21 = sshll.u32 %s5136_s17, 4  ;;  %s3703_s23 = smov [#allocation17]   ;;  %s2669_s21 = int_to_ptr.hbm [resolvable:$true] %s2668_s21 }
  0x2e   :  { %v3226_v1 = vld [vmem:[#allocation8 + $0x38] sm:$0xff]  ;;  %263 = vmatpush.bf16.msra.mxu0 %v3218_v0  ;;  %v3225_v3 = vld [vmem:[#allocation8 + $0x30] sm:$0xff]  ;;  %v3216_v4 = vld [vmem:[#allocation7 + $0x28] sm:$0xff]  ;;  %s2679_s26 = sshll.u32 %s3703_s23, 4  ;;  %s5178_s8 = sld [smem:[#allocation29_spill]]  ;;  %s2680_s26 = int_to_ptr.vmem [resolvable:$true] %s2679_s26 }
  0x2f   :  { %348 = vmatpush.bf16.msra.mxu1 %v3226_v1  ;;  %v3224_v5 = vld [vmem:[#allocation8 + $0x28] sm:$0xff]  ;;  %v3215_v6 = vld [vmem:[#allocation7 + $0x20] sm:$0xff]  ;;  %v3214_v8 = vld [vmem:[#allocation7 + $0x18] sm:$0xff] }
  0x30   :  { %v3223_v7 = vld [vmem:[#allocation8 + $0x20] sm:$0xff]  ;;  %v3222_v9 = vld [vmem:[#allocation8 + $0x18] sm:$0xff]  ;;  %v3213_v10 = vld [vmem:[#allocation7 + $0x10] sm:$0xff] }
  0x31   :  { %v3221_v11 = vld [vmem:[#allocation8 + $0x10] sm:$0xff]  ;;  %v3212_v12 = vld [vmem:[#allocation7 + $0x8] sm:$0xff]  ;;  %v3211_v14 = vld [vmem:[#allocation7] sm:$0xff] }
  0x32   :  { %264 = vmatpush.bf16.msra.mxu0 %v3217_v2  ;;  %v3220_v13 = vld [vmem:[#allocation8 + $0x8] sm:$0xff]  ;;  %v3219_v15 = vld [vmem:[#allocation8] sm:$0xff]  ;;  %v187_v22 = vld [vmem:[#allocation2 + $0x10] sm:$0xff] }
  0x33   :  { %349 = vmatpush.bf16.msra.mxu1 %v3225_v3  ;;  %v185_v16 = vld [vmem:[#allocation2] sm:$0xff]  ;;  %v186_v17 = vld [vmem:[#allocation2 + $0x8] sm:$0xff]  ;;  %v188_v23 = vld [vmem:[#allocation2 + $0x18] sm:$0xff] }
  0x34   :  { %v189_v18 = vld [vmem:[#allocation5] sm:$0xff]  ;;  %v190_v19 = vld [vmem:[#allocation5 + $0x8] sm:$0xff]  ;;  %v193_v20 = vpack.c.bf16 %v186_v17, %v185_v16  ;;  %v191_v24 = vld [vmem:[#allocation5 + $0x10] sm:$0xff]  ;;  %v194_v26 = vpack.c.bf16 %v188_v23, %v187_v22  ;;  %s2681_s9 = sshll.u32 %s5178_s8, 4  ;;  %s2682_s9 = int_to_ptr.hbm [resolvable:$true] %s2681_s9 }
  0x35   :  { %v282_v21 = vpack.c.bf16 %v190_v19, %v189_v18  ;;  %v192_v25 = vld [vmem:[#allocation5 + $0x18] sm:$0xff]  ;;  %v3863_v37 = vld [vmem:[%s5123_s4] ss:$0 sm:$0xff] }
  0x36   :  { %265 = vmatpush.bf16.msra.mxu0 %v3216_v4  ;;  %v283_v27 = vpack.c.bf16 %v192_v25, %v191_v24 }
  0x37   :  { %350 = vmatpush.bf16.msra.mxu1 %v3224_v5 }
  0x3a   :  { %266 = vmatpush.bf16.msra.mxu0 %v3215_v6 }
  0x3b   :  { %351 = vmatpush.bf16.msra.mxu1 %v3223_v7 }
  0x3e   :  { %267 = vmatpush.bf16.msra.mxu0 %v3214_v8 }
  0x3f   :  { %352 = vmatpush.bf16.msra.mxu1 %v3222_v9 }
  0x42   :  { %268 = vmatpush.bf16.msra.mxu0 %v3213_v10 }
  0x43   :  { %353 = vmatpush.bf16.msra.mxu1 %v3221_v11 }
  0x46   :  { %269 = vmatpush.bf16.msra.mxu0 %v3212_v12 }
  0x47   :  { %354 = vmatpush.bf16.msra.mxu1 %v3220_v13 }
  0x4a   :  { %270 = vmatpush.bf16.msra.mxu0 %v3211_v14 }
  0x4b   :  { %355 = vmatpush.bf16.msra.mxu1 %v3219_v15 }
  0x4d   :  { %271 = vmatmul.bf16.vlgmr.msra.gmra.mxu0 %v193_v20 }
  0x4e   :  { %356 = vmatmul.bf16.vlgmr.msra.gmra.mxu1 %v282_v21 }
  0x5d   :  { %276 = vmatmul.bf16.gmra.mxu0 %v194_v26 }
  0x5e   :  { %361 = vmatmul.bf16.gmra.mxu1 %v283_v27 }
  0xca   :  { %v272_v34 = vpop.f32.mrf.mxu0 }
  0xcb   :  { %v3847_v28 = vpop.f32.mrf.mxu1  ;;  %v3873_v44 = vadd.f32 %v3863_v37, %v272_v34 }
  0xcc   :  { %v3850_v29 = vmax.f32 %v3847_v28, 1e-12 }
  0xce   :  { %3363 = vrsqrt.f32 %v3850_v29  ;;  %vm377_vm1 = vweird.f32 %v3850_v29 }
  0xd2   :  { %v274_v48 = vpop.f32.mrf.mxu0 }
  0xd3   :  { %v3853_v30 = vpop.f32.mrf.mxu1  ;;  %v3895_v59 = vadd.f32 %v3863_v37, %v274_v48 }
  0xd4   :  { %v3364_v31 = vpop.eup %3363  ;;  %v3856_v32 = vmax.f32 %v3853_v30, 1e-12 }
  0xd5   :  { %v372_v33 = vmul.f32 %v3364_v31, %v3850_v29  ;;  %vm378_vm0 = vweird.f32 %v3364_v31 }
  0xd6   :  { %3365 = vrsqrt.f32 %v3856_v32  ;;  %vm379_vm2 = vmor %vm377_vm1, %vm378_vm0  ;;  %vm387_vm4 = vweird.f32 %v3856_v32 }
  0xd7   :  { %v373_v35 = vmul.f32 %v3364_v31, %v372_v33 }
  0xd9   :  { %v374_v36 = vmul.f32 0.5, %v373_v35 }
  0xda   :  { %v277_v4 = vpop.f32.mrf.mxu0 }
  0xdb   :  { %v375_v38 = vsub.f32 1.5, %v374_v36  ;;  %v3865_v39 = vpop.f32.mrf.mxu1  ;;  %v3912_v11 = vadd.f32 %v3863_v37, %v277_v4 }
  0xdc   :  { %v3366_v40 = vpop.eup %3365  ;;  %v3868_v41 = vmax.f32 %v3865_v39, 1e-12 }
  0xdd   :  { %v376_v42 = vmul.f32 %v3364_v31, %v375_v38  ;;  %v382_v43 = vmul.f32 %v3366_v40, %v3856_v32  ;;  %vm388_vm3 = vweird.f32 %v3366_v40 }
  0xde   :  { %3367 = vrsqrt.f32 %v3868_v41  ;;  %vm389_vm5 = vmor %vm387_vm4, %vm388_vm3  ;;  %vm397_vm7 = vweird.f32 %v3868_v41 }
  0xdf   :  { %v3876_v45 = vsel %vm379_vm2, %v3364_v31, %v376_v42  ;;  %v383_v46 = vmul.f32 %v3366_v40, %v382_v43 }
  0xe0   :  { %v415_v47 = vmul.f32 %v3876_v45, %v3873_v44 }
  0xe1   :  { %v384_v49 = vmul.f32 0.5, %v383_v46 }
  0xe2   :  { %v3880_v50 = vmul.f32 0.70710677, %v415_v47  ;;  %v419_v13 = vmul.f32 -0.5, %v415_v47 }
  0xe3   :  { %v385_v51 = vsub.f32 1.5, %v384_v49  ;;  %v3882_v52 = vpop.f32.mrf.mxu1 }
  0xe4   :  { %v3368_v53 = vpop.eup %3367  ;;  %v443_v54 = vmul.f32 %v3880_v50, %v3880_v50  ;;  %v3887_v55 = vmax.f32 %v3882_v52, 1e-12  ;;  %v423_v24 = vmul.f32 %v419_v13, %v415_v47 }
  0xe5   :  { %v386_v56 = vmul.f32 %v3366_v40, %v385_v51  ;;  %v392_v57 = vmul.f32 %v3368_v53, %v3868_v41  ;;  %vm398_vm6 = vweird.f32 %v3368_v53 }
  0xe6   :  { %v3891_v58 = vmin.f32 %v443_v54, 16.0  ;;  %3369 = vrsqrt.f32 %v3887_v55  ;;  %vm399_vm8 = vmor %vm397_vm7, %vm398_vm6  ;;  %v427_v43 = vmul.f32 1.442695, %v423_v24  ;;  %vm407_vm10 = vweird.f32 %v3887_v55 }
  0xe7   :  { %v3897_v60 = vsel %vm389_vm5, %v3366_v40, %v386_v56  ;;  %v393_v61 = vmul.f32 %v3368_v53, %v392_v57 }
  0xe8   :  { %v445_v62 = vmul.f32 2.1237322e-06, %v3891_v58  ;;  %v456_v63 = vmul.f32 3.8918573e-05, %v3891_v58  ;;  %v416_v0 = vmul.f32 %v3897_v60, %v3895_v59  ;;  %3371 = vpow2.f32 %v427_v43 }
  0xe9   :  { %v394_v1 = vmul.f32 0.5, %v393_v61 }
  0xea   :  { %v446_v2 = vadd.f32 0.00028619796, %v445_v62  ;;  %v457_v3 = vadd.f32 0.001143296, %v456_v63  ;;  %v3903_v5 = vmul.f32 0.70710677, %v416_v0 }
  0xeb   :  { %v395_v6 = vsub.f32 1.5, %v394_v1  ;;  %v420_v47 = vmul.f32 -0.5, %v416_v0 }
  0xec   :  { %v3905_v7 = vpop.eup %3369  ;;  %v447_v8 = vmul.f32 %v446_v2, %v3891_v58  ;;  %v458_v9 = vmul.f32 %v457_v3, %v3891_v58  ;;  %v483_v10 = vmul.f32 %v3903_v5, %v3903_v5  ;;  %v3242_v2 = vld [vmem:[#allocation10 + $0x78] sm:$0xff] }
  0xed   :  { %v396_v12 = vmul.f32 %v3368_v53, %v395_v6  ;;  %v402_v16 = vmul.f32 %v3905_v7, %v3887_v55  ;;  %v424_v3 = vmul.f32 %v420_v47, %v416_v0  ;;  %vm408_vm9 = vweird.f32 %v3905_v7  ;;  %1023 = vmatpush.bf16.msra.mxu3 %v3242_v2  ;;  %v279_v0 = vpop.f32.mrf.mxu0 }
  0xee   :  { %v448_v14 = vadd.f32 0.0036580483, %v447_v8  ;;  %v459_v15 = vadd.f32 0.014752088, %v458_v9  ;;  %v3917_v17 = vmin.f32 %v483_v10, 16.0  ;;  %vm409_vm11 = vmor %vm407_vm10, %vm408_vm9 }
  0xef   :  { %v3919_v18 = vsel %vm399_vm8, %v3368_v53, %v396_v12  ;;  %v403_v26 = vmul.f32 %v3905_v7, %v402_v16  ;;  %v623_v12 = vmul.f32 %v3873_v44, %v3873_v44  ;;  %v3241_v16 = vld [vmem:[#allocation10 + $0x70] sm:$0xff] }
  0xf0   :  { %v460_v19 = vmul.f32 %v459_v15, %v3891_v58  ;;  %v3924_v20 = vmul.f32 %v3919_v18, %v3912_v11  ;;  %v449_v21 = vmul.f32 %v448_v14, %v3891_v58  ;;  %v485_v22 = vmul.f32 2.1237322e-06, %v3917_v17 }
  0xf1   :  { %v496_v23 = vmul.f32 3.8918573e-05, %v3917_v17  ;;  %v404_v35 = vmul.f32 0.5, %v403_v26  ;;  %1024 = vmatpush.bf16.msra.mxu3 %v3241_v16 }
  0xf2   :  { %v461_v25 = vadd.f32 0.112945676, %v460_v19  ;;  %v486_v27 = vadd.f32 0.00028619796, %v485_v22  ;;  %v3931_v33 = vmul.f32 0.70710677, %v3924_v20 }
  0xf3   :  { %v497_v31 = vadd.f32 0.001143296, %v496_v23  ;;  %v450_v36 = vadd.f32 0.05243302, %v449_v21  ;;  %v405_v54 = vsub.f32 1.5, %v404_v35  ;;  %v655_v19 = vsub.f32 0.0, %v3873_v44 }
  0xf4   :  { %v462_v34 = vmul.f32 %v461_v25, %v3891_v58  ;;  %v487_v38 = vmul.f32 %v486_v27, %v3917_v17  ;;  %v523_v42 = vmul.f32 %v3931_v33, %v3931_v33  ;;  %v429_v21 = vmul.f32 1.442695, %v424_v3  ;;  %v3372_v27 = vpop.eup %3371 }
  0xf5   :  { %v498_v40 = vmul.f32 %v497_v31, %v3917_v17  ;;  %v451_v56 = vmul.f32 %v450_v36, %v3891_v58  ;;  %v406_v9 = vmul.f32 %v3905_v7, %v405_v54  ;;  %v3968_v36 = vadd.f32 %v3863_v37, %v279_v0 }
  0xf6   :  { %v463_v46 = vadd.f32 0.4994258, %v462_v34  ;;  %v488_v48 = vadd.f32 0.0036580483, %v487_v38  ;;  %v3938_v51 = vmin.f32 %v523_v42, 16.0  ;;  %v3964_v34 = vadd.f32 %v623_v12, %v3847_v28 }
  0xf7   :  { %v499_v49 = vadd.f32 0.014752088, %v498_v40  ;;  %v452_v10 = vadd.f32 0.18741608, %v451_v56  ;;  %v3960_v26 = vsel %vm409_vm11, %v3905_v7, %v406_v9  ;;  %v624_v40 = vmul.f32 %v3895_v59, %v3895_v59 }
  0xf8   :  { %v464_v53 = vmul.f32 %v463_v46, %v3891_v58  ;;  %v489_v57 = vmul.f32 %v488_v48, %v3917_v17  ;;  %v525_v62 = vmul.f32 2.1237322e-06, %v3938_v51  ;;  %v536_v1 = vmul.f32 3.8918573e-05, %v3938_v51  ;;  %v3240_v46 = vld [vmem:[#allocation10 + $0x68] sm:$0xff] }
  0xf9   :  { %v500_v61 = vmul.f32 %v499_v49, %v3917_v17  ;;  %v453_v31 = vmul.f32 %v452_v10, %v3891_v58  ;;  %v421_v42 = vmul.f32 -0.5, %v3924_v20  ;;  %v3979_v47 = vmul.f32 %v3960_v26, %v3968_v36  ;;  %1025 = vmatpush.bf16.msra.mxu3 %v3240_v46 }
  0xfa   :  { %v3945_v63 = vadd.f32 1.0, %v464_v53  ;;  %v526_v6 = vadd.f32 0.00028619796, %v525_v62  ;;  %v490_v8 = vadd.f32 0.05243302, %v489_v57  ;;  %v411_v37 = vmul.f32 %v3876_v45, %v3850_v29 }
  0xfb   :  { %v501_v4 = vadd.f32 0.112945676, %v500_v61  ;;  %v537_v15 = vadd.f32 0.001143296, %v536_v1  ;;  %v656_v49 = vsub.f32 0.0, %v3895_v59  ;;  %v3250_v61 = vld [vmem:[#allocation10 + $0xb8] sm:$0xff]  ;;  %v425_v1 = vmul.f32 %v421_v42, %v3924_v20 }
  0xfc   :  { %3373 = vrcp.f32 %v3945_v63  ;;  %v527_v14 = vmul.f32 %v526_v6, %v3938_v51  ;;  %v491_v23 = vmul.f32 %v490_v8, %v3917_v17  ;;  %v435_v54 = vmul.f32 0.3989423, %v3372_v27  ;;  %1042 = vmatpush.bf16.msrb.mxu0 %v3250_v61 }
  0xfd   :  { %v502_v13 = vmul.f32 %v501_v4, %v3917_v17  ;;  %v538_v25 = vmul.f32 %v537_v15, %v3938_v51  ;;  %3375 = vpow2.f32 %v429_v21  ;;  %v454_v56 = vadd.f32 1.1283791, %v453_v31  ;;  %v3239_v4 = vld [vmem:[#allocation10 + $0x60] sm:$0xff] }
  0xfe   :  { %v528_v24 = vadd.f32 0.0036580483, %v527_v14  ;;  %v492_v48 = vadd.f32 0.18741608, %v491_v23  ;;  %v477_v62 = vand.u32 2147483648, %v3945_v63  ;;  %v3994_v9 = vadd.f32 %v624_v40, %v3853_v30  ;;  %1026 = vmatpush.bf16.msra.mxu3 %v3239_v4  ;;  %v3247_v4 = vld [vmem:[#allocation10 + $0xa0] sm:$0xff] }
  0xff   :  { %v503_v22 = vadd.f32 0.4994258, %v502_v13  ;;  %v539_v43 = vadd.f32 0.014752088, %v538_v25  ;;  %v475_v45 = vand.u32 2147483647, %v3945_v63  ;;  %v3999_v20 = vmul.f32 %v3912_v11, %v3912_v11 }
 0x100   :  { %v529_v7 = vmul.f32 %v528_v24, %v3938_v51  ;;  %v3990_v6 = vmul.f32 0.70710677, %v3979_v47  ;;  %v493_v8 = vmul.f32 %v492_v48, %v3917_v17  ;;  %vm471_vm13 = vweird.f32 %v3945_v63 }
 0x101   :  { %v504_v35 = vmul.f32 %v503_v22, %v3917_v17  ;;  %v540_v53 = vmul.f32 %v539_v43, %v3938_v51  ;;  %v4002_v14 = vmul.f32 %v435_v54, %v411_v37  ;;  %v3249_v17 = vld [vmem:[#allocation10 + $0xb0] sm:$0xff]  ;;  %v478_v30 = vor.u32 1.1754944e-38, %v477_v62  ;;  %v3238_v22 = vld [vmem:[#allocation10 + $0x58] sm:$0xff] }
 0x102   :  { %v3374_v38 = vpop.eup %3373  ;;  %v530_v2 = vadd.f32 0.05243302, %v529_v7  ;;  %v563_v15 = vmul.f32 %v3990_v6, %v3990_v6  ;;  %v431_v0 = vmul.f32 1.442695, %v425_v1  ;;  %v455_v24 = vmul.f32 %v454_v56, %v3880_v50  ;;  %1043 = vmatpush.bf16.msrb.mxu0 %v3249_v17  ;;  %1027 = vmatpush.bf16.msra.mxu3 %v3238_v22  ;;  %v3248_v50 = vld [vmem:[#allocation10 + $0xa8] sm:$0xff]  ;;  %v3237_v54 = vld [vmem:[#allocation10 + $0x50] sm:$0xff] }
 0x103   :  { %v467_v58 = vmul.f32 %v3374_v38, %v3945_v63  ;;  %v3975_v28 = vadd.f32 1.0, %v504_v35  ;;  %v541_v3 = vadd.f32 0.112945676, %v540_v53  ;;  %vm472_vm12 = vweird.f32 %v3374_v38  ;;  %v3376_v12 = vpop.eup %3375 }
 0x104   :  { %vm473_vm14 = vmor %vm471_vm13, %vm472_vm12  ;;  %v531_v16 = vmul.f32 %v530_v2, %v3938_v51  ;;  %vm476_vm15 = vcmp.eq.f32.partialorder %v475_v45, 8.507059e+37  ;;  %v4009_v63 = vmin.f32 %v563_v15, 16.0  ;;  %v436_v31 = vmul.f32 0.3989423, %v3376_v12  ;;  %v3236_v12 = vld [vmem:[#allocation10 + $0x48] sm:$0xff] }
 0x105   :  { %v468_v57 = vsub.f32 1.0, %v467_v58  ;;  %3377 = vrcp.f32 %v3975_v28  ;;  %v542_v10 = vmul.f32 %v541_v3, %v3938_v51  ;;  %v494_v35 = vadd.f32 1.1283791, %v493_v8  ;;  %v3234_v58 = vld [vmem:[#allocation10 + $0x38] sm:$0xff] }
 0x106   :  { %v565_v43 = vmul.f32 2.1237322e-06, %v4009_v63  ;;  %v576_v46 = vmul.f32 3.8918573e-05, %v4009_v63  ;;  %v517_v48 = vand.u32 2147483648, %v3975_v28  ;;  %1004 = vmatpush.bf16.msra.mxu2 %v3234_v58  ;;  %1044 = vmatpush.bf16.msrb.mxu0 %v3248_v50  ;;  %3379 = vpow2.f32 %v431_v0 }
 0x107   :  { %v469_v29 = vmul.f32 %v3374_v38, %v468_v57  ;;  %v543_v21 = vadd.f32 0.4994258, %v542_v10  ;;  %v532_v53 = vadd.f32 0.18741608, %v531_v16  ;;  %v515_v2 = vand.u32 2147483647, %v3975_v28  ;;  %1028 = vmatpush.bf16.msra.mxu3 %v3237_v54 }
 0x108   :  { %v566_v61 = vadd.f32 0.00028619796, %v565_v43  ;;  %v577_v62 = vadd.f32 0.001143296, %v576_v46  ;;  %vm511_vm1 = vweird.f32 %v3975_v28  ;;  %v495_v15 = vmul.f32 %v494_v35, %v3903_v5  ;;  %v3232_v5 = vld [vmem:[#allocation10 + $0x28] sm:$0xff] }
 0x109   :  { %v470_v13 = vadd.f32 %v3374_v38, %v469_v29  ;;  %v544_v7 = vmul.f32 %v543_v21, %v3938_v51  ;;  %v533_v45 = vmul.f32 %v532_v53, %v3938_v51  ;;  %v518_v17 = vor.u32 1.1754944e-38, %v517_v48 }
 0x10a   :  { %v567_v8 = vmul.f32 %v566_v61, %v4009_v63  ;;  %v578_v10 = vmul.f32 %v577_v62, %v4009_v63  ;;  %1045 = vmatpush.bf16.msrb.mxu0 %v3247_v4  ;;  %vm516_vm3 = vcmp.eq.f32.partialorder %v515_v2, 8.507059e+37  ;;  %v3231_v62 = vld [vmem:[#allocation10 + $0x20] sm:$0xff] }
 0x10b   :  { %v3378_v23 = vpop.eup %3377  ;;  %v474_v25 = vsel %vm473_vm14, %v3374_v38, %v470_v13  ;;  %v412_v38 = vmul.f32 %v3897_v60, %v3856_v32  ;;  %v4018_v57 = vadd.f32 1.0, %v544_v7  ;;  %v4023_v32 = vmul.f32 %v4002_v14, %v3873_v44  ;;  %v3233_v60 = vld [vmem:[#allocation10 + $0x30] sm:$0xff]  ;;  %1029 = vmatpush.bf16.msra.mxu3 %v3236_v12  ;;  %v3235_v7 = vld [vmem:[#allocation10 + $0x40] sm:$0xff] }
 0x10c   :  { %v479_v27 = vsel %vm476_vm15, %v478_v30, %v474_v25  ;;  %v507_v40 = vmul.f32 %v3378_v23, %v3975_v28  ;;  %vm512_vm0 = vweird.f32 %v3378_v23  ;;  %1005 = vmatpush.bf16.msra.mxu2 %v3233_v60  ;;  %v3258_v28 = vld [vmem:[#allocation11 + $0x38] sm:$0xff]  ;;  %v568_v16 = vadd.f32 0.0036580483, %v567_v8  ;;  %v4036_v35 = vpop.eup %3379 }
 0x10d   :  { %v480_v42 = vmul.f32 %v479_v27, %v455_v24  ;;  %3381 = vrcp.f32 %v4018_v57  ;;  %vm513_vm2 = vmor %vm511_vm1, %vm512_vm0  ;;  %v4032_v30 = vmul.f32 %v436_v31, %v412_v38  ;;  %v579_v51 = vadd.f32 0.014752088, %v578_v10  ;;  %1283 = vmatpush.bf16.msrb.mxu1 %v3258_v28  ;;  %v3246_v27 = vld [vmem:[#allocation10 + $0x98] sm:$0xff] }
 0x10e   :  { %v508_v37 = vsub.f32 1.0, %v507_v40  ;;  %v534_v40 = vadd.f32 1.1283791, %v533_v45  ;;  %1046 = vmatpush.bf16.msrb.mxu0 %v3246_v27  ;;  %vm551_vm4 = vweird.f32 %v4018_v57  ;;  %vm3701_vm14 = vmmov 1  }
 0x10f   :  { %v2767_v56 = vclamps-f32 %v480_v42, 1.0  ;;  %v569_v42 = vmul.f32 %v568_v16, %v4009_v63  ;;  %v4051_v53 = vmul.f32 %v4032_v30, %v3895_v59  ;;  %1030 = vmatpush.bf16.msra.mxu3 %v3235_v7  ;;  %v3244_v16 = vld [vmem:[#allocation10 + $0x88] sm:$0xff] }
 0x110   :  { %v509_v1 = vmul.f32 %v3378_v23, %v508_v37  ;;  %1006 = vmatpush.bf16.msra.mxu2 %v3232_v5  ;;  %v3257_v37 = vld [vmem:[#allocation11 + $0x30] sm:$0xff] }
 0x111   :  { %v603_v3 = vadd.f32 1.0, %v2767_v56  ;;  %v555_v56 = vand.u32 2147483647, %v4018_v57  ;;  %1284 = vmatpush.bf16.msrb.mxu1 %v3257_v37  ;;  %v570_v10 = vadd.f32 0.05243302, %v569_v42  ;;  %v3255_v42 = vld [vmem:[#allocation11 + $0x20] sm:$0xff] }
 0x112   :  { %v510_v29 = vadd.f32 %v3378_v23, %v509_v1  ;;  %v3245_v1 = vld [vmem:[#allocation10 + $0x90] sm:$0xff] }
 0x113   :  { %v607_v13 = vmul.f32 0.5, %v603_v3  ;;  %v4040_v43 = vpop.eup %3381  ;;  %v535_v3 = vmul.f32 %v534_v40, %v3931_v33  ;;  %1047 = vmatpush.bf16.msrb.mxu0 %v3245_v1  ;;  %vm4072_vm6 = vcmp.eq.f32.partialorder %v555_v56, 8.507059e+37  ;;  %v437_v1 = vmul.f32 0.3989423, %v4036_v35  ;;  %v3228_v35 = vld [vmem:[#allocation10 + $0x8] sm:$0xff] }
 0x114   :  { %v514_v0 = vsel %vm513_vm2, %v3378_v23, %v510_v29  ;;  %v580_v23 = vmul.f32 %v579_v51, %v4009_v63  ;;  %v547_v54 = vmul.f32 %v4040_v43, %v4018_v57  ;;  %v3274_v29 = vld [vmem:[#allocation11 + $0xb8] sm:$0xff]  ;;  %1007 = vmatpush.bf16.msra.mxu2 %v3231_v62  ;;  %vm552_vm5 = vweird.f32 %v4040_v43 }
 0x115   :  { %v611_v21 = vsub.f32 1.0, %v607_v13  ;;  %v615_v22 = vmul.f32 %v607_v13, %v3873_v44  ;;  %v639_v24 = vmul.f32 %v3964_v34, %v607_v13  ;;  %v519_v25 = vsel %vm516_vm3, %v518_v17, %v514_v0  ;;  %1321 = vmatpush.bf16.msrb.mxu3 %v3274_v29  ;;  %v3230_v0 = vld [vmem:[#allocation10 + $0x18] sm:$0xff]  ;;  %vm4089_vm7 = vmor %vm551_vm4, %vm552_vm5 }
 0x116   :  { %v520_v31 = vmul.f32 %v519_v25, %v495_v15  ;;  %v548_v60 = vsub.f32 1.0, %v547_v54  ;;  %v581_v4 = vadd.f32 0.112945676, %v580_v23  ;;  %v3273_v25 = vld [vmem:[#allocation11 + $0xb0] sm:$0xff] }
 0x117   :  { %v4043_v46 = vadd.f32 %v4002_v14, %v615_v22  ;;  %v643_v58 = vadd.f32 %v639_v24, %v4023_v32  ;;  %v659_v50 = vmul.f32 %v655_v19, %v611_v21  ;;  %v667_v38 = vmul.f32 %v3964_v34, %v611_v21  ;;  %1048 = vmatpush.bf16.msrb.mxu0 %v3244_v16 }
 0x118   :  { %v2768_v48 = vclamps-f32 %v520_v31, 1.0  ;;  %v549_v13 = vmul.f32 %v4040_v43, %v548_v60  ;;  %v582_v15 = vmul.f32 %v581_v4, %v4009_v63  ;;  %v571_v31 = vmul.f32 %v570_v10, %v4009_v63  ;;  %1008 = vmatpush.bf16.msra.mxu2 %v3230_v0  ;;  %v3254_v60 = vld [vmem:[#allocation11 + $0x18] sm:$0xff] }
 0x119   :  { %v647_v44 = vmul.f32 %v4043_v46, %v4043_v46  ;;  %v4059_v19 = vadd.f32 %v659_v50, %v4002_v14  ;;  %v671_v34 = vsub.f32 %v667_v38, %v4023_v32  ;;  %v683_v61 = vsub.f32 0.0, %v4043_v46  ;;  %v3256_v32 = vld [vmem:[#allocation11 + $0x28] sm:$0xff]  ;;  %1322 = vmatpush.bf16.msrb.mxu3 %v3273_v25 }
 0x11a   :  { %v604_v2 = vadd.f32 1.0, %v2768_v48  ;;  %v557_v14 = vand.u32 2147483648, %v4018_v57  ;;  %1285 = vmatpush.bf16.msrb.mxu1 %v3256_v32  ;;  %v550_v24 = vadd.f32 %v4040_v43, %v549_v13  ;;  %v583_v40 = vadd.f32 0.4994258, %v582_v15  ;;  %v3271_v15 = vld [vmem:[#allocation11 + $0xa0] sm:$0xff] }
 0x11b   :  { %v651_v45 = vsub.f32 %v643_v58, %v647_v44  ;;  %v675_v8 = vmul.f32 %v4059_v19, %v4059_v19  ;;  %v687_v17 = vmul.f32 %v683_v61, %v4059_v19  ;;  %v3272_v61 = vld [vmem:[#allocation11 + $0xa8] sm:$0xff]  ;;  %v629_v0 = vadd.f32 %v3999_v20, %v3865_v39 }
 0x11c   :  { %v608_v12 = vmul.f32 0.5, %v604_v2  ;;  %v558_v27 = vor.u32 1.1754944e-38, %v557_v14  ;;  %v554_v54 = vsel %vm4089_vm7, %v4040_v43, %v550_v24  ;;  %v572_v14 = vadd.f32 0.18741608, %v571_v31 }
 0x11d   :  { %v679_v33 = vsub.f32 %v671_v34, %v675_v8  ;;  %v707_v48 = vmul.f32 0.02, %v687_v17  ;;  %v422_v8 = vmul.f32 -0.5, %v3979_v47  ;;  %1323 = vmatpush.bf16.msrb.mxu3 %v3272_v61  ;;  %v657_v39 = vsub.f32 0.0, %v3912_v11 }
 0x11e   :  { %v612_v51 = vsub.f32 1.0, %v608_v12  ;;  %v616_v21 = vmul.f32 %v608_v12, %v3895_v59  ;;  %v640_v22 = vmul.f32 %v3994_v9, %v608_v12  ;;  %v584_v59 = vmul.f32 %v583_v40, %v4009_v63  ;;  %1286 = vmatpush.bf16.msrb.mxu1 %v3255_v42 }
 0x11f   :  { %v699_v5 = vmul.f32 0.0001, %v679_v33  ;;  %v559_v43 = vsel %vm4072_vm6, %v558_v27, %v554_v54  ;;  %v715_v33 = vlaneseq  ;;  %v426_v16 = vmul.f32 %v422_v8, %v3979_v47  ;;  %v3252_v47 = vld [vmem:[#allocation11 + $0x8] sm:$0xff] }
 0x120   :  { %v636_v23 = vadd.f32 %v4032_v30, %v616_v21  ;;  %v644_v7 = vadd.f32 %v640_v22, %v4051_v53  ;;  %v660_v58 = vmul.f32 %v656_v49, %v612_v51  ;;  %v668_v50 = vmul.f32 %v3994_v9, %v612_v51  ;;  %v3229_v49 = vld [vmem:[#allocation10 + $0x10] sm:$0xff]  ;;  %v3243_v9 = vld [vmem:[#allocation10 + $0x80] sm:$0xff] }
 0x121   :  { %v703_v37 = vadd.f32 %v699_v5, %v651_v45  ;;  %v4104_v2 = vadd.f32 1.0, %v584_v59  ;;  %1009 = vmatpush.bf16.msra.mxu2 %v3229_v49  ;;  %v560_v45 = vmul.f32 %v559_v43, %v535_v3  ;;  %1049 = vmatpush.bf16.msrb.mxu0 %v3243_v9  ;;  %v573_v51 = vmul.f32 %v572_v14, %v4009_v63  ;;  %v3227_v21 = vld [vmem:[#allocation10] sm:$0xff]  ;;  %v3269_v9 = vld [vmem:[#allocation11 + $0x90] sm:$0xff]  ;;  %v3268_v14 = vld [vmem:[#allocation11 + $0x88] sm:$0xff] }
 0x122   :  { %v648_v56 = vmul.f32 %v636_v23, %v636_v23  ;;  %v664_v57 = vadd.f32 %v660_v58, %v4032_v30  ;;  %v672_v44 = vsub.f32 %v668_v50, %v4051_v53  ;;  %v684_v34 = vsub.f32 0.0, %v636_v23  ;;  %1287 = vmatpush.bf16.msrb.mxu1 %v3254_v60  ;;  %1324 = vmatpush.bf16.msrb.mxu3 %v3271_v15 }
 0x123   :  { %v4099_v62 = vsub.f32 %v703_v37, %v707_v48  ;;  %v691_v30 = vmul.f32 0.01, %v4059_v19  ;;  %v413_v53 = vmul.f32 %v3919_v18, %v3868_v41  ;;  %3383 = vrcp.f32 %v4104_v2  ;;  %v3253_v19 = vld [vmem:[#allocation11 + $0x10] sm:$0xff]  ;;  %v3266_v37 = vld [vmem:[#allocation11 + $0x78] sm:$0xff] }
 0x124   :  { %v652_v4 = vsub.f32 %v644_v7, %v648_v56  ;;  %v676_v29 = vmul.f32 %v664_v57, %v664_v57  ;;  %v688_v32 = vmul.f32 %v684_v34, %v664_v57  ;;  %v2769_v12 = vclamps-f32 %v560_v45, 1.0  ;;  %v3251_v56 = vld [vmem:[#allocation11] sm:$0xff]  ;;  %v3265_v34 = vld [vmem:[#allocation11 + $0x70] sm:$0xff] }
 0x125   :  { %v692_v13 = vmul.f32 0.01, %v664_v57  ;;  %v621_v3 = vmul.f32 %v437_v1, %v413_v53  ;;  %1010 = vmatpush.bf16.msra.mxu2 %v3228_v35  ;;  %v4112_v41 = vsub.f32 %v4043_v46, %v691_v30  ;;  %v3270_v46 = vld [vmem:[#allocation11 + $0x98] sm:$0xff]  ;;  %v4126_v20 = vshrl.u32 %v715_v33, 7 }
 0x126   :  { %v680_v10 = vsub.f32 %v672_v44, %v676_v29  ;;  %v605_v28 = vadd.f32 1.0, %v2769_v12  ;;  %1288 = vmatpush.bf16.msrb.mxu1 %v3253_v19  ;;  %v708_v24 = vmul.f32 0.02, %v688_v32  ;;  %v433_v7 = vmul.f32 1.442695, %v426_v16  ;;  %1325 = vmatpush.bf16.msrb.mxu3 %v3270_v46 }
 0x127   :  { %v4114_v18 = vsub.f32 %v636_v23, %v692_v13  ;;  %v633_v31 = vmul.f32 %v621_v3, %v3912_v11  ;;  %v574_v58 = vadd.f32 1.1283791, %v573_v51  ;;  %v717_v38 = vadd.s32 8, %v4126_v20 }
 0x128   :  { %v700_v17 = vmul.f32 0.0001, %v680_v10  ;;  %v609_v25 = vmul.f32 0.5, %v605_v28  ;;  %v597_v44 = vand.u32 2147483648, %v4104_v2  ;;  %3385 = vpow2.f32 %v433_v7 }
 0x129   :  { %v803_v5 = vpack.c.bf16 %v4114_v18, %v4112_v41  ;;  %v4122_v27 = vpop.eup %3383  ;;  %1011 = vmatpush.bf16.msra.mxu2 %v3227_v21  ;;  %v731_v29 = vand.u32 15, %v717_v38  ;;  %v575_v8 = vmul.f32 %v574_v58, %v3990_v6  ;;  %vm591_vm9 = vweird.f32 %v4104_v2  ;;  %v3263_v21 = vld [vmem:[#allocation11 + $0x60] sm:$0xff] }
 0x12a   :  { %v704_v22 = vadd.f32 %v700_v17, %v652_v4  ;;  %v613_v40 = vsub.f32 1.0, %v609_v25  ;;  %v617_v42 = vmul.f32 %v609_v25, %v3912_v11  ;;  %v641_v23 = vmul.f32 %v629_v0, %v609_v25  ;;  %1289 = vmatpush.bf16.msrb.mxu1 %v3252_v47  ;;  %1326 = vmatpush.bf16.msrb.mxu3 %v3269_v9 }
 0x12b   :  { %1031 = vmatmul.bf16.vlgmr.msra.gmra.mxu3 %v803_v5  ;;  %v587_v50 = vmul.f32 %v4122_v27, %v4104_v2  ;;  %v595_v11 = vand.u32 2147483647, %v4104_v2  ;;  %vm592_vm8 = vweird.f32 %v4122_v27  ;;  %v598_v10 = vor.u32 1.1754944e-38, %v597_v44  ;;  %v3267_v2 = vld [vmem:[#allocation11 + $0x80] sm:$0xff] }
 0x12c   :  { %v4128_v63 = vsub.f32 %v704_v22, %v708_v24  ;;  %v637_v48 = vadd.f32 %v621_v3, %v617_v42  ;;  %v645_v54 = vadd.f32 %v641_v23, %v633_v31  ;;  %v661_v59 = vmul.f32 %v657_v39, %v613_v40  ;;  %vm593_vm11 = vmor %vm591_vm9, %vm592_vm8 }
 0x12d   :  { %v669_v49 = vmul.f32 %v629_v0, %v613_v40  ;;  %v588_v57 = vsub.f32 1.0, %v587_v50  ;;  %1302 = vmatpush.bf16.msrb.mxu2 %v3266_v37  ;;  %vm596_vm10 = vcmp.eq.f32.partialorder %v595_v11, 8.507059e+37  ;;  %v790_v15 = vrot.slane %v4114_v18, 1  ;;  %v3262_v50 = vld [vmem:[#allocation11 + $0x58] sm:$0xff] }
 0x12e   :  { %v649_v61 = vmul.f32 %v637_v48, %v637_v48  ;;  %v665_v1 = vadd.f32 %v661_v59, %v621_v3  ;;  %v685_v60 = vsub.f32 0.0, %v637_v48  ;;  %1290 = vmatpush.bf16.msrb.mxu1 %v3251_v56  ;;  %v3264_v3 = vld [vmem:[#allocation11 + $0x68] sm:$0xff]  ;;  %vm4147_vm12 = vcmp.ne.s32.totalorder %v731_v29, 15  ;;  %1327 = vmatpush.bf16.msrb.mxu3 %v3268_v14  ;;  %v3386_v16 = vpop.eup %3385 }
 0x12f   :  { %v673_v43 = vsub.f32 %v669_v49, %v633_v31  ;;  %v589_v4 = vmul.f32 %v4122_v27, %v588_v57  ;;  %vm793_vm13 = vcmp.lt.s32.totalorder %v4126_v20, 7  ;;  %v789_v28 = vrot.slane %v4112_v41, 1  ;;  %vm4165_vm15 = vmpackc.low %vm4147_vm12, %vm3701_vm14  ;;  %v3261_v49 = vld [vmem:[#allocation11 + $0x50] sm:$0xff] }
 0x130   :  { %v653_v45 = vsub.f32 %v645_v54, %v649_v61  ;;  %v677_v30 = vmul.f32 %v665_v1, %v665_v1  ;;  %v693_v53 = vmul.f32 0.01, %v665_v1  ;;  %v689_v12 = vmul.f32 %v685_v60, %v665_v1 }
 0x131   :  { %v590_v35 = vadd.f32 %v4122_v27, %v589_v4  ;;  %1303 = vmatpush.bf16.msrb.mxu2 %v3265_v34  ;;  %v796_v5 = vsel %vm793_vm13, %v789_v28, %v790_v15  ;;  %v438_v47 = vmul.f32 0.3989423, %v3386_v16  ;;  %v626_v42 = vmul.f32 %v3968_v36, %v3968_v36 }
 0x132   :  { %v681_v32 = vsub.f32 %v673_v43, %v677_v30  ;;  %v4141_v13 = vsub.f32 %v637_v48, %v693_v53  ;;  %v709_v24 = vmul.f32 0.02, %v689_v12  ;;  %1328 = vmatpush.bf16.msrb.mxu3 %v3267_v2  ;;  %v414_v23 = vmul.f32 %v3960_v26, %v3887_v55  ;;  %v3260_v43 = vld [vmem:[#allocation11 + $0x48] sm:$0xff] }
 0x133   :  { %v594_v6 = vsel %vm593_vm11, %v4122_v27, %v590_v35  ;;  %v658_v58 = vsub.f32 0.0, %v3968_v36  ;;  %v630_v54 = vadd.f32 %v626_v42, %v3882_v52  ;;  %v719_v59 = vadd.s32 24, %v4126_v20 }
 0x134   :  { %v701_v19 = vmul.f32 0.0001, %v681_v32  ;;  %v599_v17 = vsel %vm596_vm10, %v598_v10, %v594_v6  ;;  %v791_v0 = vrot.slane %v4141_v13, 1  ;;  %v622_v48 = vmul.f32 %v438_v47, %v414_v23  ;;  %v3259_v10 = vld [vmem:[#allocation11 + $0x40] sm:$0xff] }
 0x135   :  { %v600_v51 = vmul.f32 %v599_v17, %v575_v8  ;;  %1304 = vmatpush.bf16.msrb.mxu2 %v3264_v3  ;;  %v724_v34 = vand.u32 15, %v4126_v20  ;;  %v745_v1 = vand.u32 15, %v719_v59  ;;  %v777_v30 = vrot.slane %v4114_v18, 7 }
 0x136   :  { %v705_v22 = vadd.f32 %v701_v19, %v653_v45  ;;  %v795_v25 = vsel %vm793_vm13, %v790_v15, %v791_v0  ;;  %v634_v55 = vmul.f32 %v622_v48, %v3968_v36  ;;  %vm780_vm0 = vcmp.lt.s32.totalorder %v4126_v20, 1 }
 0x137   :  { %v2770_v27 = vclamps-f32 %v600_v51, 1.0  ;;  %v2874_v31 = vpack.c.bf16 %v795_v25, %v796_v5  ;;  %vm768_vm1 = vcmp.ne.s32.totalorder %v724_v34, 0  ;;  %v776_v14 = vrot.slane %v4112_v41, 7 }
 0x138   :  { %v4169_v39 = vsub.f32 %v705_v22, %v709_v24  ;;  %vm4188_vm2 = vcmp.ne.s32.totalorder %v745_v1, 15  ;;  %vm4199_vm3 = vmpackc.low %vm3701_vm14, %vm768_vm1  ;;  %v1062_v5 = vrot.slane %v4128_v63, 7  ;;  %v1074_v23 = vrot.slane %v4128_v63, 1 }
 0x139   :  { %v606_v40 = vadd.f32 1.0, %v2770_v27  ;;  %2875 = vmatmul.msk.bf16.vlgmr.msrb.gmra.mxu0 %vm4165_vm15, %v2874_v31  ;;  %1305 = vmatpush.bf16.msrb.mxu2 %v3263_v21  ;;  %v783_v33 = vsel %vm780_vm0, %v776_v14, %v777_v30  ;;  %vm4216_vm4 = vmpackc.low %vm4188_vm2, %vm3701_vm14  ;;  %v718_v27 = vadd.s32 16, %v4126_v20  ;;  %v1086_v1 = vpack.c.bf16 %v4128_v63, %v4099_v62 }
 0x13a   :  { %v1075_v42 = vrot.slane %v4169_v39, 1 }
 0x13b   :  { %v610_v7 = vmul.f32 0.5, %v606_v40 }
 0x13d   :  { %v614_v38 = vsub.f32 1.0, %v610_v7  ;;  %v618_v37 = vmul.f32 %v610_v7, %v3968_v36  ;;  %1306 = vmatpush.bf16.msrb.mxu2 %v3262_v50  ;;  %v642_v11 = vmul.f32 %v630_v54, %v610_v7  ;;  %v738_v7 = vand.u32 15, %v718_v27 }
 0x13e   :  { %v1078_v50 = vsel %vm793_vm13, %v1074_v23, %v1075_v42 }
 0x13f   :  { %v638_v9 = vadd.f32 %v622_v48, %v618_v37  ;;  %v662_v56 = vmul.f32 %v658_v58, %v614_v38  ;;  %v670_v57 = vmul.f32 %v630_v54, %v614_v38  ;;  %v646_v29 = vadd.f32 %v642_v11, %v634_v55 }
 0x140   :  { %v1073_v58 = vrot.slane %v4099_v62, 1  ;;  %v778_v38 = vrot.slane %v4141_v13, 7  ;;  %vm770_vm5 = vcmp.ne.s32.totalorder %v738_v7, 0 }
 0x141   :  { %v666_v26 = vadd.f32 %v662_v56, %v622_v48  ;;  %v686_v44 = vsub.f32 0.0, %v638_v9  ;;  %v650_v61 = vmul.f32 %v638_v9, %v638_v9  ;;  %1307 = vmatpush.bf16.msrb.mxu2 %v3261_v49  ;;  %v674_v60 = vsub.f32 %v670_v57, %v634_v55  ;;  %vm4251_vm6 = vmpackc.low %vm3701_vm14, %vm770_vm5 }
 0x142   :  { %v1079_v37 = vsel %vm793_vm13, %v1073_v58, %v1074_v23  ;;  %v782_v59 = vsel %vm780_vm0, %v777_v30, %v778_v38  ;;  %v1063_v56 = vrot.slane %v4169_v39, 7 }
 0x143   :  { %v678_v52 = vmul.f32 %v666_v26, %v666_v26  ;;  %v694_v4 = vmul.f32 0.01, %v666_v26  ;;  %v690_v45 = vmul.f32 %v686_v44, %v666_v26  ;;  %v654_v36 = vsub.f32 %v646_v29, %v650_v61 }
 0x144   :  { %v2982_v48 = vpack.c.bf16 %v1078_v50, %v1079_v37  ;;  %v1066_v11 = vsel %vm780_vm0, %v1062_v5, %v1063_v56 }
 0x145   :  { %v682_v53 = vsub.f32 %v674_v60, %v678_v52  ;;  %v4185_v8 = vsub.f32 %v638_v9, %v694_v4  ;;  %1308 = vmatpush.bf16.msrb.mxu2 %v3260_v43  ;;  %v710_v6 = vmul.f32 0.02, %v690_v45 }
 0x147   :  { %v702_v32 = vmul.f32 0.0001, %v682_v53  ;;  %v806_v12 = vpack.c.bf16 %v4185_v8, %v4141_v13  ;;  %v779_v15 = vrot.slane %v4185_v8, 7  ;;  %v792_v3 = vrot.slane %v4185_v8, 1 }
 0x149   :  { %v706_v19 = vadd.f32 %v702_v32, %v654_v36  ;;  %1036 = vmatmul.bf16.gmra.mxu3 %v806_v12  ;;  %v784_v17 = vsel %vm780_vm0, %v779_v15, %v776_v14  ;;  %v794_v16 = vsel %vm793_vm13, %v791_v0, %v792_v3  ;;  %v797_v51 = vsel %vm793_vm13, %v792_v3, %v789_v28  ;;  %v4282_v36 = vld [vmem:[%s5126_s7] ss:$0 sm:$0xff] }
 0x14a   :  { %v2868_v22 = vpack.c.bf16 %v783_v33, %v784_v17  ;;  %v2877_v24 = vpack.c.bf16 %v797_v51, %v794_v16  ;;  %1309 = vmatpush.bf16.msrb.mxu2 %v3259_v10  ;;  %v1061_v28 = vrot.slane %v4099_v62, 7  ;;  %v781_v54 = vsel %vm780_vm0, %v778_v38, %v779_v15 }
 0x14b   :  { %v4220_v25 = vsub.f32 %v706_v19, %v710_v6  ;;  %v2871_v9 = vpack.c.bf16 %v781_v54, %v782_v59 }
 0x14c   :  { %2869 = vmatmul.msk.bf16.vlgmr.msra.gmra.mxu2 %vm4199_vm3, %v2868_v22  ;;  %2878 = vmatmul.msk.bf16.gmra.mxu0 %vm4216_vm4, %v2877_v24  ;;  %v1067_v31 = vsel %vm780_vm0, %v1061_v28, %v1062_v5 }
 0x14d   :  { %v1064_v0 = vrot.slane %v4220_v25, 7  ;;  %v1076_v26 = vrot.slane %v4220_v25, 1  ;;  %v1089_v43 = vpack.c.bf16 %v4220_v25, %v4169_v39 }
 0x14f   :  { %v1068_v47 = vsel %vm780_vm0, %v1064_v0, %v1061_v28  ;;  %v1065_v57 = vsel %vm780_vm0, %v1063_v56, %v1064_v0  ;;  %v1077_v44 = vsel %vm793_vm13, %v1075_v42, %v1076_v26  ;;  %v1080_v34 = vsel %vm793_vm13, %v1076_v26, %v1073_v58 }
 0x150   :  { %v2976_v40 = vpack.c.bf16 %v1067_v31, %v1068_v47  ;;  %v2979_v55 = vpack.c.bf16 %v1065_v57, %v1066_v11  ;;  %v2985_v61 = vpack.c.bf16 %v1080_v34, %v1077_v44 }
 0x152   :  { %2977 = vmatmul.msk.bf16.vlgmr.msrb.gmra.mxu1 %vm4199_vm3, %v2976_v40 }
 0x159   :  { %2983 = vmatmul.msk.bf16.vlgmr.msrb.gmra.mxu3 %vm4165_vm15, %v2982_v48 }
 0x15c   :  { %2872 = vmatmul.msk.bf16.gmra.mxu2 %vm4251_vm6, %v2871_v9 }
 0x162   :  { %2980 = vmatmul.msk.bf16.gmra.mxu1 %vm4251_vm6, %v2979_v55 }
 0x169   :  { %2986 = vmatmul.msk.bf16.gmra.mxu3 %vm4216_vm4, %v2985_v61 }
 0x16c   :  { %1310 = vmatmul.bf16.vlgmr.msrb.gmra.mxu2 %v1086_v1 }
 0x17c   :  { %1315 = vmatmul.bf16.gmra.mxu2 %v1089_v43 }
 0x1ae   :  { %v1032_v60 = vpop.f32.mrf.mxu3 }
 0x1b6   :  { %v1034_v52 = vpop.f32.mrf.mxu3  ;;  %v1051_v14 = vpop.f32.mrf.mxu0 }
 0x1be   :  { %v1053_v33 = vpop.f32.mrf.mxu0 }
 0x1c9   :  { %v4293_v28 = vpop.f32.mrf.mxu0 }
 0x1cc   :  { %v4275_v29 = vpop.f32.mrf.mxu3 }
 0x1cf   :  { %v1013_v4 = vpop.f32.mrf.mxu2  ;;  %v1292_v32 = vpop.f32.mrf.mxu1 }
 0x1d0   :  { %v1014_v40 = vadd.f32 %v4282_v36, %v1013_v4 }
 0x1d1   :  { %v1058_v9 = vpop.f32.mrf.mxu0 }
 0x1d2   :  { %v1033_v38 = vadd.f32 %v1032_v60, %v1014_v40 }
 0x1d4   :  { %v1039_v53 = vpop.f32.mrf.mxu3  ;;  %v4308_v11 = vadd.f32 %v1051_v14, %v1033_v38 }
 0x1d7   :  { %v1015_v45 = vpop.f32.mrf.mxu2  ;;  %v1294_v17 = vpop.f32.mrf.mxu1 }
 0x1d8   :  { %v1016_v26 = vadd.f32 %v4282_v36, %v1015_v45 }
 0x1dc   :  { %v1330_v15 = vpop.f32.mrf.mxu3 }
 0x1df   :  { %v4277_v30 = vpop.f32.mrf.mxu2  ;;  %v1297_v31 = vpop.f32.mrf.mxu1 }
 0x1e4   :  { %v1332_v51 = vpop.f32.mrf.mxu3 }
 0x1e7   :  { %v1020_v35 = vpop.f32.mrf.mxu2  ;;  %v1299_v44 = vpop.f32.mrf.mxu1 }
 0x1e8   :  { %v1021_v10 = vadd.f32 %v4282_v36, %v1020_v35 }
 0x1ea   :  { %v1040_v12 = vadd.f32 %v1039_v53, %v1021_v10 }
 0x1ec   :  { %v1335_v42 = vpop.f32.mrf.mxu3  ;;  %v4310_v55 = vadd.f32 %v1058_v9, %v1040_v12 }
 0x1ee   :  { %v1599_v10 = vmul.f32 %v4310_v55, %v4310_v55 }
 0x1ef   :  { %v1311_v3 = vpop.f32.mrf.mxu2 }
 0x1f0   :  { %v1312_v6 = vadd.f32 %v1311_v3, %v1292_v32  ;;  %v1035_v32 = vadd.f32 %v1034_v52, %v1016_v26 }
 0x1f2   :  { %v4285_v19 = vadd.f32 %v1330_v15, %v1312_v6  ;;  %v4335_v52 = vadd.f32 %v1053_v33, %v1035_v32 }
 0x1f4   :  { %v4288_v16 = vmax.f32 %v4285_v19, 1e-12  ;;  %v1337_v4 = vpop.f32.mrf.mxu3 }
 0x1f6   :  { %3387 = vrsqrt.f32 %v4288_v16  ;;  %vm1350_vm8 = vweird.f32 %v4288_v16 }
 0x1f7   :  { %v1313_v22 = vpop.f32.mrf.mxu2 }
 0x1f8   :  { %v1314_v24 = vadd.f32 %v1313_v22, %v1294_v17  ;;  %v1019_v17 = vadd.f32 %v4282_v36, %v4277_v30 }
 0x1fa   :  { %v4291_v5 = vadd.f32 %v1332_v51, %v1314_v24  ;;  %v1038_v30 = vadd.f32 %v4275_v29, %v1019_v17 }
 0x1fc   :  { %v3388_v0 = vpop.eup %3387  ;;  %v4296_v27 = vmax.f32 %v4291_v5, 1e-12  ;;  %v4351_v29 = vadd.f32 %v4293_v28, %v1038_v30 }
 0x1fd   :  { %v1345_v47 = vmul.f32 %v3388_v0, %v4288_v16  ;;  %vm1351_vm7 = vweird.f32 %v3388_v0 }
 0x1fe   :  { %3389 = vrsqrt.f32 %v4296_v27  ;;  %vm1352_vm9 = vmor %vm1350_vm8, %vm1351_vm7  ;;  %vm1360_vm11 = vweird.f32 %v4296_v27 }
 0x1ff   :  { %v1346_v23 = vmul.f32 %v3388_v0, %v1345_v47  ;;  %v1316_v7 = vpop.f32.mrf.mxu2 }
 0x200   :  { %v1317_v58 = vadd.f32 %v1316_v7, %v1297_v31 }
 0x201   :  { %v1347_v50 = vmul.f32 0.5, %v1346_v23 }
 0x202   :  { %v4301_v37 = vadd.f32 %v1335_v42, %v1317_v58 }
 0x203   :  { %v1348_v48 = vsub.f32 1.5, %v1347_v50 }
 0x204   :  { %v3390_v54 = vpop.eup %3389  ;;  %v4304_v59 = vmax.f32 %v4301_v37, 1e-12 }
 0x205   :  { %v1349_v56 = vmul.f32 %v3388_v0, %v1348_v48  ;;  %v1355_v57 = vmul.f32 %v3390_v54, %v4296_v27  ;;  %vm1361_vm10 = vweird.f32 %v3390_v54 }
 0x206   :  { %3391 = vrsqrt.f32 %v4304_v59  ;;  %vm1362_vm12 = vmor %vm1360_vm11, %vm1361_vm10  ;;  %vm1370_vm1 = vweird.f32 %v4304_v59 }
 0x207   :  { %v4314_v34 = vsel %vm1352_vm9, %v3388_v0, %v1349_v56  ;;  %v1356_v61 = vmul.f32 %v3390_v54, %v1355_v57  ;;  %v1318_v1 = vpop.f32.mrf.mxu2 }
 0x208   :  { %v1388_v43 = vmul.f32 %v4314_v34, %v4308_v11  ;;  %v1319_v60 = vadd.f32 %v1318_v1, %v1299_v44 }
 0x209   :  { %v1357_v53 = vmul.f32 0.5, %v1356_v61 }
 0x20a   :  { %v4318_v14 = vmul.f32 0.70710677, %v1388_v43  ;;  %v1338_v35 = vadd.f32 %v1337_v4, %v1319_v60  ;;  %v1392_v23 = vmul.f32 -0.5, %v1388_v43 }
 0x20b   :  { %v1358_v12 = vsub.f32 1.5, %v1357_v53 }
 0x20c   :  { %v3392_v45 = vpop.eup %3391  ;;  %v1416_v15 = vmul.f32 %v4318_v14, %v4318_v14  ;;  %v4324_v3 = vmax.f32 %v1338_v35, 1e-12  ;;  %v4326_v6 = vadd.f32 %v1599_v10, %v1338_v35  ;;  %v1396_v26 = vmul.f32 %v1392_v23, %v1388_v43 }
 0x20d   :  { %v1359_v51 = vmul.f32 %v3390_v54, %v1358_v12  ;;  %v1365_v22 = vmul.f32 %v3392_v45, %v4304_v59  ;;  %vm1371_vm14 = vweird.f32 %v3392_v45 }
 0x20e   :  { %v4332_v24 = vmin.f32 %v1416_v15, 16.0  ;;  %3393 = vrsqrt.f32 %v4324_v3  ;;  %vm1372_vm2 = vmor %vm1370_vm1, %vm1371_vm14  ;;  %v1400_v12 = vmul.f32 1.442695, %v1396_v26  ;;  %vm1380_vm7 = vweird.f32 %v4324_v3 }
 0x20f   :  { %v4337_v0 = vsel %vm1362_vm12, %v3390_v54, %v1359_v51  ;;  %v1366_v31 = vmul.f32 %v3392_v45, %v1365_v22 }
 0x210   :  { %v1418_v47 = vmul.f32 2.1237322e-06, %v4332_v24  ;;  %v1429_v40 = vmul.f32 3.8918573e-05, %v4332_v24  ;;  %v1389_v36 = vmul.f32 %v4337_v0, %v4335_v52  ;;  %3395 = vpow2.f32 %v1400_v12 }
 0x211   :  { %v1367_v42 = vmul.f32 0.5, %v1366_v31 }
 0x212   :  { %v1419_v7 = vadd.f32 0.00028619796, %v1418_v47  ;;  %v1430_v58 = vadd.f32 0.001143296, %v1429_v40  ;;  %v4344_v50 = vmul.f32 0.70710677, %v1389_v36 }
 0x213   :  { %v1368_v33 = vsub.f32 1.5, %v1367_v42  ;;  %v1393_v9 = vmul.f32 -0.5, %v1389_v36 }
 0x214   :  { %v4346_v38 = vpop.eup %3393  ;;  %v1420_v48 = vmul.f32 %v1419_v7, %v4332_v24  ;;  %v1431_v54 = vmul.f32 %v1430_v58, %v4332_v24  ;;  %v1456_v56 = vmul.f32 %v4344_v50, %v4344_v50 }
 0x215   :  { %v1369_v57 = vmul.f32 %v3392_v45, %v1368_v33  ;;  %v1375_v1 = vmul.f32 %v4346_v38, %v4324_v3  ;;  %v1397_v53 = vmul.f32 %v1393_v9, %v1389_v36  ;;  %vm1381_vm5 = vweird.f32 %v4346_v38 }
 0x216   :  { %v1421_v44 = vadd.f32 0.0036580483, %v1420_v48  ;;  %v1432_v61 = vadd.f32 0.014752088, %v1431_v54  ;;  %v4358_v60 = vmin.f32 %v1456_v56, 16.0  ;;  %vm1382_vm8 = vmor %vm1380_vm7, %vm1381_vm5 }
 0x217   :  { %v4360_v4 = vsel %vm1372_vm2, %v3392_v45, %v1369_v57  ;;  %v1376_v17 = vmul.f32 %v4346_v38, %v1375_v1  ;;  %v1402_v47 = vmul.f32 1.442695, %v1397_v53  ;;  %v1596_v57 = vmul.f32 %v4308_v11, %v4308_v11 }
 0x218   :  { %v1433_v28 = vmul.f32 %v1432_v61, %v4332_v24  ;;  %v1390_v35 = vmul.f32 %v4360_v4, %v4351_v29  ;;  %v1422_v10 = vmul.f32 %v1421_v44, %v4332_v24  ;;  %v1458_v43 = vmul.f32 2.1237322e-06, %v4358_v60 }
 0x219   :  { %v1469_v32 = vmul.f32 3.8918573e-05, %v4358_v60  ;;  %v1377_v40 = vmul.f32 0.5, %v1376_v17  ;;  %3397 = vpow2.f32 %v1402_v47  ;;  %v3396_v17 = vpop.eup %3395  ;;  %v4396_v47 = vadd.f32 %v1596_v57, %v4285_v19 }
 0x21a   :  { %v1434_v15 = vadd.f32 0.112945676, %v1433_v28  ;;  %v1459_v51 = vadd.f32 0.00028619796, %v1458_v43  ;;  %v4369_v45 = vmul.f32 0.70710677, %v1390_v35  ;;  %v1384_v19 = vmul.f32 %v4314_v34, %v4288_v16 }
 0x21b   :  { %v1470_v22 = vadd.f32 0.001143296, %v1469_v32  ;;  %v1423_v30 = vadd.f32 0.05243302, %v1422_v10  ;;  %v1394_v58 = vmul.f32 -0.5, %v1390_v35  ;;  %v1378_v9 = vsub.f32 1.5, %v1377_v40 }
 0x21c   :  { %v1435_v31 = vmul.f32 %v1434_v15, %v4332_v24  ;;  %v1460_v36 = vmul.f32 %v1459_v51, %v4358_v60  ;;  %v1496_v23 = vmul.f32 %v4369_v45, %v4369_v45  ;;  %v1628_v43 = vsub.f32 0.0, %v4308_v11 }
 0x21d   :  { %v1471_v42 = vmul.f32 %v1470_v22, %v4358_v60  ;;  %v1424_v26 = vmul.f32 %v1423_v30, %v4332_v24  ;;  %v1379_v10 = vmul.f32 %v4346_v38, %v1378_v9  ;;  %v1398_v12 = vmul.f32 %v1394_v58, %v1390_v35  ;;  %v3290_v58 = vld [vmem:[#allocation13 + $0x78] sm:$0xff] }
 0x21e   :  { %v1436_v7 = vadd.f32 0.4994258, %v1435_v31  ;;  %v1461_v33 = vadd.f32 0.0036580483, %v1460_v36  ;;  %v4376_v54 = vmin.f32 %v1496_v23, 16.0  ;;  %v1597_v22 = vmul.f32 %v4335_v52, %v4335_v52  ;;  %1957 = vmatpush.bf16.msra.mxu1 %v3290_v58  ;;  %v3288_v58 = vld [vmem:[#allocation13 + $0x68] sm:$0xff] }
 0x21f   :  { %v1472_v48 = vadd.f32 0.014752088, %v1471_v42  ;;  %v1425_v31 = vadd.f32 0.18741608, %v1424_v26  ;;  %v1629_v30 = vsub.f32 0.0, %v4335_v52  ;;  %v3398_v35 = vpop.eup %3397 }
 0x220   :  { %v1437_v56 = vmul.f32 %v1436_v7, %v4332_v24  ;;  %v1462_v44 = vmul.f32 %v1461_v33, %v4358_v60  ;;  %v1498_v1 = vmul.f32 2.1237322e-06, %v4376_v54  ;;  %v1509_v53 = vmul.f32 3.8918573e-05, %v4376_v54 }
 0x221   :  { %v1473_v61 = vmul.f32 %v1472_v48, %v4358_v60  ;;  %v4401_v36 = vadd.f32 %v1597_v22, %v4291_v5  ;;  %v4405_v7 = vsel %vm1382_vm8, %v4346_v38, %v1379_v10  ;;  %v1408_v33 = vmul.f32 0.3989423, %v3396_v17 }
 0x222   :  { %v4385_v28 = vadd.f32 1.0, %v1437_v56  ;;  %v1499_v15 = vadd.f32 0.00028619796, %v1498_v1  ;;  %v1463_v51 = vadd.f32 0.05243302, %v1462_v44  ;;  %v1391_v5 = vmul.f32 %v4405_v7, %v4310_v55 }
 0x223   :  { %v1474_v32 = vadd.f32 0.112945676, %v1473_v61  ;;  %v1510_v23 = vadd.f32 0.001143296, %v1509_v53  ;;  %v1404_v9 = vmul.f32 1.442695, %v1398_v12  ;;  %v1426_v44 = vmul.f32 %v1425_v31, %v4332_v24 }
 0x224   :  { %3399 = vrcp.f32 %v4385_v28  ;;  %v1500_v42 = vmul.f32 %v1499_v15, %v4376_v54  ;;  %v1464_v56 = vmul.f32 %v1463_v51, %v4358_v60  ;;  %v1385_v38 = vmul.f32 %v4337_v0, %v4296_v27  ;;  %v3289_v12 = vld [vmem:[#allocation13 + $0x70] sm:$0xff] }
 0x225   :  { %v1475_v40 = vmul.f32 %v1474_v32, %v4358_v60  ;;  %v1511_v26 = vmul.f32 %v1510_v23, %v4376_v54  ;;  %v1409_v61 = vmul.f32 0.3989423, %v3398_v35  ;;  %v4419_v1 = vmul.f32 %v4360_v4, %v4304_v59  ;;  %1958 = vmatpush.bf16.msra.mxu1 %v3289_v12 }
 0x226   :  { %v1501_v57 = vadd.f32 0.0036580483, %v1500_v42  ;;  %v1395_v32 = vmul.f32 -0.5, %v1391_v5  ;;  %v4423_v17 = vmul.f32 %v1408_v33, %v1384_v19  ;;  %3401 = vpow2.f32 %v1404_v9 }
 0x227   :  { %v1476_v48 = vadd.f32 0.4994258, %v1475_v40  ;;  %v1512_v10 = vadd.f32 0.014752088, %v1511_v26  ;;  %v1465_v27 = vadd.f32 0.18741608, %v1464_v56  ;;  %v4429_v31 = vmul.f32 %v1409_v61, %v1385_v38 }
 0x228   :  { %v1502_v53 = vmul.f32 %v1501_v57, %v4376_v54  ;;  %v1399_v22 = vmul.f32 %v1395_v32, %v1391_v5  ;;  %v1427_v59 = vadd.f32 1.1283791, %v1426_v44  ;;  %v1448_v40 = vand.u32 2147483647, %v4385_v28  ;;  %v3287_v32 = vld [vmem:[#allocation13 + $0x60] sm:$0xff] }
 0x229   :  { %v1477_v16 = vmul.f32 %v1476_v48, %v4358_v60  ;;  %v1513_v51 = vmul.f32 %v1512_v10, %v4376_v54  ;;  %v1450_v35 = vand.u32 2147483648, %v4385_v28  ;;  %v4434_v48 = vmul.f32 0.70710677, %v1391_v5  ;;  %1959 = vmatpush.bf16.msra.mxu1 %v3288_v58  ;;  %v3298_v5 = vld [vmem:[#allocation13 + $0xb8] sm:$0xff] }
 0x22a   :  { %v3400_v34 = vpop.eup %3399  ;;  %v1503_v0 = vadd.f32 0.05243302, %v1502_v53  ;;  %v1406_v33 = vmul.f32 1.442695, %v1399_v22  ;;  %v4438_v9 = vmul.f32 %v4423_v17, %v4308_v11  ;;  %v1466_v56 = vmul.f32 %v1465_v27, %v4358_v60  ;;  %1976 = vmatpush.bf16.msra.mxu2 %v3298_v5 }
 0x22b   :  { %v1440_v15 = vmul.f32 %v3400_v34, %v4385_v28  ;;  %v4425_v24 = vadd.f32 1.0, %v1477_v16  ;;  %v1514_v23 = vadd.f32 0.112945676, %v1513_v51  ;;  %vm1445_vm9 = vweird.f32 %v3400_v34 }
 0x22c   :  { %v1504_v42 = vmul.f32 %v1503_v0, %v4376_v54  ;;  %v3402_v44 = vpop.eup %3401  ;;  %vm1444_vm10 = vweird.f32 %v4385_v28  ;;  %v1536_v61 = vmul.f32 %v4434_v48, %v4434_v48  ;;  %v1428_v16 = vmul.f32 %v1427_v59, %v4318_v14 }
 0x22d   :  { %v1441_v4 = vsub.f32 1.0, %v1440_v15  ;;  %3403 = vrcp.f32 %v4425_v24  ;;  %v1515_v26 = vmul.f32 %v1514_v23, %v4376_v54  ;;  %vm1446_vm11 = vmor %vm1444_vm10, %vm1445_vm9  ;;  %v1451_v53 = vor.u32 1.1754944e-38, %v1450_v35  ;;  %1960 = vmatpush.bf16.msra.mxu1 %v3287_v32  ;;  %v3297_v35 = vld [vmem:[#allocation13 + $0xb0] sm:$0xff] }
 0x22e   :  { %v1505_v57 = vadd.f32 0.18741608, %v1504_v42  ;;  %3405 = vpow2.f32 %v1406_v33  ;;  %vm1449_vm12 = vcmp.eq.f32.partialorder %v1448_v40, 8.507059e+37  ;;  %v4450_v28 = vmul.f32 %v4429_v31, %v4335_v52  ;;  %v3286_v33 = vld [vmem:[#allocation13 + $0x58] sm:$0xff]  ;;  %1977 = vmatpush.bf16.msra.mxu2 %v3297_v35 }
 0x22f   :  { %v1442_v19 = vmul.f32 %v3400_v34, %v1441_v4  ;;  %v1516_v10 = vadd.f32 0.4994258, %v1515_v26  ;;  %v4452_v27 = vmin.f32 %v1536_v61, 16.0  ;;  %v1467_v51 = vadd.f32 1.1283791, %v1466_v56 }
 0x230   :  { %v1506_v60 = vmul.f32 %v1505_v57, %v4376_v54  ;;  %v1488_v22 = vand.u32 2147483647, %v4425_v24  ;;  %v1490_v23 = vand.u32 2147483648, %v4425_v24  ;;  %v4464_v5 = vmul.f32 0.3989423, %v3402_v44 }
 0x231   :  { %v1443_v38 = vadd.f32 %v3400_v34, %v1442_v19  ;;  %v1517_v4 = vmul.f32 %v1516_v10, %v4376_v54  ;;  %v1549_v40 = vmul.f32 3.8918573e-05, %v4452_v27  ;;  %v1387_v19 = vmul.f32 %v4405_v7, %v4324_v3  ;;  %1961 = vmatpush.bf16.msra.mxu1 %v3286_v33  ;;  %v3282_v3 = vld [vmem:[#allocation13 + $0x38] sm:$0xff]  ;;  %v3296_v7 = vld [vmem:[#allocation13 + $0xa8] sm:$0xff] }
 0x232   :  { %v1507_v58 = vadd.f32 1.1283791, %v1506_v60  ;;  %v1468_v60 = vmul.f32 %v1467_v51, %v4344_v50  ;;  %vm1484_vm1 = vweird.f32 %v4425_v24  ;;  %vm4469_vm2 = vcmp.eq.f32.partialorder %v1488_v22, 8.507059e+37  ;;  %1938 = vmatpush.bf16.msra.mxu0 %v3282_v3  ;;  %1978 = vmatpush.bf16.msra.mxu2 %v3296_v7 }
 0x233   :  { %v3404_v12 = vpop.eup %3403  ;;  %v1447_v15 = vsel %vm1446_vm11, %v3400_v34, %v1443_v38  ;;  %v1538_v34 = vmul.f32 2.1237322e-06, %v4452_v27  ;;  %v4462_v26 = vadd.f32 1.0, %v1517_v4  ;;  %v1550_v61 = vadd.f32 0.001143296, %v1549_v40 }
 0x234   :  { %v1452_v0 = vsel %vm1449_vm12, %v1451_v53, %v1447_v15  ;;  %v1480_v14 = vmul.f32 %v3404_v12, %v4425_v24  ;;  %v3406_v56 = vpop.eup %3405  ;;  %vm1485_vm14 = vweird.f32 %v3404_v12  ;;  %v1491_v50 = vor.u32 1.1754944e-38, %v1490_v23 }
 0x235   :  { %v1453_v59 = vmul.f32 %v1452_v0, %v1428_v16  ;;  %v1539_v38 = vadd.f32 0.00028619796, %v1538_v34  ;;  %v1411_v16 = vmul.f32 0.3989423, %v3406_v56  ;;  %3407 = vrcp.f32 %v4462_v26  ;;  %v3285_v0 = vld [vmem:[#allocation13 + $0x50] sm:$0xff]  ;;  %vm1486_vm5 = vmor %vm1484_vm1, %vm1485_vm14 }
 0x236   :  { %v1481_v42 = vsub.f32 1.0, %v1480_v14  ;;  %v1551_v44 = vmul.f32 %v1550_v61, %v4452_v27  ;;  %v4477_v24 = vmul.f32 %v1507_v58, %v4369_v45  ;;  %1962 = vmatpush.bf16.msra.mxu1 %v3285_v0  ;;  %v3306_v45 = vld [vmem:[#allocation14 + $0x38] sm:$0xff]  ;;  %v3281_v58 = vld [vmem:[#allocation13 + $0x30] sm:$0xff]  ;;  %vm1524_vm7 = vweird.f32 %v4462_v26  ;;  %v3280_v0 = vld [vmem:[#allocation13 + $0x28] sm:$0xff] }
 0x237   :  { %v2987_v57 = vclamps-f32 %v1453_v59, 1.0  ;;  %v1540_v15 = vmul.f32 %v1539_v38, %v4452_v27  ;;  %v4479_v51 = vmul.f32 %v1411_v16, %v1387_v19  ;;  %v1528_v59 = vand.u32 2147483647, %v4462_v26  ;;  %v3295_v19 = vld [vmem:[#allocation13 + $0xa0] sm:$0xff]  ;;  %v3284_v38 = vld [vmem:[#allocation13 + $0x48] sm:$0xff]  ;;  %2217 = vmatpush.bf16.msra.mxu3 %v3306_v45  ;;  %1939 = vmatpush.bf16.msra.mxu0 %v3281_v58 }
 0x238   :  { %v1482_v54 = vmul.f32 %v3404_v12, %v1481_v42  ;;  %v1552_v34 = vadd.f32 0.014752088, %v1551_v44  ;;  %1979 = vmatpush.bf16.msra.mxu2 %v3295_v19  ;;  %v3305_v44 = vld [vmem:[#allocation14 + $0x30] sm:$0xff] }
 0x239   :  { %v1576_v53 = vadd.f32 1.0, %v2987_v57  ;;  %v1541_v4 = vadd.f32 0.0036580483, %v1540_v15  ;;  %v4490_v57 = vmul.f32 %v4479_v51, %v4310_v55  ;;  %vm4511_vm8 = vcmp.eq.f32.partialorder %v1528_v59, 8.507059e+37  ;;  %v3279_v59 = vld [vmem:[#allocation13 + $0x20] sm:$0xff] }
 0x23a   :  { %v1483_v10 = vadd.f32 %v3404_v12, %v1482_v54  ;;  %1963 = vmatpush.bf16.msra.mxu1 %v3284_v38  ;;  %v3304_v38 = vld [vmem:[#allocation14 + $0x28] sm:$0xff] }
 0x23b   :  { %v1580_v14 = vmul.f32 0.5, %v1576_v53  ;;  %v1542_v56 = vmul.f32 %v1541_v4, %v4452_v27  ;;  %v4492_v61 = vpop.eup %3407  ;;  %2218 = vmatpush.bf16.msra.mxu3 %v3305_v44  ;;  %1940 = vmatpush.bf16.msra.mxu0 %v3280_v0 }
 0x23c   :  { %v1487_v22 = vsel %vm1486_vm5, %v3404_v12, %v1483_v10  ;;  %v1553_v12 = vmul.f32 %v1552_v34, %v4452_v27  ;;  %v1520_v7 = vmul.f32 %v4492_v61, %v4462_v26  ;;  %v1530_v10 = vand.u32 2147483648, %v4462_v26  ;;  %v3294_v34 = vld [vmem:[#allocation13 + $0x98] sm:$0xff]  ;;  %v4553_v26 = vld [vmem:[%s5132_s13] ss:$0 sm:$0xff] }
 0x23d   :  { %v1584_v40 = vsub.f32 1.0, %v1580_v14  ;;  %v1588_v35 = vmul.f32 %v1580_v14, %v4308_v11  ;;  %v1612_v42 = vmul.f32 %v4396_v47, %v1580_v14  ;;  %v1492_v23 = vsel %vm4469_vm2, %v1491_v50, %v1487_v22  ;;  %1980 = vmatpush.bf16.msra.mxu2 %v3294_v34 }
 0x23e   :  { %v1493_v33 = vmul.f32 %v1492_v23, %v1468_v60  ;;  %v1543_v32 = vadd.f32 0.05243302, %v1542_v56  ;;  %v1521_v50 = vsub.f32 1.0, %v1520_v7  ;;  %v1554_v4 = vadd.f32 0.112945676, %v1553_v12 }
 0x23f   :  { %v4495_v54 = vadd.f32 %v4423_v17, %v1588_v35  ;;  %v1616_v16 = vadd.f32 %v1612_v42, %v4438_v9  ;;  %v1632_v53 = vmul.f32 %v1628_v43, %v1584_v40  ;;  %v1640_v60 = vmul.f32 %v4396_v47, %v1584_v40  ;;  %v3283_v40 = vld [vmem:[#allocation13 + $0x40] sm:$0xff]  ;;  %2219 = vmatpush.bf16.msra.mxu3 %v3304_v38 }
 0x240   :  { %v2988_v3 = vclamps-f32 %v1493_v33, 1.0  ;;  %v1544_v22 = vmul.f32 %v1543_v32, %v4452_v27  ;;  %v1555_v19 = vmul.f32 %v1554_v4, %v4452_v27  ;;  %vm1525_vm9 = vweird.f32 %v4492_v61  ;;  %1964 = vmatpush.bf16.msra.mxu1 %v3283_v40  ;;  %v4521_v32 = vld [vmem:[#allocation14 + $0xb8] sm:$0xff]  ;;  %1941 = vmatpush.bf16.msra.mxu0 %v3279_v59  ;;  %v3292_v40 = vld [vmem:[#allocation13 + $0x88] sm:$0xff] }
 0x241   :  { %v1620_v15 = vmul.f32 %v4495_v54, %v4495_v54  ;;  %v1636_v11 = vadd.f32 %v1632_v53, %v4423_v17  ;;  %v1644_v43 = vsub.f32 %v1640_v60, %v4438_v9  ;;  %v1656_v47 = vsub.f32 0.0, %v4495_v54  ;;  %vm4541_vm10 = vmor %vm1524_vm7, %vm1525_vm9 }
 0x242   :  { %v1577_v14 = vadd.f32 1.0, %v2988_v3  ;;  %v1522_v9 = vmul.f32 %v4492_v61, %v1521_v50  ;;  %v1545_v58 = vadd.f32 0.18741608, %v1544_v22  ;;  %v1531_v12 = vor.u32 1.1754944e-38, %v1530_v10 }
 0x243   :  { %v1624_v35 = vsub.f32 %v1616_v16, %v1620_v15  ;;  %v1648_v42 = vmul.f32 %v1636_v11, %v1636_v11  ;;  %v1664_v23 = vmul.f32 0.01, %v1636_v11  ;;  %v1660_v56 = vmul.f32 %v1656_v47, %v1636_v11  ;;  %v3293_v16 = vld [vmem:[#allocation13 + $0x90] sm:$0xff]  ;;  %v4526_v11 = vld [vmem:[%s5130_s11] ss:$0 sm:$0xff] }
 0x244   :  { %v1581_v17 = vmul.f32 0.5, %v1577_v14  ;;  %v1523_v7 = vadd.f32 %v4492_v61, %v1522_v9  ;;  %v1546_v10 = vmul.f32 %v1545_v58, %v4452_v27  ;;  %1981 = vmatpush.bf16.msra.mxu2 %v3293_v16  ;;  %2255 = vmatpush.bf16.msrb.mxu1 %v4521_v32  ;;  %v4572_v38 = vmul.f32 %v4464_v5, %v4419_v1  ;;  %v3302_v16 = vld [vmem:[#allocation14 + $0x18] sm:$0xff]  ;;  %v4582_v5 = vld [vmem:[#allocation14 + $0xa8] sm:$0xff] }
 0x245   :  { %v1652_v33 = vsub.f32 %v1644_v43, %v1648_v42  ;;  %v1556_v43 = vadd.f32 0.4994258, %v1555_v19  ;;  %v1668_v47 = vsub.f32 %v4495_v54, %v1664_v23  ;;  %v1680_v4 = vmul.f32 0.02, %v1660_v56 }
 0x246   :  { %v1585_v53 = vsub.f32 1.0, %v1581_v17  ;;  %v1589_v60 = vmul.f32 %v1581_v17, %v4335_v52  ;;  %v1613_v3 = vmul.f32 %v4401_v36, %v1581_v17  ;;  %v1527_v34 = vsel %vm4541_vm10, %v4492_v61, %v1523_v7  ;;  %v4557_v61 = vld [vmem:[#allocation14 + $0xb0] sm:$0xff] }
 0x247   :  { %v1672_v15 = vmul.f32 0.0001, %v1652_v33  ;;  %v1557_v52 = vmul.f32 %v1556_v43, %v4452_v27  ;;  %v1532_v9 = vsel %vm4511_vm8, %v1531_v12, %v1527_v34  ;;  %v1692_v19 = vmul.f32 %v4526_v11, %v1668_v47  ;;  %v4567_v33 = vld [vmem:[%s5131_s12] ss:$0 sm:$0xff]  ;;  %v3276_v34 = vld [vmem:[#allocation13 + $0x8] sm:$0xff] }
 0x248   :  { %v1609_v44 = vadd.f32 %v4429_v31, %v1589_v60  ;;  %v4532_v0 = vadd.f32 %v1613_v3, %v4450_v28  ;;  %v1633_v14 = vmul.f32 %v1629_v30, %v1585_v53  ;;  %v1641_v50 = vmul.f32 %v4401_v36, %v1585_v53  ;;  %v3303_v30 = vld [vmem:[#allocation14 + $0x20] sm:$0xff]  ;;  %v3278_v36 = vld [vmem:[#allocation13 + $0x18] sm:$0xff]  ;;  %1982 = vmatpush.bf16.msra.mxu2 %v3292_v40  ;;  %v3277_v53 = vld [vmem:[#allocation13 + $0x10] sm:$0xff] }
 0x249   :  { %v1676_v54 = vadd.f32 %v1672_v15, %v1624_v35  ;;  %v4561_v58 = vadd.f32 1.0, %v1557_v52  ;;  %2220 = vmatpush.bf16.msra.mxu3 %v3303_v30  ;;  %1942 = vmatpush.bf16.msra.mxu0 %v3278_v36  ;;  %v1533_v12 = vmul.f32 %v1532_v9, %v4477_v24  ;;  %v1547_v59 = vadd.f32 1.1283791, %v1546_v10  ;;  %v3291_v60 = vld [vmem:[#allocation13 + $0x80] sm:$0xff] }
 0x24a   :  { %v1621_v42 = vmul.f32 %v1609_v44, %v1609_v44  ;;  %v1637_v35 = vadd.f32 %v1633_v14, %v4429_v31  ;;  %v1645_v23 = vsub.f32 %v1641_v50, %v4450_v28  ;;  %v1657_v17 = vsub.f32 0.0, %v1609_v44  ;;  %2256 = vmatpush.bf16.msrb.mxu1 %v4557_v61  ;;  %v4601_v40 = vld [vmem:[#allocation14 + $0xa0] sm:$0xff] }
 0x24b   :  { %v1684_v27 = vsub.f32 %v1676_v54, %v1680_v4  ;;  %3409 = vrcp.f32 %v4561_v58  ;;  %v1598_v1 = vmul.f32 %v4351_v29, %v4351_v29  ;;  %v2989_v15 = vclamps-f32 %v1533_v12, 1.0  ;;  %v3301_v4 = vld [vmem:[#allocation14 + $0x10] sm:$0xff] }
 0x24c   :  { %v1625_v31 = vsub.f32 %v4532_v0, %v1621_v42  ;;  %v1649_v28 = vmul.f32 %v1637_v35, %v1637_v35  ;;  %v1665_v56 = vmul.f32 0.01, %v1637_v35  ;;  %v1661_v45 = vmul.f32 %v1657_v17, %v1637_v35  ;;  %1983 = vmatpush.bf16.msra.mxu2 %v3291_v60 }
 0x24d   :  { %v4578_v3 = vmul.f32 %v4553_v26, %v1684_v27  ;;  %v4585_v10 = vadd.f32 %v4567_v33, %v1692_v19  ;;  %2221 = vmatpush.bf16.msra.mxu3 %v3302_v16  ;;  %v1602_v47 = vadd.f32 %v1598_v1, %v4301_v37  ;;  %v4590_v0 = vmul.f32 %v4572_v38, %v4351_v29  ;;  %v3314_v37 = vld [vmem:[#allocation14 + $0x78] sm:$0xff]  ;;  %v3275_v16 = vld [vmem:[#allocation13] sm:$0xff] }
 0x24e   :  { %v1653_v7 = vsub.f32 %v1645_v23, %v1649_v28  ;;  %v1669_v24 = vsub.f32 %v1609_v44, %v1665_v56  ;;  %v1630_v14 = vsub.f32 0.0, %v4351_v29  ;;  %1943 = vmatpush.bf16.msra.mxu0 %v3277_v53  ;;  %v1681_v50 = vmul.f32 0.02, %v1661_v45  ;;  %2257 = vmatpush.bf16.msrb.mxu1 %v4582_v5 }
 0x24f   :  { %v1578_v22 = vadd.f32 1.0, %v2989_v15  ;;  %v4594_v54 = vmul.f32 %v1547_v59, %v4434_v48  ;;  %vm1564_vm11 = vweird.f32 %v4561_v58  ;;  %v1568_v30 = vand.u32 2147483647, %v4561_v58  ;;  %v3300_v59 = vld [vmem:[#allocation14 + $0x8] sm:$0xff]  ;;  %v3313_v15 = vld [vmem:[#allocation14 + $0x70] sm:$0xff] }
 0x250   :  { %v1673_v43 = vmul.f32 0.0001, %v1653_v7  ;;  %v1693_v44 = vmul.f32 %v4526_v11, %v1669_v24  ;;  %v1570_v36 = vand.u32 2147483648, %v4561_v58  ;;  %v1995_v48 = vrot.slane %v4578_v3, 7  ;;  %3323 = vmatpush.bf16.msrb.mxu2 %v3314_v37  ;;  %v4624_v24 = vld [vmem:[#allocation14 + $0x98] sm:$0xff] }
 0x251   :  { %v4604_v42 = vpop.eup %3409  ;;  %v1582_v35 = vmul.f32 0.5, %v1578_v22  ;;  %v1712_v17 = vrot.slane %v4585_v10, 7  ;;  %2222 = vmatpush.bf16.msra.mxu3 %v3301_v4  ;;  %v2007_v27 = vrot.slane %v4578_v3, 1  ;;  %vm1569_vm1 = vcmp.eq.f32.partialorder %v1568_v30, 8.507059e+37 }
 0x252   :  { %v1677_v52 = vadd.f32 %v1673_v43, %v1625_v31  ;;  %v4607_v23 = vadd.f32 %v4567_v33, %v1693_v44  ;;  %v1560_v19 = vmul.f32 %v4604_v42, %v4561_v58  ;;  %vm1565_vm12 = vweird.f32 %v4604_v42  ;;  %1944 = vmatpush.bf16.msra.mxu0 %v3276_v34  ;;  %2258 = vmatpush.bf16.msrb.mxu1 %v4601_v40 }
 0x253   :  { %v1724_v31 = vrot.slane %v4585_v10, 1  ;;  %v1586_v28 = vsub.f32 1.0, %v1582_v35  ;;  %v1590_v56 = vmul.f32 %v1582_v35, %v4351_v29  ;;  %v1614_v45 = vmul.f32 %v1602_v47, %v1582_v35  ;;  %vm1566_vm14 = vmor %vm1564_vm11, %vm1565_vm12 }
 0x254   :  { %v1685_v9 = vsub.f32 %v1677_v52, %v1681_v50  ;;  %v1713_v12 = vrot.slane %v4607_v23, 7  ;;  %v1561_v60 = vsub.f32 1.0, %v1560_v19  ;;  %v1725_v7 = vrot.slane %v4607_v23, 1  ;;  %3324 = vmatpush.bf16.msrb.mxu2 %v3313_v15  ;;  %v3299_v19 = vld [vmem:[#allocation14] sm:$0xff] }
 0x255   :  { %v1737_v1 = vpack.c.bf16 %v4607_v23, %v4585_v10  ;;  %v1610_v29 = vadd.f32 %v4572_v38, %v1590_v56  ;;  %v1618_v43 = vadd.f32 %v1614_v45, %v4590_v0  ;;  %v1634_v50 = vmul.f32 %v1630_v14, %v1586_v28  ;;  %2223 = vmatpush.bf16.msra.mxu3 %v3300_v59  ;;  %v4649_v56 = vld [vmem:[#allocation14 + $0x90] sm:$0xff] }
 0x256   :  { %v4619_v53 = vmul.f32 %v4553_v26, %v1685_v9  ;;  %v1642_v22 = vmul.f32 %v1602_v47, %v1586_v28  ;;  %v1562_v44 = vmul.f32 %v4604_v42, %v1561_v60  ;;  %v4635_v4 = vsel %vm793_vm13, %v1724_v31, %v1725_v7  ;;  %1945 = vmatpush.bf16.msra.mxu0 %v3275_v16  ;;  %v3312_v28 = vld [vmem:[#allocation14 + $0x68] sm:$0xff] }
 0x257   :  { %1965 = vmatmul.bf16.vlgmr.msra.gmra.mxu1 %v1737_v1  ;;  %v4643_v47 = vsel %vm780_vm0, %v1712_v17, %v1713_v12  ;;  %v1622_v34 = vmul.f32 %v1610_v29, %v1610_v29  ;;  %v1638_v52 = vadd.f32 %v1634_v50, %v4572_v38  ;;  %v1658_v9 = vsub.f32 0.0, %v1610_v29 }
 0x258   :  { %v1996_v14 = vrot.slane %v4619_v53, 7  ;;  %v1646_v35 = vsub.f32 %v1642_v22, %v4590_v0  ;;  %2259 = vmatpush.bf16.msrb.mxu1 %v4624_v24  ;;  %v1563_v45 = vadd.f32 %v4604_v42, %v1562_v44  ;;  %v2008_v0 = vrot.slane %v4619_v53, 1  ;;  %3325 = vmatpush.bf16.msrb.mxu2 %v3312_v28 }
 0x259   :  { %v1626_v16 = vsub.f32 %v1618_v43, %v1622_v34  ;;  %v1650_v60 = vmul.f32 %v1638_v52, %v1638_v52  ;;  %v1666_v1 = vmul.f32 0.01, %v1638_v52  ;;  %2224 = vmatpush.bf16.msra.mxu3 %v3299_v19  ;;  %v1662_v50 = vmul.f32 %v1658_v9, %v1638_v52  ;;  %v4678_v52 = vld [vmem:[#allocation14 + $0x88] sm:$0xff] }
 0x25a   :  { %2236 = vmatpush.bf16.msrb.mxu0 %v3314_v37  ;;  %v4658_v38 = vsel %vm780_vm0, %v1995_v48, %v1996_v14  ;;  %v1571_v37 = vor.u32 1.1754944e-38, %v1570_v36  ;;  %v1567_v22 = vsel %vm1566_vm14, %v4604_v42, %v1563_v45  ;;  %v4675_v43 = vsel %vm793_vm13, %v2007_v27, %v2008_v0  ;;  %v3311_v36 = vld [vmem:[#allocation14 + $0x60] sm:$0xff] }
 0x25b   :  { %v1654_v44 = vsub.f32 %v1646_v35, %v1650_v60  ;;  %v1670_v34 = vsub.f32 %v1610_v29, %v1666_v1  ;;  %v1682_v19 = vmul.f32 0.02, %v1662_v50  ;;  %v3310_v35 = vld [vmem:[#allocation14 + $0x58] sm:$0xff]  ;;  %v4687_v45 = vld [vmem:[#allocation14 + $0x80] sm:$0xff]  ;;  %v5173_v20 = vpack.c.bf16 %v4619_v53, %v4578_v3 }
 0x25c   :  { %v1572_v59 = vsel %vm1569_vm1, %v1571_v37, %v1567_v22  ;;  %2260 = vmatpush.bf16.msrb.mxu1 %v4649_v56  ;;  %3326 = vmatpush.bf16.msrb.mxu2 %v3311_v36 }
 0x25d   :  { %3331 = vmatpush.bf16.msrb.mxu3 %v4521_v32  ;;  %v1573_v58 = vmul.f32 %v1572_v59, %v4594_v54  ;;  %v1674_v30 = vmul.f32 0.0001, %v1654_v44  ;;  %v1694_v32 = vmul.f32 %v4526_v11, %v1670_v34 }
 0x25e   :  { %2237 = vmatpush.bf16.msrb.mxu0 %v3313_v15 }
 0x25f   :  { %v2990_v42 = vclamps-f32 %v1573_v58, 1.0  ;;  %v1678_v9 = vadd.f32 %v1674_v30, %v1626_v16  ;;  %v4684_v29 = vadd.f32 %v4567_v33, %v1694_v32  ;;  %v1631_v16 = vsub.f32 0.0, %v4310_v55 }
 0x260   :  { %2261 = vmatpush.bf16.msrb.mxu1 %v4678_v52  ;;  %3327 = vmatpush.bf16.msrb.mxu2 %v3310_v35 }
 0x261   :  { %3332 = vmatpush.bf16.msrb.mxu3 %v4557_v61  ;;  %v1579_v60 = vadd.f32 1.0, %v2990_v42  ;;  %v1686_v54 = vsub.f32 %v1678_v9, %v1682_v19  ;;  %v1726_v15 = vrot.slane %v4684_v29, 1  ;;  %v1714_v59 = vrot.slane %v4684_v29, 7 }
 0x262   :  { %2238 = vmatpush.bf16.msrb.mxu0 %v3312_v28  ;;  %v3309_v28 = vld [vmem:[#allocation14 + $0x50] sm:$0xff] }
 0x263   :  { %v1583_v1 = vmul.f32 0.5, %v1579_v60  ;;  %v4693_v61 = vmul.f32 %v4553_v26, %v1686_v54  ;;  %v1729_v37 = vsel %vm793_vm13, %v1725_v7, %v1726_v15 }
 0x264   :  { %2262 = vmatpush.bf16.msrb.mxu1 %v4687_v45  ;;  %v3094_v34 = vpack.c.bf16 %v1729_v37, %v4635_v4  ;;  %3328 = vmatpush.bf16.msrb.mxu2 %v3309_v28  ;;  %v3308_v4 = vld [vmem:[#allocation14 + $0x48] sm:$0xff] }
 0x265   :  { %3333 = vmatpush.bf16.msrb.mxu3 %v4582_v5  ;;  %v4707_v5 = vsel %vm780_vm0, %v1713_v12, %v1714_v59  ;;  %v1587_v50 = vsub.f32 1.0, %v1583_v1  ;;  %v1591_v22 = vmul.f32 %v1583_v1, %v4310_v55  ;;  %v1615_v44 = vmul.f32 %v4326_v6, %v1583_v1 }
 0x266   :  { %2239 = vmatpush.bf16.msrb.mxu0 %v3311_v36  ;;  %v2009_v7 = vrot.slane %v4693_v61, 1  ;;  %v1997_v58 = vrot.slane %v4693_v61, 7  ;;  %3095 = vmatmul.msk.bf16.vlgmr.msra.gmra.mxu2 %vm4165_vm15, %v3094_v34 }
 0x267   :  { %v1611_v30 = vadd.f32 %v4479_v51, %v1591_v22  ;;  %v1619_v23 = vadd.f32 %v1615_v44, %v4490_v57  ;;  %v1635_v32 = vmul.f32 %v1631_v16, %v1587_v50  ;;  %v1643_v12 = vmul.f32 %v4326_v6, %v1587_v50 }
 0x268   :  { %v2012_v55 = vsel %vm793_vm13, %v2008_v0, %v2009_v7  ;;  %v2000_v36 = vsel %vm780_vm0, %v1996_v14, %v1997_v58  ;;  %3329 = vmatpush.bf16.msrb.mxu2 %v3308_v4 }
 0x269   :  { %3334 = vmatpush.bf16.msrb.mxu3 %v4601_v40  ;;  %v1623_v42 = vmul.f32 %v1611_v30, %v1611_v30  ;;  %v1639_v9 = vadd.f32 %v1635_v32, %v4479_v51  ;;  %v1647_v6 = vsub.f32 %v1643_v12, %v4490_v57  ;;  %v1659_v19 = vsub.f32 0.0, %v1611_v30  ;;  %v3307_v40 = vld [vmem:[#allocation14 + $0x40] sm:$0xff] }
 0x26a   :  { %2240 = vmatpush.bf16.msrb.mxu0 %v3310_v35  ;;  %v3202_v60 = vpack.c.bf16 %v2012_v55, %v4675_v43 }
 0x26b   :  { %v1627_v54 = vsub.f32 %v1619_v23, %v1623_v42  ;;  %v1651_v1 = vmul.f32 %v1639_v9, %v1639_v9  ;;  %v1663_v0 = vmul.f32 %v1659_v19, %v1639_v9  ;;  %v1667_v16 = vmul.f32 0.01, %v1639_v9 }
 0x26c   :  { %3330 = vmatpush.bf16.msrb.mxu2 %v3307_v40 }
 0x26d   :  { %3335 = vmatpush.bf16.msrb.mxu3 %v4624_v24  ;;  %v1655_v37 = vsub.f32 %v1647_v6, %v1651_v1  ;;  %v1671_v50 = vsub.f32 %v1611_v30, %v1667_v16  ;;  %v1683_v35 = vmul.f32 0.02, %v1663_v0 }
 0x26e   :  { %2241 = vmatpush.bf16.msrb.mxu0 %v3309_v28 }
 0x26f   :  { %v1675_v14 = vmul.f32 0.0001, %v1655_v37  ;;  %v1695_v51 = vmul.f32 %v4526_v11, %v1671_v50  ;;  %v4807_v50 = vld [vmem:[%s5129_s10] ss:$0 sm:$0xff] }
 0x271   :  { %3336 = vmatpush.bf16.msrb.mxu3 %v4649_v56  ;;  %v1679_v57 = vadd.f32 %v1675_v14, %v1627_v54  ;;  %v1703_v43 = vadd.f32 %v4567_v33, %v1695_v51 }
 0x272   :  { %2242 = vmatpush.bf16.msrb.mxu0 %v3308_v4 }
 0x273   :  { %v1687_v22 = vsub.f32 %v1679_v57, %v1683_v35  ;;  %v1715_v44 = vrot.slane %v1703_v43, 7  ;;  %v1740_v34 = vpack.c.bf16 %v1703_v43, %v4684_v29  ;;  %v1727_v24 = vrot.slane %v1703_v43, 1 }
 0x275   :  { %3337 = vmatpush.bf16.msrb.mxu3 %v4678_v52  ;;  %v1711_v28 = vmul.f32 %v4553_v26, %v1687_v22  ;;  %1970 = vmatmul.bf16.gmra.mxu1 %v1740_v34  ;;  %v1719_v11 = vsel %vm780_vm0, %v1715_v44, %v1712_v17  ;;  %v1728_v56 = vsel %vm793_vm13, %v1726_v15, %v1727_v24 }
 0x276   :  { %v1731_v33 = vsel %vm793_vm13, %v1727_v24, %v1724_v31  ;;  %v3088_v30 = vpack.c.bf16 %v4643_v47, %v1719_v11  ;;  %v1716_v26 = vsel %vm780_vm0, %v1714_v59, %v1715_v44  ;;  %2243 = vmatpush.bf16.msrb.mxu0 %v3307_v40 }
 0x277   :  { %v3097_v23 = vpack.c.bf16 %v1731_v33, %v1728_v56  ;;  %v1998_v52 = vrot.slane %v1711_v28, 7  ;;  %v3091_v17 = vpack.c.bf16 %v1716_v26, %v4707_v5  ;;  %v2023_v32 = vpack.c.bf16 %v1711_v28, %v4693_v61 }
 0x278   :  { %v2010_v15 = vrot.slane %v1711_v28, 1  ;;  %3089 = vmatmul.msk.bf16.vlgmr.msra.gmra.mxu0 %vm4199_vm3, %v3088_v30 }
 0x279   :  { %3098 = vmatmul.msk.bf16.gmra.mxu2 %vm4216_vm4, %v3097_v23  ;;  %v2002_v10 = vsel %vm780_vm0, %v1998_v52, %v1995_v48  ;;  %v1999_v31 = vsel %vm780_vm0, %v1997_v58, %v1998_v52  ;;  %3338 = vmatpush.bf16.msrb.mxu3 %v4687_v45 }
 0x27a   :  { %v2011_v47 = vsel %vm793_vm13, %v2009_v7, %v2010_v15  ;;  %v2014_v29 = vsel %vm793_vm13, %v2010_v15, %v2007_v27  ;;  %v3196_v59 = vpack.c.bf16 %v4658_v38, %v2002_v10  ;;  %v3199_v61 = vpack.c.bf16 %v1999_v31, %v2000_v36 }
 0x27b   :  { %v3205_v5 = vpack.c.bf16 %v2014_v29, %v2011_v47 }
 0x27c   :  { %3197 = vmatmul.msk.bf16.vlgmr.msra.gmra.mxu3 %vm4199_vm3, %v3196_v59 }
 0x285   :  { %3203 = vmatmul.msk.bf16.vlgmr.msrb.gmra.mxu1 %vm4165_vm15, %v3202_v60 }
 0x288   :  { %3092 = vmatmul.msk.bf16.gmra.mxu0 %vm4251_vm6, %v3091_v17 }
 0x289   :  { %2249 = vmatmul.bf16.vlgmr.msrb.gmra.mxu2 %v2023_v32 }
 0x28c   :  { %3200 = vmatmul.msk.bf16.gmra.mxu3 %vm4251_vm6, %v3199_v61 }
 0x298   :  { %2244 = vmatmul.bf16.vlgmr.msrb.gmra.mxu0 %v5173_v20 }
 0x29c   :  { %3206 = vmatmul.msk.bf16.vlgmr.msrb.gmra.mxu3 %vm4216_vm4, %v3205_v5 }
 0x2d4   :  { %v1966_v48 = vpop.f32.mrf.mxu1 }
 0x2dc   :  { %v4784_v38 = vpop.f32.mrf.mxu1 }
 0x2e9   :  { %v1985_v2 = vpop.f32.mrf.mxu2 }
 0x2f1   :  { %v4786_v46 = vpop.f32.mrf.mxu2 }
 0x2f2   :  { %v4788_v58 = vpop.f32.mrf.mxu1 }
 0x2f5   :  { %v1947_v27 = vpop.f32.mrf.mxu0 }
 0x2f6   :  { %v1948_v34 = vadd.f32 %v4807_v50, %v1947_v27 }
 0x2f8   :  { %v1967_v33 = vadd.f32 %v1966_v48, %v1948_v34 }
 0x2fa   :  { %v4792_v3 = vpop.f32.mrf.mxu1  ;;  %v4830_v10 = vadd.f32 %v1985_v2, %v1967_v33 }
 0x2fc   :  { %v4790_v49 = vpop.f32.mrf.mxu2 }
 0x2fd   :  { %v1949_v45 = vpop.f32.mrf.mxu0 }
 0x2fe   :  { %v1950_v47 = vadd.f32 %v4807_v50, %v1949_v45 }
 0x2ff   :  { %v2226_v7 = vpop.f32.mrf.mxu3 }
 0x302   :  { %v2264_v36 = vpop.f32.mrf.mxu1 }
 0x304   :  { %v4796_v21 = vpop.f32.mrf.mxu2 }
 0x305   :  { %v1952_v12 = vpop.f32.mrf.mxu0 }
 0x306   :  { %v1953_v61 = vadd.f32 %v4807_v50, %v1952_v12 }
 0x307   :  { %v2228_v55 = vpop.f32.mrf.mxu3 }
 0x308   :  { %v1972_v45 = vadd.f32 %v4788_v58, %v1953_v61 }
 0x30a   :  { %v2266_v40 = vpop.f32.mrf.mxu1  ;;  %v4860_v58 = vadd.f32 %v4790_v49, %v1972_v45 }
 0x30c   :  { %v2250_v60 = vpop.f32.mrf.mxu2 }
 0x30d   :  { %v4794_v53 = vpop.f32.mrf.mxu0 }
 0x30e   :  { %v1955_v49 = vadd.f32 %v4807_v50, %v4794_v53 }
 0x30f   :  { %v2231_v4 = vpop.f32.mrf.mxu3 }
 0x310   :  { %v2251_v0 = vadd.f32 %v2250_v60, %v2231_v4 }
 0x314   :  { %v2252_v44 = vpop.f32.mrf.mxu2 }
 0x315   :  { %v2245_v42 = vpop.f32.mrf.mxu0 }
 0x316   :  { %v2246_v9 = vadd.f32 %v2245_v42, %v2226_v7  ;;  %v1969_v7 = vadd.f32 %v4784_v38, %v1950_v47  ;;  %v1974_v47 = vadd.f32 %v4792_v3, %v1955_v49 }
 0x317   :  { %v2233_v6 = vpop.f32.mrf.mxu3 }
 0x318   :  { %v4798_v19 = vadd.f32 %v2264_v36, %v2246_v9  ;;  %v2253_v28 = vadd.f32 %v2252_v44, %v2233_v6  ;;  %v4854_v60 = vadd.f32 %v4786_v46, %v1969_v7 }
 0x31a   :  { %v4801_v54 = vmax.f32 %v4798_v19, 1e-12 }
 0x31c   :  { %3411 = vrsqrt.f32 %v4801_v54  ;;  %vm2284_vm15 = vweird.f32 %v4801_v54 }
 0x31d   :  { %v2247_v1 = vpop.f32.mrf.mxu0 }
 0x31e   :  { %v2248_v16 = vadd.f32 %v2247_v1, %v2228_v55 }
 0x31f   :  { %v2269_v37 = vpop.f32.mrf.mxu3 }
 0x320   :  { %v4809_v14 = vadd.f32 %v2266_v40, %v2248_v16  ;;  %v4811_v51 = vadd.f32 %v2269_v37, %v2251_v0 }
 0x322   :  { %v3412_v57 = vpop.eup %3411  ;;  %v4814_v35 = vmax.f32 %v4809_v14, 1e-12  ;;  %v4817_v43 = vmax.f32 %v4811_v51, 1e-12 }
 0x323   :  { %v2279_v22 = vmul.f32 %v3412_v57, %v4801_v54  ;;  %vm2285_vm13 = vweird.f32 %v3412_v57 }
 0x324   :  { %3413 = vrsqrt.f32 %v4814_v35  ;;  %vm2286_vm0 = vmor %vm2284_vm15, %vm2285_vm13  ;;  %vm2294_vm4 = vweird.f32 %v4814_v35  ;;  %vm2304_vm5 = vweird.f32 %v4817_v43 }
 0x325   :  { %v2280_v24 = vmul.f32 %v3412_v57, %v2279_v22  ;;  %3415 = vrsqrt.f32 %v4817_v43 }
 0x327   :  { %v2281_v11 = vmul.f32 0.5, %v2280_v24  ;;  %v2271_v56 = vpop.f32.mrf.mxu3 }
 0x328   :  { %v4823_v30 = vadd.f32 %v2271_v56, %v2253_v28 }
 0x329   :  { %v2282_v23 = vsub.f32 1.5, %v2281_v11 }
 0x32a   :  { %v3414_v26 = vpop.eup %3413  ;;  %v4826_v52 = vmax.f32 %v4823_v30, 1e-12 }
 0x32b   :  { %v3416_v17 = vpop.eup %3415  ;;  %v2283_v32 = vmul.f32 %v3412_v57, %v2282_v23  ;;  %v2289_v15 = vmul.f32 %v3414_v26, %v4814_v35  ;;  %vm2295_vm3 = vweird.f32 %v3414_v26 }
 0x32c   :  { %v2299_v31 = vmul.f32 %v3416_v17, %v4817_v43  ;;  %3417 = vrsqrt.f32 %v4826_v52  ;;  %vm2305_vm6 = vweird.f32 %v3416_v17  ;;  %vm2296_vm2 = vmor %vm2294_vm4, %vm2295_vm3  ;;  %vm2314_vm8 = vweird.f32 %v4826_v52 }
 0x32d   :  { %v4835_v29 = vsel %vm2286_vm0, %v3412_v57, %v2283_v32  ;;  %v2290_v59 = vmul.f32 %v3414_v26, %v2289_v15  ;;  %vm2306_vm7 = vmor %vm2304_vm5, %vm2305_vm6 }
 0x32e   :  { %v2322_v5 = vmul.f32 %v4835_v29, %v4830_v10  ;;  %v2300_v20 = vmul.f32 %v3416_v17, %v2299_v31 }
 0x32f   :  { %v2291_v48 = vmul.f32 0.5, %v2290_v59 }
 0x330   :  { %v4840_v27 = vmul.f32 0.70710677, %v2322_v5  ;;  %v2301_v2 = vmul.f32 0.5, %v2300_v20  ;;  %v2326_v37 = vmul.f32 -0.5, %v2322_v5 }
 0x331   :  { %v2292_v55 = vsub.f32 1.5, %v2291_v48 }
 0x332   :  { %v4843_v4 = vpop.eup %3417  ;;  %v2350_v36 = vmul.f32 %v4840_v27, %v4840_v27  ;;  %v2302_v12 = vsub.f32 1.5, %v2301_v2  ;;  %v2330_v23 = vmul.f32 %v2326_v37, %v2322_v5 }
 0x333   :  { %v2293_v42 = vmul.f32 %v3414_v26, %v2292_v55  ;;  %v2309_v9 = vmul.f32 %v4843_v4, %v4826_v52  ;;  %vm2315_vm9 = vweird.f32 %v4843_v4 }
 0x334   :  { %v4851_v6 = vmin.f32 %v2350_v36, 16.0  ;;  %v2303_v38 = vmul.f32 %v3416_v17, %v2302_v12  ;;  %v2334_v7 = vmul.f32 1.442695, %v2330_v23  ;;  %vm2316_vm10 = vmor %vm2314_vm8, %vm2315_vm9 }
 0x335   :  { %v4856_v1 = vsel %vm2296_vm2, %v3414_v26, %v2293_v42  ;;  %v2310_v40 = vmul.f32 %v4843_v4, %v2309_v9 }
 0x336   :  { %v2352_v0 = vmul.f32 2.1237322e-06, %v4851_v6  ;;  %v2363_v16 = vmul.f32 3.8918573e-05, %v4851_v6  ;;  %v2323_v57 = vmul.f32 %v4856_v1, %v4854_v60  ;;  %v4867_v46 = vsel %vm2306_vm7, %v3416_v17, %v2303_v38 }
 0x337   :  { %v2324_v34 = vmul.f32 %v4867_v46, %v4860_v58  ;;  %v2311_v33 = vmul.f32 0.5, %v2310_v40  ;;  %3419 = vpow2.f32 %v2334_v7 }
 0x338   :  { %v2353_v22 = vadd.f32 0.00028619796, %v2352_v0  ;;  %v2364_v44 = vadd.f32 0.001143296, %v2363_v16  ;;  %v4873_v24 = vmul.f32 0.70710677, %v2323_v57 }
 0x339   :  { %v4877_v56 = vmul.f32 0.70710677, %v2324_v34  ;;  %v2327_v15 = vmul.f32 -0.5, %v2323_v57  ;;  %v2328_v50 = vmul.f32 -0.5, %v2324_v34  ;;  %v2312_v20 = vsub.f32 1.5, %v2311_v33 }
 0x33a   :  { %v2354_v28 = vmul.f32 %v2353_v22, %v4851_v6  ;;  %v2365_v11 = vmul.f32 %v2364_v44, %v4851_v6  ;;  %v2390_v26 = vmul.f32 %v4873_v24, %v4873_v24 }
 0x33b   :  { %v2430_v31 = vmul.f32 %v4877_v56, %v4877_v56  ;;  %v2331_v45 = vmul.f32 %v2327_v15, %v2323_v57  ;;  %v2332_v42 = vmul.f32 %v2328_v50, %v2324_v34  ;;  %v2313_v16 = vmul.f32 %v4843_v4, %v2312_v20 }
 0x33c   :  { %v2355_v17 = vadd.f32 0.0036580483, %v2354_v28  ;;  %v2366_v32 = vadd.f32 0.014752088, %v2365_v11  ;;  %v4883_v53 = vmin.f32 %v2390_v26, 16.0 }
 0x33d   :  { %v4887_v61 = vmin.f32 %v2430_v31, 16.0  ;;  %v2336_v49 = vmul.f32 1.442695, %v2331_v45  ;;  %v2338_v33 = vmul.f32 1.442695, %v2332_v42  ;;  %v4908_v15 = vsel %vm2316_vm10, %v4843_v4, %v2313_v16  ;;  %v3420_v45 = vpop.eup %3419 }
 0x33e   :  { %v2367_v59 = vmul.f32 %v2366_v32, %v4851_v6  ;;  %v2356_v5 = vmul.f32 %v2355_v17, %v4851_v6  ;;  %v2392_v48 = vmul.f32 2.1237322e-06, %v4883_v53  ;;  %v2403_v2 = vmul.f32 3.8918573e-05, %v4883_v53 }
 0x33f   :  { %v2432_v36 = vmul.f32 2.1237322e-06, %v4887_v61  ;;  %v2443_v9 = vmul.f32 3.8918573e-05, %v4887_v61  ;;  %v2530_v17 = vmul.f32 %v4830_v10, %v4830_v10  ;;  %3421 = vpow2.f32 %v2336_v49 }
 0x340   :  { %v2368_v55 = vadd.f32 0.112945676, %v2367_v59  ;;  %v2393_v12 = vadd.f32 0.00028619796, %v2392_v48  ;;  %v2404_v3 = vadd.f32 0.001143296, %v2403_v2  ;;  %3423 = vpow2.f32 %v2338_v33 }
 0x341   :  { %v2433_v0 = vadd.f32 0.00028619796, %v2432_v36  ;;  %v2357_v40 = vadd.f32 0.05243302, %v2356_v5  ;;  %v2444_v57 = vadd.f32 0.001143296, %v2443_v9  ;;  %v4914_v5 = vadd.f32 %v4796_v21, %v1974_v47 }
 0x342   :  { %v2369_v38 = vmul.f32 %v2368_v55, %v4851_v6  ;;  %v2394_v37 = vmul.f32 %v2393_v12, %v4883_v53  ;;  %v2405_v22 = vmul.f32 %v2404_v3, %v4883_v53  ;;  %v2562_v36 = vsub.f32 0.0, %v4830_v10 }
 0x343   :  { %v2434_v34 = vmul.f32 %v2433_v0, %v4887_v61  ;;  %v2445_v23 = vmul.f32 %v2444_v57, %v4887_v61  ;;  %v2358_v31 = vmul.f32 %v2357_v40, %v4851_v6  ;;  %v2531_v12 = vmul.f32 %v4854_v60, %v4854_v60 }
 0x344   :  { %v2370_v44 = vadd.f32 0.4994258, %v2369_v38  ;;  %v2395_v28 = vadd.f32 0.0036580483, %v2394_v37  ;;  %v2406_v11 = vadd.f32 0.014752088, %v2405_v22  ;;  %v2325_v21 = vmul.f32 %v4908_v15, %v4914_v5 }
 0x345   :  { %v2435_v32 = vadd.f32 0.0036580483, %v2434_v34  ;;  %v2446_v20 = vadd.f32 0.014752088, %v2445_v23  ;;  %v2359_v47 = vadd.f32 0.18741608, %v2358_v31  ;;  %v2532_v16 = vmul.f32 %v4860_v58, %v4860_v58  ;;  %v3422_v49 = vpop.eup %3421 }
 0x346   :  { %v2371_v26 = vmul.f32 %v2370_v44, %v4851_v6  ;;  %v2396_v50 = vmul.f32 %v2395_v28, %v4883_v53  ;;  %v2407_v59 = vmul.f32 %v2406_v11, %v4883_v53  ;;  %v2563_v9 = vsub.f32 0.0, %v4854_v60  ;;  %v3424_v23 = vpop.eup %3423 }
 0x347   :  { %v2436_v2 = vmul.f32 %v2435_v32, %v4887_v61  ;;  %v2447_v4 = vmul.f32 %v2446_v20, %v4887_v61  ;;  %v2564_v40 = vsub.f32 0.0, %v4860_v58  ;;  %v2342_v37 = vmul.f32 0.3989423, %v3420_v45 }
 0x348   :  { %v4916_v48 = vadd.f32 1.0, %v2371_v26  ;;  %v2397_v7 = vadd.f32 0.05243302, %v2396_v50  ;;  %v2408_v55 = vadd.f32 0.112945676, %v2407_v59  ;;  %v4933_v22 = vadd.f32 %v2530_v17, %v4798_v19 }
 0x349   :  { %v2437_v38 = vadd.f32 0.05243302, %v2436_v2  ;;  %v2448_v0 = vadd.f32 0.112945676, %v2447_v4  ;;  %v4936_v44 = vadd.f32 %v2531_v12, %v4809_v14  ;;  %v2318_v34 = vmul.f32 %v4835_v29, %v4801_v54 }
 0x34a   :  { %3425 = vrcp.f32 %v4916_v48  ;;  %v2398_v3 = vmul.f32 %v2397_v7, %v4883_v53  ;;  %v2409_v42 = vmul.f32 %v2408_v55, %v4883_v53  ;;  %v4941_v33 = vmul.f32 0.70710677, %v2325_v21 }
 0x34b   :  { %v2449_v11 = vmul.f32 %v2448_v0, %v4887_v61  ;;  %v2360_v26 = vmul.f32 %v2359_v47, %v4851_v6  ;;  %v2319_v19 = vmul.f32 %v4856_v1, %v4814_v35  ;;  %v2320_v14 = vmul.f32 %v4867_v46, %v4817_v43 }
 0x34c   :  { %v2410_v57 = vadd.f32 0.4994258, %v2409_v42  ;;  %v2399_v28 = vadd.f32 0.18741608, %v2398_v3  ;;  %v2438_v31 = vmul.f32 %v2437_v38, %v4887_v61  ;;  %v2329_v29 = vmul.f32 -0.5, %v2325_v21 }
 0x34d   :  { %v2450_v54 = vadd.f32 0.4994258, %v2449_v11  ;;  %v2470_v50 = vmul.f32 %v4941_v33, %v4941_v33  ;;  %v4953_v20 = vmul.f32 %v2342_v37, %v2318_v34  ;;  %v2343_v6 = vmul.f32 0.3989423, %v3422_v49 }
 0x34e   :  { %v2411_v17 = vmul.f32 %v2410_v57, %v4883_v53  ;;  %v2400_v35 = vmul.f32 %v2399_v28, %v4883_v53  ;;  %v2344_v1 = vmul.f32 0.3989423, %v3424_v23  ;;  %v2361_v7 = vadd.f32 1.1283791, %v2360_v26 }
 0x34f   :  { %v2451_v43 = vmul.f32 %v2450_v54, %v4887_v61  ;;  %v4959_v46 = vmin.f32 %v2470_v50, 16.0  ;;  %v2382_v4 = vand.u32 2147483647, %v4916_v48  ;;  %v2384_v45 = vand.u32 2147483648, %v4916_v48 }
 0x350   :  { %v3426_v32 = vpop.eup %3425  ;;  %v4955_v2 = vadd.f32 1.0, %v2411_v17  ;;  %v2439_v12 = vadd.f32 0.18741608, %v2438_v31  ;;  %v2333_v3 = vmul.f32 %v2329_v29, %v2325_v21  ;;  %v4970_v0 = vmul.f32 %v4953_v20, %v4830_v10 }
 0x351   :  { %v2374_v59 = vmul.f32 %v3426_v32, %v4916_v48  ;;  %v4964_v47 = vadd.f32 1.0, %v2451_v43  ;;  %vm2379_vm11 = vweird.f32 %v3426_v32  ;;  %v2472_v53 = vmul.f32 2.1237322e-06, %v4959_v46 }
 0x352   :  { %3427 = vrcp.f32 %v4955_v2  ;;  %v2483_v38 = vmul.f32 3.8918573e-05, %v4959_v46  ;;  %v2401_v37 = vadd.f32 1.1283791, %v2400_v35  ;;  %v4974_v57 = vadd.f32 %v2532_v16, %v4811_v51 }
 0x353   :  { %v2375_v55 = vsub.f32 1.0, %v2374_v59  ;;  %3429 = vrcp.f32 %v4964_v47  ;;  %vm2378_vm12 = vweird.f32 %v4916_v48  ;;  %v4977_v21 = vmul.f32 %v2343_v6, %v2319_v19 }
 0x354   :  { %v4979_v34 = vmul.f32 %v2344_v1, %v2320_v14  ;;  %vm2380_vm14 = vmor %vm2378_vm12, %vm2379_vm11  ;;  %v2385_v28 = vor.u32 1.1754944e-38, %v2384_v45  ;;  %v2440_v11 = vmul.f32 %v2439_v12, %v4887_v61  ;;  %v2473_v23 = vadd.f32 0.00028619796, %v2472_v53 }
 0x355   :  { %v2376_v42 = vmul.f32 %v3426_v32, %v2375_v55  ;;  %v2484_v26 = vadd.f32 0.001143296, %v2483_v38  ;;  %v2362_v31 = vmul.f32 %v2361_v7, %v4840_v27  ;;  %vm2383_vm1 = vcmp.eq.f32.partialorder %v2382_v4, 8.507059e+37 }
 0x356   :  { %v4983_v51 = vmul.f32 1.442695, %v2333_v3  ;;  %v2402_v48 = vmul.f32 %v2401_v37, %v4873_v24  ;;  %v2474_v14 = vmul.f32 %v2473_v23, %v4959_v46  ;;  %vm2418_vm13 = vweird.f32 %v4955_v2 }
 0x357   :  { %v2377_v49 = vadd.f32 %v3426_v32, %v2376_v42  ;;  %v2422_v61 = vand.u32 2147483647, %v4955_v2  ;;  %v2485_v50 = vmul.f32 %v2484_v26, %v4959_v46  ;;  %v2441_v6 = vadd.f32 1.1283791, %v2440_v11 }
 0x358   :  { %v3428_v17 = vpop.eup %3427  ;;  %v2475_v35 = vadd.f32 0.0036580483, %v2474_v14  ;;  %v2462_v43 = vand.u32 2147483647, %v4964_v47  ;;  %v2464_v4 = vand.u32 2147483648, %v4964_v47  ;;  %vm2458_vm3 = vweird.f32 %v4964_v47 }
 0x359   :  { %v2381_v54 = vsel %vm2380_vm14, %v3426_v32, %v2377_v49  ;;  %v2414_v19 = vmul.f32 %v3428_v17, %v4955_v2  ;;  %v3430_v59 = vpop.eup %3429  ;;  %v2424_v32 = vand.u32 2147483648, %v4955_v2  ;;  %v2486_v7 = vadd.f32 0.014752088, %v2485_v50 }
 0x35a   :  { %v2386_v16 = vsel %vm2383_vm1, %v2385_v28, %v2381_v54  ;;  %v2454_v24 = vmul.f32 %v3430_v59, %v4964_v47  ;;  %vm2419_vm15 = vweird.f32 %v3428_v17  ;;  %v2476_v45 = vmul.f32 %v2475_v35, %v4959_v46 }
 0x35b   :  { %v2387_v29 = vmul.f32 %v2386_v16, %v2362_v31  ;;  %v2415_v27 = vsub.f32 1.0, %v2414_v19  ;;  %vm4996_vm0 = vcmp.eq.f32.partialorder %v2422_v61, 8.507059e+37  ;;  %v2487_v53 = vmul.f32 %v2486_v7, %v4959_v46  ;;  %vm2420_vm4 = vmor %vm2418_vm13, %vm2419_vm15 }
 0x35c   :  { %v2455_v42 = vsub.f32 1.0, %v2454_v24  ;;  %v2425_v37 = vor.u32 1.1754944e-38, %v2424_v32  ;;  %v2477_v49 = vadd.f32 0.05243302, %v2476_v45  ;;  %vm5004_vm6 = vcmp.eq.f32.partialorder %v2462_v43, 8.507059e+37 }
 0x35d   :  { %v3207_v1 = vclamps-f32 %v2387_v29, 1.0  ;;  %v2416_v55 = vmul.f32 %v3428_v17, %v2415_v27  ;;  %v2488_v26 = vadd.f32 0.112945676, %v2487_v53  ;;  %vm2459_vm2 = vweird.f32 %v3430_v59 }
 0x35e   :  { %v2456_v11 = vmul.f32 %v3430_v59, %v2455_v42  ;;  %v2465_v54 = vor.u32 1.1754944e-38, %v2464_v4  ;;  %v2478_v16 = vmul.f32 %v2477_v49, %v4959_v46  ;;  %vm2460_vm5 = vmor %vm2458_vm3, %vm2459_vm2  ;;  %v2539_v49 = vmul.f32 %v4977_v21, %v4854_v60 }
 0x35f   :  { %v2510_v12 = vadd.f32 1.0, %v3207_v1  ;;  %v2417_v38 = vadd.f32 %v3428_v17, %v2416_v55  ;;  %v2489_v32 = vmul.f32 %v2488_v26, %v4959_v46  ;;  %3431 = vpow2.f32 %v4983_v51 }
 0x360   :  { %v2457_v50 = vadd.f32 %v3430_v59, %v2456_v11  ;;  %v2479_v27 = vadd.f32 0.18741608, %v2478_v16 }
 0x361   :  { %v2514_v28 = vmul.f32 0.5, %v2510_v12  ;;  %v2421_v31 = vsel %vm2420_vm4, %v3428_v17, %v2417_v38  ;;  %v2490_v55 = vadd.f32 0.4994258, %v2489_v32 }
 0x362   :  { %v2426_v2 = vsel %vm4996_vm0, %v2425_v37, %v2421_v31  ;;  %v2461_v7 = vsel %vm2460_vm5, %v3430_v59, %v2457_v50 }
 0x363   :  { %v2518_v19 = vsub.f32 1.0, %v2514_v28  ;;  %v2522_v14 = vmul.f32 %v2514_v28, %v4830_v10  ;;  %v2546_v29 = vmul.f32 %v4933_v22, %v2514_v28  ;;  %v2427_v61 = vmul.f32 %v2426_v2, %v2402_v48 }
 0x364   :  { %v2480_v48 = vmul.f32 %v2479_v27, %v4959_v46  ;;  %v2442_v10 = vmul.f32 %v2441_v6, %v4877_v56  ;;  %v5035_v56 = vmul.f32 %v4979_v34, %v4860_v58 }
 0x365   :  { %v2542_v35 = vadd.f32 %v4953_v20, %v2522_v14  ;;  %v2550_v17 = vadd.f32 %v2546_v29, %v4970_v0  ;;  %v2566_v1 = vmul.f32 %v2562_v36, %v2518_v19  ;;  %v2574_v24 = vmul.f32 %v4933_v22, %v2518_v19  ;;  %v5047_v19 = vld [vmem:[%s5133_s14] ss:$0 sm:$0xff] }
 0x366   :  { %v3208_v43 = vclamps-f32 %v2427_v61, 1.0  ;;  %v2466_v36 = vsel %vm5004_vm6, %v2465_v54, %v2461_v7  ;;  %v2491_v22 = vmul.f32 %v2490_v55, %v4959_v46  ;;  %v2481_v38 = vadd.f32 1.1283791, %v2480_v48 }
 0x367   :  { %v2554_v4 = vmul.f32 %v2542_v35, %v2542_v35  ;;  %v2570_v45 = vadd.f32 %v2566_v1, %v4953_v20  ;;  %v2578_v12 = vsub.f32 %v2574_v24, %v4970_v0  ;;  %v2590_v3 = vsub.f32 0.0, %v2542_v35 }
 0x368   :  { %v2511_v42 = vadd.f32 1.0, %v3208_v43  ;;  %v2467_v20 = vmul.f32 %v2466_v36, %v2442_v10  ;;  %v5031_v28 = vadd.f32 1.0, %v2491_v22  ;;  %v5041_v16 = vmul.f32 %v2481_v38, %v4941_v33  ;;  %v5056_v33 = vld [vmem:[%s5134_s15] ss:$0 sm:$0xff]  ;;  %v3432_v43 = vpop.eup %3431 }
 0x369   :  { %v2558_v47 = vsub.f32 %v2550_v17, %v2554_v4  ;;  %v2582_v53 = vmul.f32 %v2570_v45, %v2570_v45  ;;  %v2598_v59 = vmul.f32 0.01, %v2570_v45  ;;  %v2594_v11 = vmul.f32 %v2590_v3, %v2570_v45 }
 0x36a   :  { %v2515_v37 = vmul.f32 0.5, %v2511_v42  ;;  %v3209_v26 = vclamps-f32 %v2467_v20, 1.0  ;;  %3433 = vrcp.f32 %v5031_v28  ;;  %v2502_v32 = vand.u32 2147483647, %v5031_v28 }
 0x36b   :  { %v2586_v0 = vsub.f32 %v2578_v12, %v2582_v53  ;;  %v2602_v31 = vsub.f32 %v2542_v35, %v2598_v59  ;;  %v2614_v50 = vmul.f32 0.02, %v2594_v11  ;;  %vm2498_vm8 = vweird.f32 %v5031_v28 }
 0x36c   :  { %v2519_v46 = vsub.f32 1.0, %v2515_v37  ;;  %v2523_v6 = vmul.f32 %v2515_v37, %v4854_v60  ;;  %v2547_v23 = vmul.f32 %v4936_v44, %v2515_v37  ;;  %v2512_v27 = vadd.f32 1.0, %v3209_v26 }
 0x36d   :  { %v2606_v54 = vmul.f32 0.0001, %v2586_v0  ;;  %v2626_v7 = vmul.f32 %v5047_v19, %v2602_v31  ;;  %v5074_v0 = vld [vmem:[%s5135_s16] ss:$0 sm:$0xff]  ;;  %vm2503_vm10 = vcmp.eq.f32.partialorder %v2502_v32, 8.507059e+37  ;;  %v2321_v32 = vmul.f32 %v4908_v15, %v4826_v52  ;;  %s3702_s16 = smov [#allocation16]  }
 0x36e   :  { %v2543_v51 = vadd.f32 %v4977_v21, %v2523_v6  ;;  %v2551_v14 = vadd.f32 %v2547_v23, %v2539_v49  ;;  %v2567_v29 = vmul.f32 %v2563_v9, %v2519_v46  ;;  %v2575_v2 = vmul.f32 %v4936_v44, %v2519_v46  ;;  %s2666_s6 = sshll.u32 %s3702_s16, 4  ;;  %s2667_s6 = int_to_ptr.vmem [resolvable:$true] %s2666_s6 }
 0x36f   :  { %v2610_v61 = vadd.f32 %v2606_v54, %v2558_v47  ;;  %v2516_v9 = vmul.f32 0.5, %v2512_v27  ;;  %v2504_v44 = vand.u32 2147483648, %v5031_v28 }
 0x370   :  { %v2555_v35 = vmul.f32 %v2543_v51, %v2543_v51  ;;  %v2571_v17 = vadd.f32 %v2567_v29, %v4977_v21  ;;  %v2579_v1 = vsub.f32 %v2575_v2, %v2539_v49  ;;  %v2591_v24 = vsub.f32 0.0, %v2543_v51  ;;  %v3434_v12 = vpop.eup %3433 }
 0x371   :  { %v2618_v60 = vsub.f32 %v2610_v61, %v2614_v50  ;;  %v2520_v3 = vsub.f32 1.0, %v2516_v9  ;;  %v2524_v42 = vmul.f32 %v2516_v9, %v4860_v58  ;;  %v2548_v10 = vmul.f32 %v4974_v57, %v2516_v9 }
 0x372   :  { %v2559_v48 = vsub.f32 %v2551_v14, %v2555_v35  ;;  %v2583_v55 = vmul.f32 %v2571_v17, %v2571_v17  ;;  %v2595_v4 = vmul.f32 %v2591_v24, %v2571_v17  ;;  %v2599_v45 = vmul.f32 0.01, %v2571_v17 }
 0x373   :  { %v2634_v21 = vadd.f32 %v5056_v33, %v2626_v7  ;;  %v2494_v53 = vmul.f32 %v3434_v12, %v5031_v28  ;;  %v2544_v59 = vadd.f32 %v4979_v34, %v2524_v42  ;;  %v2552_v38 = vadd.f32 %v2548_v10, %v5035_v56 }
 0x374   :  { %v2587_v36 = vsub.f32 %v2579_v1, %v2583_v55  ;;  %v2603_v22 = vsub.f32 %v2543_v51, %v2599_v45  ;;  %v2615_v47 = vmul.f32 0.02, %v2595_v4  ;;  %v2568_v37 = vmul.f32 %v2564_v40, %v2520_v3 }
 0x375   :  { %v2576_v49 = vmul.f32 %v4974_v57, %v2520_v3  ;;  %v2495_v11 = vsub.f32 1.0, %v2494_v53  ;;  %vm2499_vm7 = vweird.f32 %v3434_v12  ;;  %v2556_v6 = vmul.f32 %v2544_v59, %v2544_v59 }
 0x376   :  { %v2607_v20 = vmul.f32 0.0001, %v2587_v36  ;;  %v2627_v46 = vmul.f32 %v5047_v19, %v2603_v22  ;;  %v2572_v23 = vadd.f32 %v2568_v37, %v4979_v34  ;;  %v2592_v31 = vsub.f32 0.0, %v2544_v59  ;;  %vm2500_vm9 = vmor %vm2498_vm8, %vm2499_vm7 }
 0x377   :  { %v2580_v26 = vsub.f32 %v2576_v49, %v5035_v56  ;;  %v2496_v40 = vmul.f32 %v3434_v12, %v2495_v11  ;;  %v2646_v54 = vadd.f32 %v2634_v21, %v4112_v41  ;;  %v2560_v51 = vsub.f32 %v2552_v38, %v2556_v6 }
 0x378   :  { %v2611_v58 = vadd.f32 %v2607_v20, %v2559_v48  ;;  %v2635_v57 = vadd.f32 %v5056_v33, %v2627_v46  ;;  %v2584_v14 = vmul.f32 %v2572_v23, %v2572_v23  ;;  %v2600_v29 = vmul.f32 0.01, %v2572_v23 }
 0x379   :  { %v2497_v61 = vadd.f32 %v3434_v12, %v2496_v40  ;;  %2650 = vst [vmem:[#allocation16] sm:$0xff] %v2646_v54  ;;  %v2642_v34 = vmul.f32 %v5074_v0, %v2618_v60  ;;  %v2596_v27 = vmul.f32 %v2592_v31, %v2572_v23  ;;  %v2505_v17 = vor.u32 1.1754944e-38, %v2504_v44 }
 0x37a   :  { %v2619_v2 = vsub.f32 %v2611_v58, %v2615_v47  ;;  %v2647_v50 = vadd.f32 %v2635_v57, %v4114_v18  ;;  %v2588_v56 = vsub.f32 %v2580_v26, %v2584_v14  ;;  %v2604_v35 = vsub.f32 %v2544_v59, %v2600_v29 }
 0x37b   :  { %v2501_v1 = vsel %vm2500_vm9, %v3434_v12, %v2497_v61  ;;  %v2654_v28 = vadd.f32 %v2642_v34, %v4099_v62  ;;  %v2345_v7 = vmul.f32 0.3989423, %v3432_v43  ;;  %v2616_v4 = vmul.f32 0.02, %v2596_v27 }
 0x37c   :  { %2651 = vst [vmem:[#allocation16 + $0x8] sm:$0xff] %v2647_v50  ;;  %v2643_v41 = vmul.f32 %v5074_v0, %v2619_v2  ;;  %v2608_v24 = vmul.f32 0.0001, %v2588_v56  ;;  %v2506_v9 = vsel %vm2503_vm10, %v2505_v17, %v2501_v1  ;;  %v2628_v18 = vmul.f32 %v5047_v19, %v2604_v35 }
 0x37d   :  { %v2507_v60 = vmul.f32 %v2506_v9, %v5041_v16  ;;  %2658 = vst [vmem:[#allocation17] sm:$0xff] %v2654_v28  ;;  %v2529_v42 = vmul.f32 %v2345_v7, %v2321_v32  ;;  %v2533_v16 = vmul.f32 %v4914_v5, %v4914_v5  ;;  %v2565_v21 = vsub.f32 0.0, %v4914_v5 }
 0x37e   :  { %v2655_v48 = vadd.f32 %v2643_v41, %v4128_v63  ;;  %v2612_v55 = vadd.f32 %v2608_v24, %v2560_v51  ;;  %v2636_v44 = vadd.f32 %v5056_v33, %v2628_v18 }
 0x37f   :  { %v3210_v45 = vclamps-f32 %v2507_v60, 1.0  ;;  %v2537_v10 = vadd.f32 %v2533_v16, %v4823_v30 }
 0x380   :  { %2659 = vst [vmem:[#allocation17 + $0x8] sm:$0xff] %v2655_v48  ;;  %v2620_v62 = vsub.f32 %v2612_v55, %v2616_v4  ;;  %v2648_v12 = vadd.f32 %v2636_v44, %v4141_v13  ;;  %v2541_v13 = vmul.f32 %v2529_v42, %v4914_v5 }
 0x381   :  { %v2513_v3 = vadd.f32 1.0, %v3210_v45 }
 0x382   :  { %v2644_v63 = vmul.f32 %v5074_v0, %v2620_v62  ;;  %2652 = vst [vmem:[#allocation16 + $0x10] sm:$0xff] %v2648_v12 }
 0x383   :  { %v2517_v43 = vmul.f32 0.5, %v2513_v3 }
 0x384   :  { %v2656_v52 = vadd.f32 %v2644_v63, %v4169_v39 }
 0x385   :  { %v2521_v15 = vsub.f32 1.0, %v2517_v43  ;;  %v2525_v36 = vmul.f32 %v2517_v43, %v4914_v5  ;;  %v2549_v22 = vmul.f32 %v2537_v10, %v2517_v43 }
 0x386   :  { %2660 = vst [vmem:[#allocation17 + $0x10] sm:$0xff] %v2656_v52 }
 0x387   :  { %v2545_v47 = vadd.f32 %v2529_v42, %v2525_v36  ;;  %v2553_v53 = vadd.f32 %v2549_v22, %v2541_v13  ;;  %v2569_v59 = vmul.f32 %v2565_v21, %v2521_v15  ;;  %v2577_v38 = vmul.f32 %v2537_v10, %v2521_v15 }
 0x389   :  { %v2557_v37 = vmul.f32 %v2545_v47, %v2545_v47  ;;  %v2573_v49 = vadd.f32 %v2569_v59, %v2529_v42  ;;  %v2581_v20 = vsub.f32 %v2577_v38, %v2541_v13  ;;  %v2593_v11 = vsub.f32 0.0, %v2545_v47 }
 0x38b   :  { %v2561_v30 = vsub.f32 %v2553_v53, %v2557_v37  ;;  %v2585_v46 = vmul.f32 %v2573_v49, %v2573_v49  ;;  %v2601_v6 = vmul.f32 0.01, %v2573_v49  ;;  %v2597_v39 = vmul.f32 %v2593_v11, %v2573_v49 }
 0x38d   :  { %v2589_v23 = vsub.f32 %v2581_v20, %v2585_v46  ;;  %v2605_v26 = vsub.f32 %v2545_v47, %v2601_v6  ;;  %v2617_v40 = vmul.f32 0.02, %v2597_v39 }
 0x38f   :  { %v2609_v31 = vmul.f32 0.0001, %v2589_v23  ;;  %v2629_v58 = vmul.f32 %v5047_v19, %v2605_v26 }
 0x391   :  { %v2613_v5 = vadd.f32 %v2609_v31, %v2561_v30  ;;  %v2637_v57 = vadd.f32 %v5056_v33, %v2629_v58 }
 0x393   :  { %v2621_v54 = vsub.f32 %v2613_v5, %v2617_v40  ;;  %v2649_v51 = vadd.f32 %v2637_v57, %v4185_v8 }
 0x395   :  { %v2645_v19 = vmul.f32 %v5074_v0, %v2621_v54  ;;  %2653 = vst [vmem:[#allocation16 + $0x18] sm:$0xff] %v2649_v51 }
 0x396   :  { %2674 = dma.vmem_to_hbm [thread:$0]  %s2667_s6, 512, %s2669_s21, [#allocation4], %s5150_s24, %s5150_s24, %s5149_s2  }
 0x397   :  { %v2657_v33 = vadd.f32 %v2645_v19, %v4220_v25 }
 0x399   :  { %2661 = vst [vmem:[#allocation17 + $0x18] sm:$0xff] %v2657_v33 }
 0x39a   :  { %2687 = dma.vmem_to_hbm [thread:$0]  %s2680_s26, 512, %s2682_s9, [#allocation18], %s5150_s24, %s5150_s24, %s5149_s2  }
 0x39b   :  { %3685 = dma.done.wait [#allocation4], 512  }
 0x39c   :  { %3686 = vsyncadd [#allocation4], 4294966784 }
 0x39d   :  { %3687 = dma.done.wait [#allocation18], 512  }
 0x39e   :  { %3688 = vsyncadd [#allocation18], 4294966784 }
 0x39f   :  { %2696 = vsyncpa [#allocation3], 1 }
 0x3a0   :  { %2697 = vsyncpa [#allocation6], 1 }
 0x3a1   :  { %2698 = vsyncpa [#allocation9], 1 }
 0x3a2   :  { %2699 = vsyncpa [#allocation12], 1 }
 0x3a3   :  { %2700 = vsyncpa [#allocation15], 1 }
 0x3a4   :  { %2701 = vsyncpa [#allocation4], 1 }
 0x3a5   :  { %2702 = vsyncpa [#allocation18], 1 }

</bundles_post_ra>
